<compile_context>
chip_gen: v6e
topology: v6e:2x2x1
jax: 0.10.0
libtpu: 0.0.40
codegen_flags: <defaults>
</compile_context>

<pallas_src>
import functools

import numpy as np

import jax
import jax.numpy as jnp
from jax.experimental import pallas as pl
from jax.experimental.pallas import tpu as pltpu  # noqa: F401  (TPU backend)

DTYPE = jnp.float32
WEIGHT_DTYPE = jnp.bfloat16
BN_EPS = 1e-5


# --------------------------- fused Pallas kernel ---------------------------

def _decoder_kernel(
    z_ref, w1_ref, b1_ref, w2_ref, b2_ref,
    bc1_ref, cb1_ref, s1_ref, s1t_ref, g1_ref, be1_ref,
    bc2_ref, cb2_ref, s2_ref, s2t_ref, g2_ref, be2_ref,
    bc3_ref, cb3_ref, bc4_ref, cb4_ref,
    out_ref, *, nb, nb_p,
):
    f32 = jnp.float32
    rows = 9 * nb_p                       # multiple of 8 by construction

    # ---- row masks from iota (compare-only; no host mask inputs, no int div).
    # Rows are ordered (u, n) with u = 3*m + j over the 3x3 base grid.
    ridx = jax.lax.broadcasted_iota(jnp.int32, (rows, 1), 0)
    j_is_2 = (((ridx >= 2 * nb_p) & (ridx < 3 * nb_p))
              | ((ridx >= 5 * nb_p) & (ridx < 6 * nb_p))
              | (ridx >= 8 * nb_p))                       # u in {2,5,8}
    m_is_2 = ridx >= 6 * nb_p                             # u in {6,7,8}
    mask_r = 1.0 - j_is_2.astype(f32)      # no right neighbour
    mask_d = 1.0 - m_is_2.astype(f32)      # no down neighbour
    mask_rd = mask_r * mask_d
    if nb != nb_p:                          # validity of padded batch entries
        vb = ridx < nb
        for u in range(1, 9):
            vb = vb | ((ridx >= u * nb_p) & (ridx < u * nb_p + nb))
        valid = vb.astype(f32)
    else:
        valid = None

    # ---- Linear(enc,128) + Hardtanh  (bf16 weights, f32 accumulate)
    h1 = jnp.dot(z_ref[...], w1_ref[...], preferred_element_type=f32) + b1_ref[...]
    h1 = jnp.clip(h1, -1.0, 1.0)

    # ---- Linear(128,432) + Tanh as ONE GEMM; columns pre-permuted to (u, c).
    h2 = jnp.dot(h1, w2_ref[...], preferred_element_type=f32) + b2_ref[...]
    h2 = jnp.tanh(h2)                                      # [nb_p, 432]
    # Unflatten -> base-grid row layout (u, n): 8-row-aligned sublane concat.
    y = jnp.concatenate([h2[:, 48 * u:48 * (u + 1)] for u in range(9)], axis=0)

    def rot(x, off):
        # result[i] = x[(i + off) % rows].  off is a multiple of 8, so both
        # pieces are sublane-tile aligned: a pure vreg restitch (same effect
        # as pltpu.roll by a multiple of 8), no zeros, no retiling.  Wrapped
        # rows are exactly the rows zeroed by the masks below.
        return jnp.concatenate([x[off:, :], x[:off, :]], axis=0)

    def convt(x, bc_ref, cb_ref):
        # stride-2 ConvTranspose2d as 4 accumulated GEMMs over the
        # pre-compiled nested-phase block matrices (no wide xc temp).
        acc = jnp.dot(x, bc_ref[0], preferred_element_type=f32)
        acc = acc + jnp.dot(rot(x, nb_p) * mask_r, bc_ref[1],
                            preferred_element_type=f32)
        acc = acc + jnp.dot(rot(x, 3 * nb_p) * mask_d, bc_ref[2],
                            preferred_element_type=f32)
        acc = acc + jnp.dot(rot(x, 4 * nb_p) * mask_rd, bc_ref[3],
                            preferred_element_type=f32)
        return acc + cb_ref[...]

    def bn_tanh(x, s_ref, st_ref, g_ref, b_ref, count):
        # BatchNorm2d (training-mode batch stats) + Tanh, one-pass moments.
        # Padded batch rows are excluded from the statistics via `valid`.
        xv = x if valid is None else x * valid
        sums = jnp.concatenate(
            [jnp.sum(xv, axis=0, keepdims=True),
             jnp.sum(xv * xv, axis=0, keepdims=True)], axis=0)      # [2, C*P]
        red = jnp.dot(sums, s_ref[...],
                      preferred_element_type=f32) * (1.0 / count)   # [2, C]
        mean_c = red[0:1, :]
        var_c = red[1:2, :] - mean_c * mean_c
        scale_c = g_ref[...] * jax.lax.rsqrt(var_c + BN_EPS)
        shift_c = b_ref[...] - mean_c * scale_c
        coef = jnp.dot(jnp.concatenate([scale_c, shift_c], axis=0), st_ref[...],
                       preferred_element_type=f32)                  # [2, C*P]
        return jnp.tanh(x * coef[0:1, :] + coef[1:2, :])

    a1 = convt(y, bc1_ref, cb1_ref)                                 # [rows, 128]
    y1 = bn_tanh(a1, s1_ref, s1t_ref, g1_ref, be1_ref, 4.0 * 9.0 * nb)
    a2 = convt(y1, bc2_ref, cb2_ref)                                # [rows, 256]
    y2 = bn_tanh(a2, s2_ref, s2t_ref, g2_ref, be2_ref, 16.0 * 9.0 * nb)
    a3 = convt(y2, bc3_ref, cb3_ref)                                # [rows, 512]
    y3 = jnp.tanh(a3)
    a4 = jnp.dot(y3, bc4_ref[...], preferred_element_type=f32) + cb4_ref[...]
    out_ref[...] = a4.astype(out_ref.dtype)                         # [rows, 256]


# --------------------- one-time parameter preparation ----------------------

def _convt_block_matrix(w, r_in, padding):
    """Nested-phase block matrices for a stride-2 ConvTranspose2d.

    w: [Cin, Cout, k, k] (PyTorch layout). r_in = phase block size of the
    input representation.  Returns [4, Cin*r_in^2, Cout*(2*r_in)^2] with block
    index ordered [base, right(j+1), down(m+1), diag] and columns within a
    block ordered (channel, row-phase, col-phase).
    """
    w = np.asarray(w, np.float32)
    cin, cout, k, _ = w.shape
    r_out = 2 * r_in
    blk = np.zeros((4, cin, r_in, r_in, cout, r_out, r_out), np.float32)
    for a in (0, 1):
        for b in (0, 1):
            for dr in (0, 1):
                for dc in (0, 1):
                    kh = a + padding - 2 * dr
                    kw = b + padding - 2 * dc
                    if not (0 <= kh < k and 0 <= kw < k):
                        continue
                    tap = w[:, :, kh, kw]                      # [Cin, Cout]
                    for r in range(r_in):
                        rp = r + dr
                        for s in range(r_in):
                            sp = s + dc
                            copy = (2 if rp == r_in else 0) + (1 if sp == r_in else 0)
                            blk[copy, :, rp % r_in, sp % r_in, :,
                                2 * r + a, 2 * s + b] += tap
    return blk.reshape(4, cin * r_in * r_in, cout * r_out * r_out)


def _channel_select(c, p):
    s = np.zeros((c * p, c), np.float32)
    s[np.arange(c * p), np.arange(c * p) // p] = 1.0
    return s, np.ascontiguousarray(s.T)


def prepare_params(p):
    """One-time transform of the module params into fused-kernel operands."""
    f32 = np.float32

    w2 = np.asarray(p["w2"], f32)                         # [128, 432], cols (c,u)
    b2 = np.asarray(p["b2"], f32)
    # Permute columns (c, u) -> (u, c): Unflatten becomes a row re-blocking.
    w2p = w2.reshape(128, 48, 9).transpose(0, 2, 1).reshape(128, 432)
    b2p = b2.reshape(48, 9).T.reshape(432)

    bc1 = _convt_block_matrix(p["wt1"], 1, 1)             # [4,  48, 128]
    bc2 = _convt_block_matrix(p["wt2"], 2, 1)             # [4, 128, 256]
    bc3 = _convt_block_matrix(p["wt3"], 4, 1)             # [4, 256, 512]
    bc4 = _convt_block_matrix(p["wt4"], 8, 0)[0]          # [512, 256] (base only)

    cb1 = np.repeat(np.asarray(p["bt1"], f32), 4)[None, :]
    cb2 = np.repeat(np.asarray(p["bt2"], f32), 16)[None, :]
    cb3 = np.repeat(np.asarray(p["bt3"], f32), 64)[None, :]
    cb4 = np.repeat(np.asarray(p["bt4"], f32), 256)[None, :]

    s1, s1t = _channel_select(32, 4)
    s2, s2t = _channel_select(16, 16)

    wd = WEIGHT_DTYPE
    prep = dict(
        w1=jnp.asarray(np.asarray(p["w1"], f32), dtype=wd),
        b1=jnp.asarray(np.asarray(p["b1"], f32)[None, :]),
        w2=jnp.asarray(w2p, dtype=wd),
        b2=jnp.asarray(b2p[None, :]),
        bc1=jnp.asarray(bc1, dtype=wd), cb1=jnp.asarray(cb1),
        s1=jnp.asarray(s1), s1t=jnp.asarray(s1t),
        g1=jnp.asarray(np.asarray(p["bn1_g"], f32)[None, :]),
        be1=jnp.asarray(np.asarray(p["bn1_b"], f32)[None, :]),
        bc2=jnp.asarray(bc2, dtype=wd), cb2=jnp.asarray(cb2),
        s2=jnp.asarray(s2), s2t=jnp.asarray(s2t),
        g2=jnp.asarray(np.asarray(p["bn2_g"], f32)[None, :]),
        be2=jnp.asarray(np.asarray(p["bn2_b"], f32)[None, :]),
        bc3=jnp.asarray(bc3, dtype=wd), cb3=jnp.asarray(cb3),
        bc4=jnp.asarray(bc4, dtype=wd), cb4=jnp.asarray(cb4),
    )
    return prep


# ------------------------------ forward pass -------------------------------

def decoder_forward(z, prep):
    nb = z.shape[0]
    nb_p = ((nb + 7) // 8) * 8          # pad batch so all row dims are 8-aligned
    rows = 9 * nb_p

    zp = z.astype(DTYPE)
    if nb_p != nb:
        zp = jnp.concatenate(
            [zp, jnp.zeros((nb_p - nb, z.shape[1]), DTYPE)], axis=0)

    args = (zp, prep["w1"], prep["b1"], prep["w2"], prep["b2"],
            prep["bc1"], prep["cb1"], prep["s1"], prep["s1t"], prep["g1"], prep["be1"],
            prep["bc2"], prep["cb2"], prep["s2"], prep["s2t"], prep["g2"], prep["be2"],
            prep["bc3"], prep["cb3"], prep["bc4"], prep["cb4"])

    def full_spec(a):
        nd = a.ndim
        return pl.BlockSpec(a.shape, lambda: (0,) * nd)

    y4 = pl.pallas_call(
        functools.partial(_decoder_kernel, nb=nb, nb_p=nb_p),
        out_shape=jax.ShapeDtypeStruct((rows, 256), DTYPE),
        in_specs=[full_spec(a) for a in args],
        out_specs=pl.BlockSpec((rows, 256), lambda: (0, 0)),
    )(*args)

    # De-interleave nested phases: row (u=3m+j, n), col (16*r + s)
    #   -> out[n, 0, 16*m + r, 16*j + s]; drop padded batch entries.
    out = y4.reshape(3, 3, nb_p, 16, 16)[:, :, :nb]
    out = jnp.transpose(out, (2, 0, 3, 1, 4)).reshape(nb, 48, 48)
    return out[:, None, :, :]


# --------------------------- parameter sampling -----------------------------

def init_params(key, encoded_space_dim):
    keys = jax.random.split(key, 16)

    def rnd(k, shape, scale=0.1):
        return (scale * jax.random.normal(k, shape)).astype(DTYPE)

    p = {}
    p["w1"] = rnd(keys[0], (encoded_space_dim, 128))   # Linear(enc, 128)
    p["b1"] = rnd(keys[1], (128,))
    p["w2"] = rnd(keys[2], (128, 432))                 # Linear(128, 432)
    p["b2"] = rnd(keys[3], (432,))
    p["wt1"] = rnd(keys[4], (48, 32, 3, 3))            # ConvT(48->32)
    p["bt1"] = rnd(keys[5], (32,))
    p["wt2"] = rnd(keys[6], (32, 16, 3, 3))            # ConvT(32->16)
    p["bt2"] = rnd(keys[7], (16,))
    p["wt3"] = rnd(keys[8], (16, 8, 3, 3))             # ConvT(16->8)
    p["bt3"] = rnd(keys[9], (8,))
    p["wt4"] = rnd(keys[10], (8, 1, 2, 2))             # ConvT(8->1)
    p["bt4"] = rnd(keys[11], (1,))
    p["bn1_g"] = 1.0 + rnd(keys[12], (32,))
    p["bn1_b"] = rnd(keys[13], (32,))
    p["bn2_g"] = 1.0 + rnd(keys[14], (16,))
    p["bn2_b"] = rnd(keys[15], (16,))
    return p


# --------------------- plain-JAX reference (validation) --------------------

def _ref_convt(x, w, b, stride, padding, output_padding):
    k = w.shape[2]
    kern = jnp.transpose(w[:, :, ::-1, ::-1], (1, 0, 2, 3))
    lo = k - 1 - padding
    hi = lo + output_padding
    y = jax.lax.conv_general_dilated(
        x, kern, window_strides=(1, 1), padding=((lo, hi), (lo, hi)),
        lhs_dilation=(stride, stride),
        dimension_numbers=("NCHW", "OIHW", "NCHW"),
        precision=jax.lax.Precision.HIGHEST)
    return y + b[None, :, None, None]


def _ref_bn_tanh(x, gamma, beta):
    mean = jnp.mean(x, axis=(0, 2, 3), keepdims=True)
    var = jnp.mean((x - mean) ** 2, axis=(0, 2, 3), keepdims=True)
    y = (x - mean) * jax.lax.rsqrt(var + BN_EPS)
    return jnp.tanh(y * gamma[None, :, None, None] + beta[None, :, None, None])


def _reference_forward(z, p):
    hi = jax.lax.Precision.HIGHEST
    n = z.shape[0]
    h = jnp.clip(jnp.dot(z, p["w1"], precision=hi) + p["b1"], -1.0, 1.0)
    h = jnp.tanh(jnp.dot(h, p["w2"], precision=hi) + p["b2"])
    x = h.reshape(n, 48, 3, 3)
    x = _ref_convt(x, p["wt1"], p["bt1"], 2, 1, 1)
    x = _ref_bn_tanh(x, p["bn1_g"], p["bn1_b"])
    x = _ref_convt(x, p["wt2"], p["bt2"], 2, 1, 1)
    x = _ref_bn_tanh(x, p["bn2_g"], p["bn2_b"])
    x = jnp.tanh(_ref_convt(x, p["wt3"], p["bt3"], 2, 1, 1))
    x = _ref_convt(x, p["wt4"], p["bt4"], 2, 0, 0)
    return x


if __name__ == "__main__":
    key = jax.random.PRNGKey(0)
    k_param, k_z = jax.random.split(key)

    encoded_space_dim = 16
    batch = 2

    params = init_params(k_param, encoded_space_dim)
    prep = prepare_params(params)
    z = jax.random.normal(k_z, (batch, encoded_space_dim), dtype=DTYPE)

    fwd = jax.jit(decoder_forward)
    out = jax.block_until_ready(fwd(z, prep))

    assert out.shape == (batch, 1, 48, 48), out.shape
    assert bool(jnp.all(jnp.isfinite(out)))

    # Numerical cross-check against a plain-JAX re-implementation of the module
    # (f32 HIGHEST precision; kernel uses bf16 weights + f32 accumulation).
    ref = jax.block_until_ready(_reference_forward(z, params))
    err = float(jnp.max(jnp.abs(out - ref)))
    assert err < 3e-2, f"max abs err vs reference: {err}"

    print("KERNEL_OK")
</pallas_src>

<mosaic_0001>
module attributes {stable_mosaic.version = 11 : i64} {
  func.func @_decoder_kernel(%arg0: memref<8x16xf32, #tpu.memory_space<vmem>>, %arg1: memref<16x128xbf16, #tpu.memory_space<vmem>>, %arg2: memref<1x128xf32, #tpu.memory_space<vmem>>, %arg3: memref<128x432xbf16, #tpu.memory_space<vmem>>, %arg4: memref<1x432xf32, #tpu.memory_space<vmem>>, %arg5: memref<4x48x128xbf16, #tpu.memory_space<vmem>>, %arg6: memref<1x128xf32, #tpu.memory_space<vmem>>, %arg7: memref<128x32xf32, #tpu.memory_space<vmem>>, %arg8: memref<32x128xf32, #tpu.memory_space<vmem>>, %arg9: memref<1x32xf32, #tpu.memory_space<vmem>>, %arg10: memref<1x32xf32, #tpu.memory_space<vmem>>, %arg11: memref<4x128x256xbf16, #tpu.memory_space<vmem>>, %arg12: memref<1x256xf32, #tpu.memory_space<vmem>>, %arg13: memref<256x16xf32, #tpu.memory_space<vmem>>, %arg14: memref<16x256xf32, #tpu.memory_space<vmem>>, %arg15: memref<1x16xf32, #tpu.memory_space<vmem>>, %arg16: memref<1x16xf32, #tpu.memory_space<vmem>>, %arg17: memref<4x256x512xbf16, #tpu.memory_space<vmem>>, %arg18: memref<1x512xf32, #tpu.memory_space<vmem>>, %arg19: memref<512x256xbf16, #tpu.memory_space<vmem>>, %arg20: memref<1x256xf32, #tpu.memory_space<vmem>>, %arg21: memref<72x256xf32, #tpu.memory_space<vmem>>) attributes {dimension_semantics = [], scalar_prefetch = 0 : i64, scratch_operands = 0 : i64, tpu.core_type = #tpu.core_type<tc>} {
    %0 = tpu.iota {dimensions = array<i32: 0>} : vector<72x1xi32>
    %c16_i32 = arith.constant 16 : i32
    %1 = vector.broadcast %c16_i32 : i32 to vector<72x1xi32>
    %2 = arith.cmpi sge, %0, %1 : vector<72x1xi32>
    %c24_i32 = arith.constant 24 : i32
    %3 = vector.broadcast %c24_i32 : i32 to vector<72x1xi32>
    %4 = arith.cmpi slt, %0, %3 : vector<72x1xi32>
    %5 = arith.andi %2, %4 : vector<72x1xi1>
    %c40_i32 = arith.constant 40 : i32
    %6 = vector.broadcast %c40_i32 : i32 to vector<72x1xi32>
    %7 = arith.cmpi sge, %0, %6 : vector<72x1xi32>
    %c48_i32 = arith.constant 48 : i32
    %8 = vector.broadcast %c48_i32 : i32 to vector<72x1xi32>
    %9 = arith.cmpi slt, %0, %8 : vector<72x1xi32>
    %10 = arith.andi %7, %9 : vector<72x1xi1>
    %11 = arith.ori %5, %10 : vector<72x1xi1>
    %c64_i32 = arith.constant 64 : i32
    %12 = vector.broadcast %c64_i32 : i32 to vector<72x1xi32>
    %13 = arith.cmpi sge, %0, %12 : vector<72x1xi32>
    %14 = arith.ori %11, %13 : vector<72x1xi1>
    %c48_i32_0 = arith.constant 48 : i32
    %15 = vector.broadcast %c48_i32_0 : i32 to vector<72x1xi32>
    %16 = arith.cmpi sge, %0, %15 : vector<72x1xi32>
    %17 = arith.extui %14 : vector<72x1xi1> to vector<72x1xi32>
    %18 = arith.sitofp %17 : vector<72x1xi32> to vector<72x1xf32>
    %cst = arith.constant 1.000000e+00 : f32
    %19 = vector.broadcast %cst : f32 to vector<72x1xf32>
    %20 = arith.subf %19, %18 : vector<72x1xf32>
    %21 = arith.extui %16 : vector<72x1xi1> to vector<72x1xi32>
    %22 = arith.sitofp %21 : vector<72x1xi32> to vector<72x1xf32>
    %cst_1 = arith.constant 1.000000e+00 : f32
    %23 = vector.broadcast %cst_1 : f32 to vector<72x1xf32>
    %24 = arith.subf %23, %22 : vector<72x1xf32>
    %25 = arith.mulf %20, %24 : vector<72x1xf32>
    %c2_i32 = arith.constant 2 : i32
    %26 = vector.broadcast %c2_i32 : i32 to vector<72x1xi32>
    %27 = arith.cmpi slt, %0, %26 : vector<72x1xi32>
    %c8_i32 = arith.constant 8 : i32
    %28 = vector.broadcast %c8_i32 : i32 to vector<72x1xi32>
    %29 = arith.cmpi sge, %0, %28 : vector<72x1xi32>
    %c10_i32 = arith.constant 10 : i32
    %30 = vector.broadcast %c10_i32 : i32 to vector<72x1xi32>
    %31 = arith.cmpi slt, %0, %30 : vector<72x1xi32>
    %32 = arith.andi %29, %31 : vector<72x1xi1>
    %33 = arith.ori %27, %32 : vector<72x1xi1>
    %c16_i32_2 = arith.constant 16 : i32
    %34 = vector.broadcast %c16_i32_2 : i32 to vector<72x1xi32>
    %35 = arith.cmpi sge, %0, %34 : vector<72x1xi32>
    %c18_i32 = arith.constant 18 : i32
    %36 = vector.broadcast %c18_i32 : i32 to vector<72x1xi32>
    %37 = arith.cmpi slt, %0, %36 : vector<72x1xi32>
    %38 = arith.andi %35, %37 : vector<72x1xi1>
    %39 = arith.ori %33, %38 : vector<72x1xi1>
    %c24_i32_3 = arith.constant 24 : i32
    %40 = vector.broadcast %c24_i32_3 : i32 to vector<72x1xi32>
    %41 = arith.cmpi sge, %0, %40 : vector<72x1xi32>
    %c26_i32 = arith.constant 26 : i32
    %42 = vector.broadcast %c26_i32 : i32 to vector<72x1xi32>
    %43 = arith.cmpi slt, %0, %42 : vector<72x1xi32>
    %44 = arith.andi %41, %43 : vector<72x1xi1>
    %45 = arith.ori %39, %44 : vector<72x1xi1>
    %c32_i32 = arith.constant 32 : i32
    %46 = vector.broadcast %c32_i32 : i32 to vector<72x1xi32>
    %47 = arith.cmpi sge, %0, %46 : vector<72x1xi32>
    %c34_i32 = arith.constant 34 : i32
    %48 = vector.broadcast %c34_i32 : i32 to vector<72x1xi32>
    %49 = arith.cmpi slt, %0, %48 : vector<72x1xi32>
    %50 = arith.andi %47, %49 : vector<72x1xi1>
    %51 = arith.ori %45, %50 : vector<72x1xi1>
    %c40_i32_4 = arith.constant 40 : i32
    %52 = vector.broadcast %c40_i32_4 : i32 to vector<72x1xi32>
    %53 = arith.cmpi sge, %0, %52 : vector<72x1xi32>
    %c42_i32 = arith.constant 42 : i32
    %54 = vector.broadcast %c42_i32 : i32 to vector<72x1xi32>
    %55 = arith.cmpi slt, %0, %54 : vector<72x1xi32>
    %56 = arith.andi %53, %55 : vector<72x1xi1>
    %57 = arith.ori %51, %56 : vector<72x1xi1>
    %c48_i32_5 = arith.constant 48 : i32
    %58 = vector.broadcast %c48_i32_5 : i32 to vector<72x1xi32>
    %59 = arith.cmpi sge, %0, %58 : vector<72x1xi32>
    %c50_i32 = arith.constant 50 : i32
    %60 = vector.broadcast %c50_i32 : i32 to vector<72x1xi32>
    %61 = arith.cmpi slt, %0, %60 : vector<72x1xi32>
    %62 = arith.andi %59, %61 : vector<72x1xi1>
    %63 = arith.ori %57, %62 : vector<72x1xi1>
    %c56_i32 = arith.constant 56 : i32
    %64 = vector.broadcast %c56_i32 : i32 to vector<72x1xi32>
    %65 = arith.cmpi sge, %0, %64 : vector<72x1xi32>
    %c58_i32 = arith.constant 58 : i32
    %66 = vector.broadcast %c58_i32 : i32 to vector<72x1xi32>
    %67 = arith.cmpi slt, %0, %66 : vector<72x1xi32>
    %68 = arith.andi %65, %67 : vector<72x1xi1>
    %69 = arith.ori %63, %68 : vector<72x1xi1>
    %c64_i32_6 = arith.constant 64 : i32
    %70 = vector.broadcast %c64_i32_6 : i32 to vector<72x1xi32>
    %71 = arith.cmpi sge, %0, %70 : vector<72x1xi32>
    %c66_i32 = arith.constant 66 : i32
    %72 = vector.broadcast %c66_i32 : i32 to vector<72x1xi32>
    %73 = arith.cmpi slt, %0, %72 : vector<72x1xi32>
    %74 = arith.andi %71, %73 : vector<72x1xi1>
    %75 = arith.ori %69, %74 : vector<72x1xi1>
    %76 = arith.extui %75 : vector<72x1xi1> to vector<72x1xi32>
    %77 = arith.sitofp %76 : vector<72x1xi32> to vector<72x1xf32>
    %c0 = arith.constant 0 : index
    %c0_7 = arith.constant 0 : index
    %78 = vector.load %arg0[%c0, %c0_7] : memref<8x16xf32, #tpu.memory_space<vmem>>, vector<8x16xf32>
    %c0_8 = arith.constant 0 : index
    %c0_9 = arith.constant 0 : index
    %79 = vector.load %arg1[%c0_8, %c0_9] : memref<16x128xbf16, #tpu.memory_space<vmem>>, vector<16x128xbf16>
    %cst_10 = arith.constant dense<0.000000e+00> : vector<8x128xf32>
    %80 = tpu.matmul %78, %79, %cst_10 {dimension_numbers = #tpu.dot_dimension_numbers<[1], [0], [0], [1], [0, 0, 1, 1], [], []>} : vector<8x16xf32>, vector<16x128xbf16>, vector<8x128xf32> -> vector<8x128xf32>
    %c0_11 = arith.constant 0 : index
    %c0_12 = arith.constant 0 : index
    %81 = vector.load %arg2[%c0_11, %c0_12] : memref<1x128xf32, #tpu.memory_space<vmem>>, vector<1x128xf32>
    %82 = vector.broadcast %81 : vector<1x128xf32> to vector<8x128xf32>
    %83 = arith.addf %80, %82 : vector<8x128xf32>
    %cst_13 = arith.constant -1.000000e+00 : f32
    %cst_14 = arith.constant 1.000000e+00 : f32
    %84 = vector.broadcast %cst_13 : f32 to vector<8x128xf32>
    %85 = arith.maximumf %84, %83 : vector<8x128xf32>
    %86 = vector.broadcast %cst_14 : f32 to vector<8x128xf32>
    %87 = arith.minimumf %86, %85 : vector<8x128xf32>
    %c0_15 = arith.constant 0 : index
    %c0_16 = arith.constant 0 : index
    %88 = vector.load %arg3[%c0_15, %c0_16] : memref<128x432xbf16, #tpu.memory_space<vmem>>, vector<128x432xbf16>
    %cst_17 = arith.constant dense<0.000000e+00> : vector<8x432xf32>
    %89 = tpu.matmul %87, %88, %cst_17 {dimension_numbers = #tpu.dot_dimension_numbers<[1], [0], [0], [1], [0, 0, 1, 1], [], []>} : vector<8x128xf32>, vector<128x432xbf16>, vector<8x432xf32> -> vector<8x432xf32>
    %c0_18 = arith.constant 0 : index
    %c0_19 = arith.constant 0 : index
    %90 = vector.load %arg4[%c0_18, %c0_19] : memref<1x432xf32, #tpu.memory_space<vmem>>, vector<1x432xf32>
    %91 = vector.broadcast %90 : vector<1x432xf32> to vector<8x432xf32>
    %92 = arith.addf %89, %91 : vector<8x432xf32>
    %93 = math.tanh %92 : vector<8x432xf32>
    %94 = vector.extract_strided_slice %93 {offsets = [0, 0], sizes = [8, 48], strides = [1, 1]} : vector<8x432xf32> to vector<8x48xf32>
    %95 = vector.extract_strided_slice %93 {offsets = [0, 48], sizes = [8, 48], strides = [1, 1]} : vector<8x432xf32> to vector<8x48xf32>
    %96 = vector.extract_strided_slice %93 {offsets = [0, 96], sizes = [8, 48], strides = [1, 1]} : vector<8x432xf32> to vector<8x48xf32>
    %97 = vector.extract_strided_slice %93 {offsets = [0, 144], sizes = [8, 48], strides = [1, 1]} : vector<8x432xf32> to vector<8x48xf32>
    %98 = vector.extract_strided_slice %93 {offsets = [0, 192], sizes = [8, 48], strides = [1, 1]} : vector<8x432xf32> to vector<8x48xf32>
    %99 = vector.extract_strided_slice %93 {offsets = [0, 240], sizes = [8, 48], strides = [1, 1]} : vector<8x432xf32> to vector<8x48xf32>
    %100 = vector.extract_strided_slice %93 {offsets = [0, 288], sizes = [8, 48], strides = [1, 1]} : vector<8x432xf32> to vector<8x48xf32>
    %101 = vector.extract_strided_slice %93 {offsets = [0, 336], sizes = [8, 48], strides = [1, 1]} : vector<8x432xf32> to vector<8x48xf32>
    %102 = vector.extract_strided_slice %93 {offsets = [0, 384], sizes = [8, 48], strides = [1, 1]} : vector<8x432xf32> to vector<8x48xf32>
    %103 = tpu.concatenate %94, %95, %96, %97, %98, %99, %100, %101, %102 in 0 : vector<8x48xf32>, vector<8x48xf32>, vector<8x48xf32>, vector<8x48xf32>, vector<8x48xf32>, vector<8x48xf32>, vector<8x48xf32>, vector<8x48xf32>, vector<8x48xf32> -> vector<72x48xf32>
    %c0_20 = arith.constant 0 : index
    %c0_21 = arith.constant 0 : index
    %c0_22 = arith.constant 0 : index
    %104 = vector.load %arg5[%c0_20, %c0_21, %c0_22] : memref<4x48x128xbf16, #tpu.memory_space<vmem>>, vector<1x48x128xbf16>
    %105 = vector.shape_cast %104 : vector<1x48x128xbf16> to vector<48x128xbf16>
    %cst_23 = arith.constant dense<0.000000e+00> : vector<72x128xf32>
    %106 = tpu.matmul %103, %105, %cst_23 {dimension_numbers = #tpu.dot_dimension_numbers<[1], [0], [0], [1], [0, 0, 1, 1], [], []>} : vector<72x48xf32>, vector<48x128xbf16>, vector<72x128xf32> -> vector<72x128xf32>
    %107 = vector.extract_strided_slice %103 {offsets = [8, 0], sizes = [64, 48], strides = [1, 1]} : vector<72x48xf32> to vector<64x48xf32>
    %108 = vector.extract_strided_slice %103 {offsets = [0, 0], sizes = [8, 48], strides = [1, 1]} : vector<72x48xf32> to vector<8x48xf32>
    %109 = tpu.concatenate %107, %108 in 0 : vector<64x48xf32>, vector<8x48xf32> -> vector<72x48xf32>
    %110 = vector.broadcast %20 : vector<72x1xf32> to vector<72x48xf32>
    %111 = arith.mulf %109, %110 : vector<72x48xf32>
    %c1 = arith.constant 1 : index
    %c0_24 = arith.constant 0 : index
    %c0_25 = arith.constant 0 : index
    %112 = vector.load %arg5[%c1, %c0_24, %c0_25] : memref<4x48x128xbf16, #tpu.memory_space<vmem>>, vector<1x48x128xbf16>
    %113 = vector.shape_cast %112 : vector<1x48x128xbf16> to vector<48x128xbf16>
    %cst_26 = arith.constant dense<0.000000e+00> : vector<72x128xf32>
    %114 = tpu.matmul %111, %113, %cst_26 {dimension_numbers = #tpu.dot_dimension_numbers<[1], [0], [0], [1], [0, 0, 1, 1], [], []>} : vector<72x48xf32>, vector<48x128xbf16>, vector<72x128xf32> -> vector<72x128xf32>
    %115 = arith.addf %106, %114 : vector<72x128xf32>
    %116 = vector.extract_strided_slice %103 {offsets = [24, 0], sizes = [48, 48], strides = [1, 1]} : vector<72x48xf32> to vector<48x48xf32>
    %117 = vector.extract_strided_slice %103 {offsets = [0, 0], sizes = [24, 48], strides = [1, 1]} : vector<72x48xf32> to vector<24x48xf32>
    %118 = tpu.concatenate %116, %117 in 0 : vector<48x48xf32>, vector<24x48xf32> -> vector<72x48xf32>
    %119 = vector.broadcast %24 : vector<72x1xf32> to vector<72x48xf32>
    %120 = arith.mulf %118, %119 : vector<72x48xf32>
    %c2 = arith.constant 2 : index
    %c0_27 = arith.constant 0 : index
    %c0_28 = arith.constant 0 : index
    %121 = vector.load %arg5[%c2, %c0_27, %c0_28] : memref<4x48x128xbf16, #tpu.memory_space<vmem>>, vector<1x48x128xbf16>
    %122 = vector.shape_cast %121 : vector<1x48x128xbf16> to vector<48x128xbf16>
    %cst_29 = arith.constant dense<0.000000e+00> : vector<72x128xf32>
    %123 = tpu.matmul %120, %122, %cst_29 {dimension_numbers = #tpu.dot_dimension_numbers<[1], [0], [0], [1], [0, 0, 1, 1], [], []>} : vector<72x48xf32>, vector<48x128xbf16>, vector<72x128xf32> -> vector<72x128xf32>
    %124 = arith.addf %115, %123 : vector<72x128xf32>
    %125 = vector.extract_strided_slice %103 {offsets = [32, 0], sizes = [40, 48], strides = [1, 1]} : vector<72x48xf32> to vector<40x48xf32>
    %126 = vector.extract_strided_slice %103 {offsets = [0, 0], sizes = [32, 48], strides = [1, 1]} : vector<72x48xf32> to vector<32x48xf32>
    %127 = tpu.concatenate %125, %126 in 0 : vector<40x48xf32>, vector<32x48xf32> -> vector<72x48xf32>
    %128 = vector.broadcast %25 : vector<72x1xf32> to vector<72x48xf32>
    %129 = arith.mulf %127, %128 : vector<72x48xf32>
    %c3 = arith.constant 3 : index
    %c0_30 = arith.constant 0 : index
    %c0_31 = arith.constant 0 : index
    %130 = vector.load %arg5[%c3, %c0_30, %c0_31] : memref<4x48x128xbf16, #tpu.memory_space<vmem>>, vector<1x48x128xbf16>
    %131 = vector.shape_cast %130 : vector<1x48x128xbf16> to vector<48x128xbf16>
    %cst_32 = arith.constant dense<0.000000e+00> : vector<72x128xf32>
    %132 = tpu.matmul %129, %131, %cst_32 {dimension_numbers = #tpu.dot_dimension_numbers<[1], [0], [0], [1], [0, 0, 1, 1], [], []>} : vector<72x48xf32>, vector<48x128xbf16>, vector<72x128xf32> -> vector<72x128xf32>
    %133 = arith.addf %124, %132 : vector<72x128xf32>
    %c0_33 = arith.constant 0 : index
    %c0_34 = arith.constant 0 : index
    %134 = vector.load %arg6[%c0_33, %c0_34] : memref<1x128xf32, #tpu.memory_space<vmem>>, vector<1x128xf32>
    %135 = vector.broadcast %134 : vector<1x128xf32> to vector<72x128xf32>
    %136 = arith.addf %133, %135 : vector<72x128xf32>
    %137 = vector.broadcast %77 : vector<72x1xf32> to vector<72x128xf32>
    %138 = arith.mulf %136, %137 : vector<72x128xf32>
    %cst_35 = arith.constant dense<0.000000e+00> : vector<128xf32>
    %139 = vector.multi_reduction <add>, %138, %cst_35 [0] : vector<72x128xf32> to vector<128xf32>
    %140 = vector.shape_cast %139 : vector<128xf32> to vector<1x128xf32>
    %141 = arith.mulf %138, %138 : vector<72x128xf32>
    %cst_36 = arith.constant dense<0.000000e+00> : vector<128xf32>
    %142 = vector.multi_reduction <add>, %141, %cst_36 [0] : vector<72x128xf32> to vector<128xf32>
    %143 = vector.shape_cast %142 : vector<128xf32> to vector<1x128xf32>
    %144 = tpu.concatenate %140, %143 in 0 : vector<1x128xf32>, vector<1x128xf32> -> vector<2x128xf32>
    %c0_37 = arith.constant 0 : index
    %c0_38 = arith.constant 0 : index
    %145 = vector.load %arg7[%c0_37, %c0_38] : memref<128x32xf32, #tpu.memory_space<vmem>>, vector<128x32xf32>
    %cst_39 = arith.constant dense<0.000000e+00> : vector<2x32xf32>
    %146 = tpu.matmul %144, %145, %cst_39 {dimension_numbers = #tpu.dot_dimension_numbers<[1], [0], [0], [1], [0, 0, 1, 1], [], []>} : vector<2x128xf32>, vector<128x32xf32>, vector<2x32xf32> -> vector<2x32xf32>
    %cst_40 = arith.constant 0.013888889 : f32
    %147 = vector.broadcast %cst_40 : f32 to vector<2x32xf32>
    %148 = arith.mulf %146, %147 : vector<2x32xf32>
    %149 = vector.extract_strided_slice %148 {offsets = [0, 0], sizes = [1, 32], strides = [1, 1]} : vector<2x32xf32> to vector<1x32xf32>
    %150 = vector.extract_strided_slice %148 {offsets = [1, 0], sizes = [1, 32], strides = [1, 1]} : vector<2x32xf32> to vector<1x32xf32>
    %151 = arith.mulf %149, %149 : vector<1x32xf32>
    %152 = arith.subf %150, %151 : vector<1x32xf32>
    %c0_41 = arith.constant 0 : index
    %c0_42 = arith.constant 0 : index
    %153 = vector.load %arg9[%c0_41, %c0_42] : memref<1x32xf32, #tpu.memory_space<vmem>>, vector<1x32xf32>
    %cst_43 = arith.constant 9.99999974E-6 : f32
    %154 = vector.broadcast %cst_43 : f32 to vector<1x32xf32>
    %155 = arith.addf %152, %154 : vector<1x32xf32>
    %156 = math.rsqrt %155 : vector<1x32xf32>
    %157 = arith.mulf %153, %156 : vector<1x32xf32>
    %c0_44 = arith.constant 0 : index
    %c0_45 = arith.constant 0 : index
    %158 = vector.load %arg10[%c0_44, %c0_45] : memref<1x32xf32, #tpu.memory_space<vmem>>, vector<1x32xf32>
    %159 = arith.mulf %149, %157 : vector<1x32xf32>
    %160 = arith.subf %158, %159 : vector<1x32xf32>
    %161 = tpu.concatenate %157, %160 in 0 : vector<1x32xf32>, vector<1x32xf32> -> vector<2x32xf32>
    %c0_46 = arith.constant 0 : index
    %c0_47 = arith.constant 0 : index
    %162 = vector.load %arg8[%c0_46, %c0_47] : memref<32x128xf32, #tpu.memory_space<vmem>>, vector<32x128xf32>
    %cst_48 = arith.constant dense<0.000000e+00> : vector<2x128xf32>
    %163 = tpu.matmul %161, %162, %cst_48 {dimension_numbers = #tpu.dot_dimension_numbers<[1], [0], [0], [1], [0, 0, 1, 1], [], []>} : vector<2x32xf32>, vector<32x128xf32>, vector<2x128xf32> -> vector<2x128xf32>
    %164 = vector.extract_strided_slice %163 {offsets = [0, 0], sizes = [1, 128], strides = [1, 1]} : vector<2x128xf32> to vector<1x128xf32>
    %165 = vector.broadcast %164 : vector<1x128xf32> to vector<72x128xf32>
    %166 = arith.mulf %136, %165 : vector<72x128xf32>
    %167 = vector.extract_strided_slice %163 {offsets = [1, 0], sizes = [1, 128], strides = [1, 1]} : vector<2x128xf32> to vector<1x128xf32>
    %168 = vector.broadcast %167 : vector<1x128xf32> to vector<72x128xf32>
    %169 = arith.addf %166, %168 : vector<72x128xf32>
    %170 = math.tanh %169 : vector<72x128xf32>
    %c0_49 = arith.constant 0 : index
    %c0_50 = arith.constant 0 : index
    %c0_51 = arith.constant 0 : index
    %171 = vector.load %arg11[%c0_49, %c0_50, %c0_51] : memref<4x128x256xbf16, #tpu.memory_space<vmem>>, vector<1x128x256xbf16>
    %172 = vector.shape_cast %171 : vector<1x128x256xbf16> to vector<128x256xbf16>
    %cst_52 = arith.constant dense<0.000000e+00> : vector<72x256xf32>
    %173 = tpu.matmul %170, %172, %cst_52 {dimension_numbers = #tpu.dot_dimension_numbers<[1], [0], [0], [1], [0, 0, 1, 1], [], []>} : vector<72x128xf32>, vector<128x256xbf16>, vector<72x256xf32> -> vector<72x256xf32>
    %174 = vector.extract_strided_slice %170 {offsets = [8, 0], sizes = [64, 128], strides = [1, 1]} : vector<72x128xf32> to vector<64x128xf32>
    %175 = vector.extract_strided_slice %170 {offsets = [0, 0], sizes = [8, 128], strides = [1, 1]} : vector<72x128xf32> to vector<8x128xf32>
    %176 = tpu.concatenate %174, %175 in 0 : vector<64x128xf32>, vector<8x128xf32> -> vector<72x128xf32>
    %177 = vector.broadcast %20 : vector<72x1xf32> to vector<72x128xf32>
    %178 = arith.mulf %176, %177 : vector<72x128xf32>
    %c1_53 = arith.constant 1 : index
    %c0_54 = arith.constant 0 : index
    %c0_55 = arith.constant 0 : index
    %179 = vector.load %arg11[%c1_53, %c0_54, %c0_55] : memref<4x128x256xbf16, #tpu.memory_space<vmem>>, vector<1x128x256xbf16>
    %180 = vector.shape_cast %179 : vector<1x128x256xbf16> to vector<128x256xbf16>
    %cst_56 = arith.constant dense<0.000000e+00> : vector<72x256xf32>
    %181 = tpu.matmul %178, %180, %cst_56 {dimension_numbers = #tpu.dot_dimension_numbers<[1], [0], [0], [1], [0, 0, 1, 1], [], []>} : vector<72x128xf32>, vector<128x256xbf16>, vector<72x256xf32> -> vector<72x256xf32>
    %182 = arith.addf %173, %181 : vector<72x256xf32>
    %183 = vector.extract_strided_slice %170 {offsets = [24, 0], sizes = [48, 128], strides = [1, 1]} : vector<72x128xf32> to vector<48x128xf32>
    %184 = vector.extract_strided_slice %170 {offsets = [0, 0], sizes = [24, 128], strides = [1, 1]} : vector<72x128xf32> to vector<24x128xf32>
    %185 = tpu.concatenate %183, %184 in 0 : vector<48x128xf32>, vector<24x128xf32> -> vector<72x128xf32>
    %186 = vector.broadcast %24 : vector<72x1xf32> to vector<72x128xf32>
    %187 = arith.mulf %185, %186 : vector<72x128xf32>
    %c2_57 = arith.constant 2 : index
    %c0_58 = arith.constant 0 : index
    %c0_59 = arith.constant 0 : index
    %188 = vector.load %arg11[%c2_57, %c0_58, %c0_59] : memref<4x128x256xbf16, #tpu.memory_space<vmem>>, vector<1x128x256xbf16>
    %189 = vector.shape_cast %188 : vector<1x128x256xbf16> to vector<128x256xbf16>
    %cst_60 = arith.constant dense<0.000000e+00> : vector<72x256xf32>
    %190 = tpu.matmul %187, %189, %cst_60 {dimension_numbers = #tpu.dot_dimension_numbers<[1], [0], [0], [1], [0, 0, 1, 1], [], []>} : vector<72x128xf32>, vector<128x256xbf16>, vector<72x256xf32> -> vector<72x256xf32>
    %191 = arith.addf %182, %190 : vector<72x256xf32>
    %192 = vector.extract_strided_slice %170 {offsets = [32, 0], sizes = [40, 128], strides = [1, 1]} : vector<72x128xf32> to vector<40x128xf32>
    %193 = vector.extract_strided_slice %170 {offsets = [0, 0], sizes = [32, 128], strides = [1, 1]} : vector<72x128xf32> to vector<32x128xf32>
    %194 = tpu.concatenate %192, %193 in 0 : vector<40x128xf32>, vector<32x128xf32> -> vector<72x128xf32>
    %195 = vector.broadcast %25 : vector<72x1xf32> to vector<72x128xf32>
    %196 = arith.mulf %194, %195 : vector<72x128xf32>
    %c3_61 = arith.constant 3 : index
    %c0_62 = arith.constant 0 : index
    %c0_63 = arith.constant 0 : index
    %197 = vector.load %arg11[%c3_61, %c0_62, %c0_63] : memref<4x128x256xbf16, #tpu.memory_space<vmem>>, vector<1x128x256xbf16>
    %198 = vector.shape_cast %197 : vector<1x128x256xbf16> to vector<128x256xbf16>
    %cst_64 = arith.constant dense<0.000000e+00> : vector<72x256xf32>
    %199 = tpu.matmul %196, %198, %cst_64 {dimension_numbers = #tpu.dot_dimension_numbers<[1], [0], [0], [1], [0, 0, 1, 1], [], []>} : vector<72x128xf32>, vector<128x256xbf16>, vector<72x256xf32> -> vector<72x256xf32>
    %200 = arith.addf %191, %199 : vector<72x256xf32>
    %c0_65 = arith.constant 0 : index
    %c0_66 = arith.constant 0 : index
    %201 = vector.load %arg12[%c0_65, %c0_66] : memref<1x256xf32, #tpu.memory_space<vmem>>, vector<1x256xf32>
    %202 = vector.broadcast %201 : vector<1x256xf32> to vector<72x256xf32>
    %203 = arith.addf %200, %202 : vector<72x256xf32>
    %204 = vector.broadcast %77 : vector<72x1xf32> to vector<72x256xf32>
    %205 = arith.mulf %203, %204 : vector<72x256xf32>
    %cst_67 = arith.constant dense<0.000000e+00> : vector<256xf32>
    %206 = vector.multi_reduction <add>, %205, %cst_67 [0] : vector<72x256xf32> to vector<256xf32>
    %207 = vector.shape_cast %206 : vector<256xf32> to vector<1x256xf32>
    %208 = arith.mulf %205, %205 : vector<72x256xf32>
    %cst_68 = arith.constant dense<0.000000e+00> : vector<256xf32>
    %209 = vector.multi_reduction <add>, %208, %cst_68 [0] : vector<72x256xf32> to vector<256xf32>
    %210 = vector.shape_cast %209 : vector<256xf32> to vector<1x256xf32>
    %211 = tpu.concatenate %207, %210 in 0 : vector<1x256xf32>, vector<1x256xf32> -> vector<2x256xf32>
    %c0_69 = arith.constant 0 : index
    %c0_70 = arith.constant 0 : index
    %212 = vector.load %arg13[%c0_69, %c0_70] : memref<256x16xf32, #tpu.memory_space<vmem>>, vector<256x16xf32>
    %cst_71 = arith.constant dense<0.000000e+00> : vector<2x16xf32>
    %213 = tpu.matmul %211, %212, %cst_71 {dimension_numbers = #tpu.dot_dimension_numbers<[1], [0], [0], [1], [0, 0, 1, 1], [], []>} : vector<2x256xf32>, vector<256x16xf32>, vector<2x16xf32> -> vector<2x16xf32>
    %cst_72 = arith.constant 0.00347222225 : f32
    %214 = vector.broadcast %cst_72 : f32 to vector<2x16xf32>
    %215 = arith.mulf %213, %214 : vector<2x16xf32>
    %216 = vector.extract_strided_slice %215 {offsets = [0, 0], sizes = [1, 16], strides = [1, 1]} : vector<2x16xf32> to vector<1x16xf32>
    %217 = vector.extract_strided_slice %215 {offsets = [1, 0], sizes = [1, 16], strides = [1, 1]} : vector<2x16xf32> to vector<1x16xf32>
    %218 = arith.mulf %216, %216 : vector<1x16xf32>
    %219 = arith.subf %217, %218 : vector<1x16xf32>
    %c0_73 = arith.constant 0 : index
    %c0_74 = arith.constant 0 : index
    %220 = vector.load %arg15[%c0_73, %c0_74] : memref<1x16xf32, #tpu.memory_space<vmem>>, vector<1x16xf32>
    %cst_75 = arith.constant 9.99999974E-6 : f32
    %221 = vector.broadcast %cst_75 : f32 to vector<1x16xf32>
    %222 = arith.addf %219, %221 : vector<1x16xf32>
    %223 = math.rsqrt %222 : vector<1x16xf32>
    %224 = arith.mulf %220, %223 : vector<1x16xf32>
    %c0_76 = arith.constant 0 : index
    %c0_77 = arith.constant 0 : index
    %225 = vector.load %arg16[%c0_76, %c0_77] : memref<1x16xf32, #tpu.memory_space<vmem>>, vector<1x16xf32>
    %226 = arith.mulf %216, %224 : vector<1x16xf32>
    %227 = arith.subf %225, %226 : vector<1x16xf32>
    %228 = tpu.concatenate %224, %227 in 0 : vector<1x16xf32>, vector<1x16xf32> -> vector<2x16xf32>
    %c0_78 = arith.constant 0 : index
    %c0_79 = arith.constant 0 : index
    %229 = vector.load %arg14[%c0_78, %c0_79] : memref<16x256xf32, #tpu.memory_space<vmem>>, vector<16x256xf32>
    %cst_80 = arith.constant dense<0.000000e+00> : vector<2x256xf32>
    %230 = tpu.matmul %228, %229, %cst_80 {dimension_numbers = #tpu.dot_dimension_numbers<[1], [0], [0], [1], [0, 0, 1, 1], [], []>} : vector<2x16xf32>, vector<16x256xf32>, vector<2x256xf32> -> vector<2x256xf32>
    %231 = vector.extract_strided_slice %230 {offsets = [0, 0], sizes = [1, 256], strides = [1, 1]} : vector<2x256xf32> to vector<1x256xf32>
    %232 = vector.broadcast %231 : vector<1x256xf32> to vector<72x256xf32>
    %233 = arith.mulf %203, %232 : vector<72x256xf32>
    %234 = vector.extract_strided_slice %230 {offsets = [1, 0], sizes = [1, 256], strides = [1, 1]} : vector<2x256xf32> to vector<1x256xf32>
    %235 = vector.broadcast %234 : vector<1x256xf32> to vector<72x256xf32>
    %236 = arith.addf %233, %235 : vector<72x256xf32>
    %237 = math.tanh %236 : vector<72x256xf32>
    %c0_81 = arith.constant 0 : index
    %c0_82 = arith.constant 0 : index
    %c0_83 = arith.constant 0 : index
    %238 = vector.load %arg17[%c0_81, %c0_82, %c0_83] : memref<4x256x512xbf16, #tpu.memory_space<vmem>>, vector<1x256x512xbf16>
    %239 = vector.shape_cast %238 : vector<1x256x512xbf16> to vector<256x512xbf16>
    %cst_84 = arith.constant dense<0.000000e+00> : vector<72x512xf32>
    %240 = tpu.matmul %237, %239, %cst_84 {dimension_numbers = #tpu.dot_dimension_numbers<[1], [0], [0], [1], [0, 0, 1, 1], [], []>} : vector<72x256xf32>, vector<256x512xbf16>, vector<72x512xf32> -> vector<72x512xf32>
    %241 = vector.extract_strided_slice %237 {offsets = [8, 0], sizes = [64, 256], strides = [1, 1]} : vector<72x256xf32> to vector<64x256xf32>
    %242 = vector.extract_strided_slice %237 {offsets = [0, 0], sizes = [8, 256], strides = [1, 1]} : vector<72x256xf32> to vector<8x256xf32>
    %243 = tpu.concatenate %241, %242 in 0 : vector<64x256xf32>, vector<8x256xf32> -> vector<72x256xf32>
    %244 = vector.broadcast %20 : vector<72x1xf32> to vector<72x256xf32>
    %245 = arith.mulf %243, %244 : vector<72x256xf32>
    %c1_85 = arith.constant 1 : index
    %c0_86 = arith.constant 0 : index
    %c0_87 = arith.constant 0 : index
    %246 = vector.load %arg17[%c1_85, %c0_86, %c0_87] : memref<4x256x512xbf16, #tpu.memory_space<vmem>>, vector<1x256x512xbf16>
    %247 = vector.shape_cast %246 : vector<1x256x512xbf16> to vector<256x512xbf16>
    %cst_88 = arith.constant dense<0.000000e+00> : vector<72x512xf32>
    %248 = tpu.matmul %245, %247, %cst_88 {dimension_numbers = #tpu.dot_dimension_numbers<[1], [0], [0], [1], [0, 0, 1, 1], [], []>} : vector<72x256xf32>, vector<256x512xbf16>, vector<72x512xf32> -> vector<72x512xf32>
    %249 = arith.addf %240, %248 : vector<72x512xf32>
    %250 = vector.extract_strided_slice %237 {offsets = [24, 0], sizes = [48, 256], strides = [1, 1]} : vector<72x256xf32> to vector<48x256xf32>
    %251 = vector.extract_strided_slice %237 {offsets = [0, 0], sizes = [24, 256], strides = [1, 1]} : vector<72x256xf32> to vector<24x256xf32>
    %252 = tpu.concatenate %250, %251 in 0 : vector<48x256xf32>, vector<24x256xf32> -> vector<72x256xf32>
    %253 = vector.broadcast %24 : vector<72x1xf32> to vector<72x256xf32>
    %254 = arith.mulf %252, %253 : vector<72x256xf32>
    %c2_89 = arith.constant 2 : index
    %c0_90 = arith.constant 0 : index
    %c0_91 = arith.constant 0 : index
    %255 = vector.load %arg17[%c2_89, %c0_90, %c0_91] : memref<4x256x512xbf16, #tpu.memory_space<vmem>>, vector<1x256x512xbf16>
    %256 = vector.shape_cast %255 : vector<1x256x512xbf16> to vector<256x512xbf16>
    %cst_92 = arith.constant dense<0.000000e+00> : vector<72x512xf32>
    %257 = tpu.matmul %254, %256, %cst_92 {dimension_numbers = #tpu.dot_dimension_numbers<[1], [0], [0], [1], [0, 0, 1, 1], [], []>} : vector<72x256xf32>, vector<256x512xbf16>, vector<72x512xf32> -> vector<72x512xf32>
    %258 = arith.addf %249, %257 : vector<72x512xf32>
    %259 = vector.extract_strided_slice %237 {offsets = [32, 0], sizes = [40, 256], strides = [1, 1]} : vector<72x256xf32> to vector<40x256xf32>
    %260 = vector.extract_strided_slice %237 {offsets = [0, 0], sizes = [32, 256], strides = [1, 1]} : vector<72x256xf32> to vector<32x256xf32>
    %261 = tpu.concatenate %259, %260 in 0 : vector<40x256xf32>, vector<32x256xf32> -> vector<72x256xf32>
    %262 = vector.broadcast %25 : vector<72x1xf32> to vector<72x256xf32>
    %263 = arith.mulf %261, %262 : vector<72x256xf32>
    %c3_93 = arith.constant 3 : index
    %c0_94 = arith.constant 0 : index
    %c0_95 = arith.constant 0 : index
    %264 = vector.load %arg17[%c3_93, %c0_94, %c0_95] : memref<4x256x512xbf16, #tpu.memory_space<vmem>>, vector<1x256x512xbf16>
    %265 = vector.shape_cast %264 : vector<1x256x512xbf16> to vector<256x512xbf16>
    %cst_96 = arith.constant dense<0.000000e+00> : vector<72x512xf32>
    %266 = tpu.matmul %263, %265, %cst_96 {dimension_numbers = #tpu.dot_dimension_numbers<[1], [0], [0], [1], [0, 0, 1, 1], [], []>} : vector<72x256xf32>, vector<256x512xbf16>, vector<72x512xf32> -> vector<72x512xf32>
    %267 = arith.addf %258, %266 : vector<72x512xf32>
    %c0_97 = arith.constant 0 : index
    %c0_98 = arith.constant 0 : index
    %268 = vector.load %arg18[%c0_97, %c0_98] : memref<1x512xf32, #tpu.memory_space<vmem>>, vector<1x512xf32>
    %269 = vector.broadcast %268 : vector<1x512xf32> to vector<72x512xf32>
    %270 = arith.addf %267, %269 : vector<72x512xf32>
    %271 = math.tanh %270 : vector<72x512xf32>
    %c0_99 = arith.constant 0 : index
    %c0_100 = arith.constant 0 : index
    %272 = vector.load %arg19[%c0_99, %c0_100] : memref<512x256xbf16, #tpu.memory_space<vmem>>, vector<512x256xbf16>
    %cst_101 = arith.constant dense<0.000000e+00> : vector<72x256xf32>
    %273 = tpu.matmul %271, %272, %cst_101 {dimension_numbers = #tpu.dot_dimension_numbers<[1], [0], [0], [1], [0, 0, 1, 1], [], []>} : vector<72x512xf32>, vector<512x256xbf16>, vector<72x256xf32> -> vector<72x256xf32>
    %c0_102 = arith.constant 0 : index
    %c0_103 = arith.constant 0 : index
    %274 = vector.load %arg20[%c0_102, %c0_103] : memref<1x256xf32, #tpu.memory_space<vmem>>, vector<1x256xf32>
    %275 = vector.broadcast %274 : vector<1x256xf32> to vector<72x256xf32>
    %276 = arith.addf %273, %275 : vector<72x256xf32>
    %c0_104 = arith.constant 0 : index
    %c0_105 = arith.constant 0 : index
    %277 = vector.load %arg21[%c0_104, %c0_105] : memref<72x256xf32, #tpu.memory_space<vmem>>, vector<72x256xf32>
    tpu.vector_store %arg21[%c0_104, %c0_105], %276 {strides = array<i32>} : memref<72x256xf32, #tpu.memory_space<vmem>>, vector<72x256xf32>,
    return
  }
}

</mosaic_0001>

<bundles_post_ra>
// kernel: decoder_forward.1
= control target key start
LH: loop header
LB: loop body
LE: loop exit
PB: predicated region body
PF: predicated region fallthrough
CT: control target
= control target key end

     0   :  { %s9904_s0 = inlined_call_operand.vmem [shape: f32[8,16], index: 0, kind: input, shape index: {}]   ;;  %s9905_s1 = inlined_call_operand.vmem [shape: bf16[16,128], index: 1, kind: input, shape index: {}]   ;;  %s9906_s2 = inlined_call_operand.vmem [shape: f32[1,128], index: 2, kind: input, shape index: {}]   ;;  %s9907_s3 = inlined_call_operand.vmem [shape: bf16[128,432], index: 3, kind: input, shape index: {}]   ;;  %s9908_s4 = inlined_call_operand.hbm [shape: f32[1,432], index: 4, kind: input, shape index: {}]   ;;  %s9909_s5 = inlined_call_operand.vmem [shape: bf16[4,48,128], index: 5, kind: input, shape index: {}]   ;;  %s9910_s6 = inlined_call_operand.hbm [shape: f32[1,128], index: 6, kind: input, shape index: {}]   ;;  %s9911_s7 = inlined_call_operand.vmem [shape: f32[128,32], index: 7, kind: input, shape index: {}]   ;;  %s9912_s8 = inlined_call_operand.vmem [shape: f32[32,128], index: 8, kind: input, shape index: {}]   ;;  %s9913_s9 = inlined_call_operand.hbm [shape: f32[1,32], index: 9, kind: input, shape index: {}]   ;;  %s9914_s10 = inlined_call_operand.hbm [shape: f32[1,32], index: 10, kind: input, shape index: {}]   ;;  %s9915_s11 = inlined_call_operand.vmem [shape: bf16[4,128,256], index: 11, kind: input, shape index: {}]   ;;  %s9916_s12 = inlined_call_operand.vmem [shape: f32[1,256], index: 12, kind: input, shape index: {}]   ;;  %s9917_s13 = inlined_call_operand.vmem [shape: f32[256,16], index: 13, kind: input, shape index: {}]   ;;  %s9918_s14 = inlined_call_operand.vmem [shape: f32[16,256], index: 14, kind: input, shape index: {}]   ;;  %s9919_s15 = inlined_call_operand.hbm [shape: f32[1,16], index: 15, kind: input, shape index: {}]   ;;  %s9920_s16 = inlined_call_operand.hbm [shape: f32[1,16], index: 16, kind: input, shape index: {}]   ;;  %s9921_s17 = inlined_call_operand.hbm [shape: bf16[4,256,512], index: 17, kind: input, shape index: {}]   ;;  %s9922_s18 = inlined_call_operand.hbm [shape: f32[1,512], index: 18, kind: input, shape index: {}]   ;;  %s9923_s19 = inlined_call_operand.hbm [shape: bf16[512,256], index: 19, kind: input, shape index: {}]   ;;  %s9924_s20 = inlined_call_operand.hbm [shape: f32[1,256], index: 20, kind: input, shape index: {}]   ;;  %s9925_s21 = inlined_call_operand.vmem [shape: f32[72,256], index: 21, kind: output, shape index: {}]  }
   0x1   :  { %9946 = sst [smem:[#allocation53_spill]] %s9904_s0 }
   0x2   :  { %9947 = sst [smem:[#allocation54_spill]] %s9905_s1 }
   0x3   :  { %9948 = sst [smem:[#allocation55_spill]] %s9906_s2 }
   0x4   :  { %9949 = sst [smem:[#allocation56_spill]] %s9907_s3 }
   0x5   :  { %9950 = sst [smem:[#allocation57_spill]] %s9908_s4 }
   0x6   :  { %9951 = sst [smem:[#allocation58_spill]] %s9909_s5 }
   0x7   :  { %26 = vsyncpa [#allocation3], 0 }
   0x8   :  { %27 = vsyncpa [#allocation5], 0 }
   0x9   :  { %28 = vsyncpa [#allocation8], 0 }
   0xa   :  { %29 = vsyncpa [#allocation11], 0 }
   0xb   :  { %30 = vsyncpa [#allocation14], 0 }
   0xc   :  { %31 = vsyncpa [#allocation17], 0  ;;  %s7982_s2 = smov [#allocation4]   ;;  %s7983_s26 = smov [#allocation7]  }
   0xd   :  { %s58_s25 = sshll.u32 %s7982_s2, 4  ;;  %s82_s27 = sshll.u32 %s7983_s26, 4  ;;  %s59_s25 = int_to_ptr.vmem [resolvable:$true] %s58_s25  ;;  %s83_s27 = int_to_ptr.vmem [resolvable:$true] %s82_s27 }
   0xe   :  { %s7778_s3 = scalar_lea.vmem %s59_s25, 16  ;;  %s7782_s28 = scalar_lea.vmem %s59_s25, 32 }
   0xf   :  { %p7779_p0 = scmp.ne.s32.totalorder %s59_s25, %s7778_s3  ;;  %p7783_p1 = scmp.lt.s32.totalorder %s59_s25, %s59_s25 }
  0x10   :  { %p7784_p2 = scmp.lt.s32.totalorder %s7782_s28, %s7778_s3 }
  0x12   :  { %p7785_p3 = por %p7784_p2, %p7783_p1 }
  0x14   :  { %p7786_p4 = pnand %p7785_p3, %p7779_p0 }
  0x16   :  { %7789 = shalt.err (!%p7786_p4)
}
  0x17   :  { %61 = dma.hbm_to_vmem [thread:$0]  %s9910_s6, 16, %s59_s25, [#allocation5]  }
  0x18   :  { %s7798_s4 = scalar_lea.vmem %s83_s27, 16  ;;  %s7802_s30 = scalar_lea.vmem %s83_s27, 32 }
  0x19   :  { %p7799_p5 = scmp.ne.s32.totalorder %s83_s27, %s7798_s4  ;;  %p7803_p6 = scmp.lt.s32.totalorder %s83_s27, %s83_s27 }
  0x1a   :  { %p7804_p7 = scmp.lt.s32.totalorder %s7802_s30, %s7798_s4 }
  0x1c   :  { %p7805_p8 = por %p7804_p7, %p7803_p6 }
  0x1e   :  { %p7806_p9 = pnand %p7805_p8, %p7799_p5 }
  0x20   :  { %7809 = shalt.err (!%p7806_p9)
}
  0x21   :  { %85 = dma.hbm_to_vmem [thread:$0]  %s9914_s10, 16, %s83_s27, [#allocation8]  }
  0x22   :  { %s7984_s23 = smov [#allocation10]   ;;  %s7985_s24 = smov [#allocation13]  }
  0x23   :  { %s110_s1 = sshll.u32 %s7984_s23, 4  ;;  %s132_s2 = sshll.u32 %s7985_s24, 4  ;;  %s111_s1 = int_to_ptr.vmem [resolvable:$true] %s110_s1  ;;  %s133_s2 = int_to_ptr.vmem [resolvable:$true] %s132_s2 }
  0x24   :  { %s7818_s26 = scalar_lea.vmem %s111_s1, 16  ;;  %s7822_s6 = scalar_lea.vmem %s111_s1, 32 }
  0x25   :  { %p7819_p10 = scmp.ne.s32.totalorder %s111_s1, %s7818_s26  ;;  %p7823_p11 = scmp.lt.s32.totalorder %s111_s1, %s111_s1 }
  0x26   :  { %p7824_p12 = scmp.lt.s32.totalorder %s7822_s6, %s7818_s26 }
  0x28   :  { %p7825_p13 = por %p7824_p12, %p7823_p11 }
  0x2a   :  { %p7826_p0 = pnand %p7825_p13, %p7819_p10 }
  0x2c   :  { %7829 = shalt.err (!%p7826_p0)
}
  0x2d   :  { %113 = dma.hbm_to_vmem [thread:$0]  %s9920_s16, 16, %s111_s1, [#allocation11]  }
  0x2e   :  { %s7838_s28 = scalar_lea.vmem %s133_s2, 64  ;;  %p7843_p2 = scmp.lt.s32.totalorder %s133_s2, %s133_s2 }
  0x2f   :  { %p7839_p1 = scmp.ne.s32.totalorder %s133_s2, %s7838_s28  ;;  %p7844_p3 = scmp.lt.s32.totalorder %s7838_s28, %s7838_s28 }
  0x31   :  { %p7845_p4 = por %p7844_p3, %p7843_p2 }
  0x33   :  { %p7846_p5 = pnand %p7845_p4, %p7839_p1 }
  0x35   :  { %7849 = shalt.err (!%p7846_p5)
}
  0x36   :  { %135 = dma.hbm_to_vmem [thread:$0]  %s9922_s18, 64, %s133_s2, [#allocation14]  }
  0x37   :  { %s7986_s29 = smov [#allocation2]   ;;  %s7987_s4 = smov [#allocation6]  }
  0x38   :  { %s46_s0 = sshll.u32 %s7986_s29, 4  ;;  %s72_s30 = sshll.u32 %s7987_s4, 4  ;;  %s47_s0 = int_to_ptr.vmem [resolvable:$true] %s46_s0  ;;  %s73_s30 = int_to_ptr.vmem [resolvable:$true] %s72_s30 }
  0x39   :  { %s7858_s5 = scalar_lea.vmem %s47_s0, 64  ;;  %p7863_p7 = scmp.lt.s32.totalorder %s47_s0, %s47_s0 }
  0x3a   :  { %p7859_p6 = scmp.ne.s32.totalorder %s47_s0, %s7858_s5  ;;  %p7864_p8 = scmp.lt.s32.totalorder %s7858_s5, %s7858_s5 }
  0x3c   :  { %p7865_p9 = por %p7864_p8, %p7863_p7 }
  0x3e   :  { %p7866_p10 = pnand %p7865_p9, %p7859_p6 }
  0x40   :  { %7869 = shalt.err (!%p7866_p10)
}
  0x41   :  { %s9952_s23 = sld [smem:[#allocation57_spill]]  ;;  %s7878_s1 = scalar_lea.vmem %s73_s30, 16 }
  0x42   :  { %p7879_p11 = scmp.ne.s32.totalorder %s73_s30, %s7878_s1  ;;  %s7882_s18 = scalar_lea.vmem %s73_s30, 32 }
  0x43   :  { %p7883_p12 = scmp.lt.s32.totalorder %s73_s30, %s73_s30  ;;  %p7884_p13 = scmp.lt.s32.totalorder %s7882_s18, %s7878_s1 }
  0x45   :  { %p7885_p0 = por %p7884_p13, %p7883_p12 }
  0x47   :  { %49 = dma.hbm_to_vmem [thread:$0]  %s9952_s23, 64, %s47_s0, [#allocation3]  }
  0x48   :  { %p7886_p1 = pnand %p7885_p0, %p7879_p11 }
  0x4a   :  { %7889 = shalt.err (!%p7886_p1)
}
  0x4b   :  { %75 = dma.hbm_to_vmem [thread:$0]  %s9913_s9, 16, %s73_s30, [#allocation5]  }
  0x4c   :  { %s7988_s26 = smov [#allocation9]   ;;  %s7989_s25 = smov [#allocation12]  }
  0x4d   :  { %s100_s6 = sshll.u32 %s7988_s26, 4  ;;  %s119_s3 = sshll.u32 %s7989_s25, 4  ;;  %s101_s6 = int_to_ptr.vmem [resolvable:$true] %s100_s6  ;;  %s120_s3 = int_to_ptr.vmem [resolvable:$true] %s119_s3 }
  0x4e   :  { %s7898_s28 = scalar_lea.vmem %s101_s6, 16  ;;  %s7902_s10 = scalar_lea.vmem %s101_s6, 32 }
  0x4f   :  { %p7899_p2 = scmp.ne.s32.totalorder %s101_s6, %s7898_s28  ;;  %p7903_p3 = scmp.lt.s32.totalorder %s101_s6, %s101_s6 }
  0x50   :  { %p7904_p4 = scmp.lt.s32.totalorder %s7902_s10, %s7898_s28 }
  0x52   :  { %p7905_p5 = por %p7904_p4, %p7903_p3 }
  0x54   :  { %p7906_p6 = pnand %p7905_p5, %p7899_p2 }
  0x56   :  { %7909 = shalt.err (!%p7906_p6)
}
  0x57   :  { %103 = dma.hbm_to_vmem [thread:$0]  %s9919_s15, 16, %s101_s6, [#allocation8]  }
  0x58   :  { %s7918_s0 = scalar_lea.vmem %s120_s3, 32768  ;;  %p7923_p8 = scmp.lt.s32.totalorder %s120_s3, %s120_s3 }
  0x59   :  { %p7919_p7 = scmp.ne.s32.totalorder %s120_s3, %s7918_s0  ;;  %p7924_p9 = scmp.lt.s32.totalorder %s7918_s0, %s7918_s0 }
  0x5b   :  { %p7925_p10 = por %p7924_p9, %p7923_p8 }
  0x5d   :  { %p7926_p11 = pnand %p7925_p10, %p7919_p7 }
  0x5f   :  { %7929 = shalt.err (!%p7926_p11)
}
  0x60   :  { %s7990_s9 = smov 256   ;;  %s7991_s4 = smov 16  }
  0x61   :  { %125 = dma.hbm_to_vmem [thread:$0]  %s9921_s17, 32768, %s120_s3, [#allocation11], %s7990_s9, %s7990_s9, %s7991_s4  }
  0x62   :  { %s7992_s16 = smov [#allocation15]  }
  0x63   :  { %s141_s22 = sshll.u32 %s7992_s16, 4  ;;  %s142_s22 = int_to_ptr.vmem [resolvable:$true] %s141_s22 }
  0x64   :  { %s7938_s23 = scalar_lea.vmem %s142_s22, 8192  ;;  %p7943_p13 = scmp.lt.s32.totalorder %s142_s22, %s142_s22 }
  0x65   :  { %p7939_p12 = scmp.ne.s32.totalorder %s142_s22, %s7938_s23  ;;  %p7944_p0 = scmp.lt.s32.totalorder %s7938_s23, %s7938_s23 }
  0x67   :  { %p7945_p1 = por %p7944_p0, %p7943_p13 }
  0x69   :  { %p7946_p2 = pnand %p7945_p1, %p7939_p12 }
  0x6b   :  { %7949 = shalt.err (!%p7946_p2)
}
  0x6c   :  { %s7993_s15 = smov 128   ;;  %s7994_s1 = smov 8  }
  0x6d   :  { %147 = dma.hbm_to_vmem [thread:$0]  %s9923_s19, 8192, %s142_s22, [#allocation14], %s7993_s15, %s7993_s15, %s7994_s1  }
  0x6e   :  { %s7995_s2 = smov [#allocation16]  }
  0x6f   :  { %s154_s26 = sshll.u32 %s7995_s2, 4  ;;  %s155_s26 = int_to_ptr.vmem [resolvable:$true] %s154_s26 }
  0x70   :  { %s7958_s17 = scalar_lea.vmem %s155_s26, 32  ;;  %p7963_p4 = scmp.lt.s32.totalorder %s155_s26, %s155_s26 }
  0x71   :  { %p7959_p3 = scmp.ne.s32.totalorder %s155_s26, %s7958_s17  ;;  %p7964_p5 = scmp.lt.s32.totalorder %s7958_s17, %s7958_s17 }
  0x73   :  { %p7965_p6 = por %p7964_p5, %p7963_p4 }
  0x75   :  { %p7966_p7 = pnand %p7965_p6, %p7959_p3 }
  0x77   :  { %7969 = shalt.err (!%p7966_p7)
}
  0x78   :  { %157 = dma.hbm_to_vmem [thread:$0]  %s9924_s20, 32, %s155_s26, [#allocation17]  }
  0x79   :  { %7970 = dma.done.wait [#allocation3], 64  }
  0x7a   :  { %7971 = vsyncadd [#allocation3], 4294967232 }
  0x7b   :  { %7972 = dma.done.wait [#allocation5], 32  }
  0x7c   :  { %7973 = vsyncadd [#allocation5], 4294967264 }
  0x7d   :  { %7974 = dma.done.wait [#allocation8], 32  }
  0x7e   :  { %7975 = vsyncadd [#allocation8], 4294967264 }
  0x7f   :  { %7976 = dma.done.wait [#allocation11], 32784  }
  0x80   :  { %7977 = vsyncadd [#allocation11], 4294934512 }
  0x81   :  { %7978 = dma.done.wait [#allocation14], 8256  }
  0x82   :  { %7979 = vsyncadd [#allocation14], 4294959040 }
  0x83   :  { %7980 = dma.done.wait [#allocation17], 32  }
  0x84   :  { %7981 = vsyncadd [#allocation17], 4294967264  ;;  %v7996_v0 = vmov 0.0   ;;  %vm7997_vm0 = vmmov 0   ;;  %s9953_s3 = sld [smem:[#allocation54_spill]]  ;;  %vm647_vm1 = vcmask 130048   ;;  %v189_v46 = vlaneseq }
  0x85   :  { %6789 = vmatprep.subr.bf16.mxu0 %v7996_v0  ;;  %6791 = vmatprep.mubr.msk.f32.mxu0 %vm7997_vm0, %v7996_v0  ;;  %s9954_s27 = sld [smem:[#allocation53_spill]]  ;;  %v8292_v49 = vld [vmem:[#allocation2] sm:$0xf]  ;;  %vm1058_vm2 = vcmask 392192   ;;  %s7998_s25 = smov 80   ;;  %vm996_vm3 = vcmask 261120  }
  0x86   :  { %937 = vmatprep.mubr.f32.mxu1 %v7996_v0  ;;  %s9955_s9 = sld [smem:[#allocation56_spill]]  ;;  %v8287_v47 = vshrl.u32 %v189_v46, 7  ;;  %s8000_s28 = smov 112   ;;  %vm1637_vm13 = vcmask 1040384  }
  0x87   :  { %s9956_s29 = sld [smem:[#allocation55_spill]]  ;;  %s8001_s10 = smov 64  }
  0x88   :  { %s9957_s30 = sld [smem:[#allocation58_spill]]  ;;  %9958 = vst [vmem:[#allocation24_spill] sm:$0xff] %v8287_v47  ;;  %v8290_v48 = vsub.s32 0, %v8287_v47  ;;  %v8295_v50 = vsub.s32 1, %v8287_v47  ;;  %v9929_v56 = vsub.s32 2, %v8287_v47  ;;  %s8003_s0 = smov 48  }
  0x89   :  { %vm352_vm5 = vcmp.lt.s32.totalorder %v8287_v47, 2 }
  0x8a   :  { %v6995_v1 = vld [vmem:[%s9953_s3] sm:$0xff]   ;;  %9959 = vst [vmem:[#allocation25_spill] sm:$0xff] %v8290_v48  ;;  %9960 = vst [vmem:[#allocation26_spill] sm:$0xff] %v8295_v50  ;;  %v728_v51 = vrot.slane %v8292_v49, %v8290_v48  ;;  %v732_v52 = vrot.slane %v8292_v49, %v8295_v50  ;;  %v736_v58 = vrot.slane %v8292_v49, %v9929_v56  ;;  %s7999_s3 = smov 32  }
  0x8b   :  { %v631_v2 = vld [vmem:[%s9954_s27] sm:$0xff]  ;;  %6790 = vmatpush3.bf16.msra.mxu0 %v6995_v1 }
  0x8c   :  { %v6996_v3 = vld [vmem:[%s9955_s9 + $0xe4] ss:$16 sps:$4 sm:$0xff]   ;;  %v6998_v4 = vld [vmem:[%s9955_s9 + $0xe8] ss:$16 sps:$4 sm:$0xff]   ;;  %v7000_v5 = vld [vmem:[%s9955_s9 + $0xec] ss:$16 sps:$4 sm:$0xff]  }
  0x8d   :  { %v7001_v6 = vld [vmem:[%s9955_s9 + $0xe0] ss:$16 sps:$4 sm:$0xff]   ;;  %905 = vmatprep.subr.bf16.mxu1 %v6996_v3  ;;  %v7002_v7 = vld [vmem:[%s9955_s9 + $0xc4] ss:$16 sps:$4 sm:$0xff]   ;;  %944 = vmatprep.subr.bf16.mxu0 %v7000_v5  ;;  %v7004_v8 = vld [vmem:[%s9955_s9 + $0xc8] ss:$16 sps:$4 sm:$0xff]  }
  0x8e   :  { %6792 = vmatmul.mubr.msk.f32.vlgmr.msra.gmra.mxu0 %vm647_vm1, %v631_v2  ;;  %906 = vmatpush1.bf16.msra.mxu1 %v7001_v6  ;;  %v7006_v9 = vld [vmem:[%s9955_s9 + $0xcc] ss:$16 sps:$4 sm:$0xff]   ;;  %v7007_v10 = vld [vmem:[%s9955_s9 + $0xc0] ss:$16 sps:$4 sm:$0xff]   ;;  %v7008_v11 = vld [vmem:[%s9955_s9 + $0xa4] ss:$16 sps:$4 sm:$0xff]  }
  0x8f   :  { %945 = vmatpush1.bf16.msra.mxu0 %v6998_v4  ;;  %907 = vmatprep.subr.bf16.mxu1 %v7002_v7  ;;  %v7012_v12 = vld [vmem:[%s9955_s9 + $0xac] ss:$16 sps:$4 sm:$0xff]   ;;  %v7010_v13 = vld [vmem:[%s9955_s9 + $0xa8] ss:$16 sps:$4 sm:$0xff]   ;;  %v7013_v14 = vld [vmem:[%s9955_s9 + $0xa0] ss:$16 sps:$4 sm:$0xff]  }
  0x90   :  { %976 = vmatprep.mubr.f32.mxu0 %v7996_v0  ;;  %946 = vmatprep.subr.bf16.mxu0 %v7006_v9  ;;  %v7014_v15 = vld [vmem:[%s9955_s9 + $0x84] ss:$16 sps:$4 sm:$0xff]   ;;  %v7018_v16 = vld [vmem:[%s9955_s9 + $0x8c] ss:$16 sps:$4 sm:$0xff]   ;;  %v7016_v17 = vld [vmem:[%s9955_s9 + $0x88] ss:$16 sps:$4 sm:$0xff]  }
  0x91   :  { %v7019_v18 = vld [vmem:[%s9955_s9 + $0x80] ss:$16 sps:$4 sm:$0xff]   ;;  %v7020_v19 = vld [vmem:[%s9955_s9 + $0x64] ss:$16 sps:$4 sm:$0xff]   ;;  %v7024_v20 = vld [vmem:[%s9955_s9 + $0x6c] ss:$16 sps:$4 sm:$0xff]  }
  0x92   :  { %908 = vmatpush1.bf16.msra.mxu1 %v7007_v10  ;;  %v7022_v21 = vld [vmem:[%s9955_s9 + $0x68] ss:$16 sps:$4 sm:$0xff]   ;;  %v7025_v22 = vld [vmem:[%s9955_s9 + $0x60] ss:$16 sps:$4 sm:$0xff]   ;;  %v7026_v23 = vld [vmem:[%s9955_s9 + $0x44] ss:$16 sps:$4 sm:$0xff]  }
  0x93   :  { %947 = vmatpush1.bf16.msra.mxu0 %v7004_v8  ;;  %909 = vmatprep.subr.bf16.mxu1 %v7008_v11  ;;  %v7030_v24 = vld [vmem:[%s9955_s9 + $0x4c] ss:$16 sps:$4 sm:$0xff]   ;;  %v7028_v25 = vld [vmem:[%s9955_s9 + $0x48] ss:$16 sps:$4 sm:$0xff]   ;;  %v7031_v26 = vld [vmem:[%s9955_s9 + $0x40] ss:$16 sps:$4 sm:$0xff]  }
  0x94   :  { %948 = vmatprep.subr.bf16.mxu0 %v7012_v12  ;;  %v7032_v27 = vld [vmem:[%s9955_s9 + $0x24] ss:$16 sps:$4 sm:$0xff]   ;;  %v7036_v28 = vld [vmem:[%s9955_s9 + $0x2c] ss:$16 sps:$4 sm:$0xff]   ;;  %v7034_v29 = vld [vmem:[%s9955_s9 + $0x28] ss:$16 sps:$4 sm:$0xff]  }
  0x95   :  { %v7037_v30 = vld [vmem:[%s9955_s9 + $0x20] ss:$16 sps:$4 sm:$0xff]   ;;  %v7038_v31 = vld [vmem:[%s9955_s9 + $0x4] ss:$16 sps:$4 sm:$0xff]   ;;  %v7042_v32 = vld [vmem:[%s9955_s9 + $0xc] ss:$16 sps:$4 sm:$0xff]  }
  0x96   :  { %910 = vmatpush1.bf16.msra.mxu1 %v7013_v14  ;;  %v7040_v33 = vld [vmem:[%s9955_s9 + $0x8] ss:$16 sps:$4 sm:$0xff]   ;;  %v7043_v34 = vld [vmem:[%s9955_s9] ss:$16 sps:$4 sm:$0xff]   ;;  %s8002_s9 = smov 96   ;;  %v9928_v7 = vsub.s32 3, %v8287_v47 }
  0x97   :  { %949 = vmatpush1.bf16.msra.mxu0 %v7010_v13  ;;  %911 = vmatprep.subr.bf16.mxu1 %v7014_v15  ;;  %v6145_v35 = vld [vmem:[%s9956_s29] ss:$0 sm:$0xff]  ;;  %v7044_v40 = vld [vmem:[%s9957_s30 + $0x10] sm:$0xff]   ;;  %v7045_v41 = vld [vmem:[%s9957_s30 + $0x8] sm:$0xff]  }
  0x98   :  { %950 = vmatprep.subr.bf16.mxu0 %v7018_v16  ;;  %v7046_v42 = vld [vmem:[%s9957_s30] sm:$0xff]   ;;  %v7047_v43 = vld [vmem:[%s9957_s30 + $0x28] sm:$0xff]   ;;  %v7049_v45 = vld [vmem:[%s9957_s30 + $0x18] sm:$0xff]   ;;  %v740_v13 = vrot.slane %v8292_v49, %v9928_v7 }
  0x99   :  { %v7048_v44 = vld [vmem:[%s9957_s30 + $0x20] sm:$0xff]   ;;  %v7051_v61 = vld [vmem:[%s9957_s30 + $0x58] sm:$0xff]   ;;  %v7053_v1 = vld [vmem:[%s9957_s30 + $0x50] sm:$0xff]  }
  0x9a   :  { %912 = vmatpush1.bf16.msra.mxu1 %v7019_v18  ;;  %v7055_v3 = vld [vmem:[%s9957_s30 + $0x48] sm:$0xff]   ;;  %v7050_v4 = vld [vmem:[%s9957_s30 + $0x40] sm:$0xff]   ;;  %v7052_v9 = vld [vmem:[%s9957_s30 + $0x38] sm:$0xff]  }
  0x9b   :  { %951 = vmatpush1.bf16.msra.mxu0 %v7016_v17  ;;  %913 = vmatprep.subr.bf16.mxu1 %v7020_v19  ;;  %v7054_v15 = vld [vmem:[%s9957_s30 + $0x30] sm:$0xff]   ;;  %v2672_v7 = vld [vmem:[%s9916_s12] sm:$0x3] }
  0x9c   :  { %952 = vmatprep.subr.bf16.mxu0 %v7024_v20 }
  0x9e   :  { %914 = vmatpush1.bf16.msra.mxu1 %v7025_v22 }
  0x9f   :  { %953 = vmatpush1.bf16.msra.mxu0 %v7022_v21  ;;  %915 = vmatprep.subr.bf16.mxu1 %v7026_v23 }
  0xa0   :  { %954 = vmatprep.subr.bf16.mxu0 %v7030_v24 }
  0xa2   :  { %916 = vmatpush1.bf16.msra.mxu1 %v7031_v26 }
  0xa3   :  { %955 = vmatpush1.bf16.msra.mxu0 %v7028_v25  ;;  %917 = vmatprep.subr.bf16.mxu1 %v7032_v27 }
  0xa4   :  { %956 = vmatprep.subr.bf16.mxu0 %v7036_v28 }
  0xa6   :  { %918 = vmatpush1.bf16.msra.mxu1 %v7037_v30  ;;  %v1654_v30 = vld [vmem:[%s9911_s7 + $0x78] sm:$0xff] }
  0xa7   :  { %957 = vmatpush1.bf16.msra.mxu0 %v7034_v29  ;;  %919 = vmatprep.subr.bf16.mxu1 %v7038_v31  ;;  %v1653_v31 = vld [vmem:[%s9911_s7 + $0x70] sm:$0xff] }
  0xa8   :  { %958 = vmatprep.subr.bf16.mxu0 %v7042_v32  ;;  %v1652_v32 = vld [vmem:[%s9911_s7 + $0x68] sm:$0xff] }
  0xaa   :  { %920 = vmatpush1.bf16.msra.mxu1 %v7043_v34  ;;  %v1650_v34 = vld [vmem:[%s9911_s7 + $0x58] sm:$0xff] }
  0xab   :  { %959 = vmatpush1.bf16.msra.mxu0 %v7040_v33  ;;  %6794 = vmatprep.subr.bf16.mxu1 %v7996_v0  ;;  %v1651_v33 = vld [vmem:[%s9911_s7 + $0x60] sm:$0xff] }
  0xac   :  { %6827 = vmatprep.subr.bf16.mxu0 %v7996_v0 }
 0x14e   :  { %v685_v36 = vpop.f32.mrf.mxu0 }
 0x14f   :  { %v686_v37 = vadd.f32 %v6145_v35, %v685_v36  ;;  %v1649_v35 = vld [vmem:[%s9911_s7 + $0x50] sm:$0xff]  ;;  %v1648_v36 = vld [vmem:[%s9911_s7 + $0x48] sm:$0xff] }
 0x150   :  { %v6793_v38 = vpop.f32.mrf.mxu0 }
 0x151   :  { %v6148_v39 = vclamps-f32 %v686_v37, 1.0  ;;  %v1647_v37 = vld [vmem:[%s9911_s7 + $0x40] sm:$0xff]  ;;  %v1646_v38 = vld [vmem:[%s9911_s7 + $0x38] sm:$0xff] }
 0x153   :  { %938 = vmatmul.mubr.f32.vlgmr.msra.gmra.mxu1 %v6148_v39  ;;  %977 = vmatmul.mubr.f32.vlgmr.msra.gmra.mxu0 %v6148_v39  ;;  %v1645_v39 = vld [vmem:[%s9911_s7 + $0x30] sm:$0xff] }
 0x154   :  { %6833 = vmatprep.mubr.msk.f32.mxu0 %vm7997_vm0, %v7996_v0  ;;  %6800 = vmatprep.mubr.msk.f32.mxu1 %vm7997_vm0, %v7996_v0 }
 0x155   :  { %6828 = vmatpush3.bf16.msra.mxu0 %v7044_v40  ;;  %6795 = vmatpush3.bf16.msra.mxu1 %v7047_v43  ;;  %v1644_v40 = vld [vmem:[%s9911_s7 + $0x28] sm:$0xff]  ;;  %v1641_v43 = vld [vmem:[%s9911_s7 + $0x10] sm:$0xff] }
 0x156   :  { %6829 = vmatprep.subr.bf16.mxu0 %v7996_v0  ;;  %6796 = vmatprep.subr.bf16.mxu1 %v7996_v0 }
 0x159   :  { %6830 = vmatpush3.bf16.msra.mxu0 %v7045_v41  ;;  %6797 = vmatpush3.bf16.msra.mxu1 %v7048_v44  ;;  %v1643_v41 = vld [vmem:[%s9911_s7 + $0x20] sm:$0xff]  ;;  %v1640_v44 = vld [vmem:[%s9911_s7 + $0x8] sm:$0xff] }
 0x15a   :  { %6831 = vmatprep.subr.bf16.mxu0 %v7996_v0  ;;  %6798 = vmatprep.subr.bf16.mxu1 %v7996_v0 }
 0x15d   :  { %6832 = vmatpush3.bf16.msra.mxu0 %v7046_v42  ;;  %6799 = vmatpush3.bf16.msra.mxu1 %v7049_v45  ;;  %v1642_v42 = vld [vmem:[%s9911_s7 + $0x18] sm:$0xff]  ;;  %v1639_v45 = vld [vmem:[%s9911_s7] sm:$0xff] }
 0x15e   :  { %6893 = vmatprep.subr.bf16.mxu0 %v7996_v0  ;;  %6860 = vmatprep.subr.bf16.mxu1 %v7996_v0 }
 0x213   :  { %v939_v53 = vpop.f32.mrf.mxu1  ;;  %v978_v59 = vpop.f32.mrf.mxu0 }
 0x214   :  { %v940_v54 = vadd.f32 %v939_v53, %v728_v51  ;;  %v979_v60 = vadd.f32 %v978_v59, %v736_v58 }
 0x215   :  { %v941_v55 = vpop.f32.mrf.mxu1  ;;  %v980_v16 = vpop.f32.mrf.mxu0 }
 0x216   :  { %7632 = vtanh.f32 %v940_v54  ;;  %v942_v57 = vadd.f32 %v941_v55, %v732_v52  ;;  %v981_v18 = vadd.f32 %v980_v16, %v740_v13 }
 0x218   :  { %7634 = vtanh.f32 %v942_v57 }
 0x219   :  { %7636 = vtanh.f32 %v979_v60 }
 0x21a   :  { %7638 = vtanh.f32 %v981_v18 }
 0x223   :  { %v8308_v62 = vpop.eup %7632 }
 0x224   :  { %988 = vrot.lane.b32.xlu0 %v8308_v62, %s7998_s25  ;;  %6834 = vmatmul.mubr.msk.f32.vlgmr.msra.gmra.mxu0 %vm1058_vm2, %v8308_v62  ;;  %v1032_v25 = vmul.f32 0.0, %v8308_v62 }
 0x225   :  { %v7635_v63 = vpop.eup %7634  ;;  %6836 = vmatprep.mubr.msk.f32.mxu0 %vm7997_vm0, %v7996_v0  ;;  %6894 = vmatpush3.bf16.msra.mxu0 %v7051_v61 }
 0x226   :  { %994 = vrot.lane.b32.xlu1 %v7635_v63, %s7999_s3  ;;  %6895 = vmatprep.subr.bf16.mxu0 %v7996_v0  ;;  %v7637_v2 = vpop.eup %7636 }
 0x227   :  { %v7639_v24 = vpop.eup %7638 }
 0x228   :  { %992 = vrot.lane.b32.xlu0 %v8308_v62, %s7999_s3 }
 0x229   :  { %6896 = vmatpush3.bf16.msra.mxu0 %v7053_v1 }
 0x22a   :  { %999 = vrot.lane.b32.xlu1 %v7635_v63, %s8000_s28  ;;  %6897 = vmatprep.subr.bf16.mxu0 %v7996_v0 }
 0x22c   :  { %1002 = vrot.lane.b32.xlu0 %v7635_v63, %s8001_s10 }
 0x22d   :  { %6898 = vmatpush3.bf16.msra.mxu0 %v7055_v3 }
 0x22e   :  { %1006 = vrot.lane.b32.xlu1 %v7635_v63, %s7991_s4  ;;  %6961 = vmatprep.subr.mxu0 %v7996_v0 }
 0x230   :  { %1008 = vrot.lane.b32.xlu0 %v7637_v2, %s7991_s4 }
 0x232   :  { %1012 = vrot.lane.b32.xlu1 %v7637_v2, %s8002_s9 }
 0x234   :  { %1015 = vrot.lane.b32.xlu0 %v7637_v2, %s8003_s0 }
 0x296   :  { %v8330_v5 = vpop.permute.xlu0 %988 }
 0x297   :  { %6801 = vmatmul.mubr.msk.f32.vlgmr.msra.gmra.mxu1 %vm1058_vm2, %v8330_v5  ;;  %6837 = vmatmul.mubr.msk.f32.gmra.mxu0 %vm1058_vm2, %v8330_v5  ;;  %v1286_v26 = vmul.f32 0.0, %v8330_v5 }
 0x298   :  { %v995_v6 = vpop.permute.xlu1 %994  ;;  %6861 = vmatpush3.bf16.msra.mxu1 %v7050_v4  ;;  %6803 = vmatprep.mubr.msk.f32.mxu1 %vm7997_vm0, %v7996_v0 }
 0x299   :  { %6839 = vmatprep.mubr.msk.f32.mxu0 %vm7997_vm0, %v7996_v0  ;;  %6862 = vmatprep.subr.bf16.mxu1 %v7996_v0 }
 0x29a   :  { %v993_v8 = vpop.permute.xlu0 %992 }
 0x29b   :  { %v8346_v10 = vsel %vm996_vm3, %v993_v8, %v995_v6 }
 0x29c   :  { %v1000_v11 = vpop.permute.xlu1 %999  ;;  %6804 = vmatmul.mubr.msk.f32.gmra.mxu1 %vm1058_vm2, %v8346_v10  ;;  %6840 = vmatmul.mubr.msk.f32.gmra.mxu0 %vm1058_vm2, %v8346_v10  ;;  %v1287_v27 = vmul.f32 0.0, %v8346_v10 }
 0x29d   :  { %v8352_v12 = vmul.f32 0.0, %v1000_v11  ;;  %6806 = vmatprep.mubr.msk.f32.mxu1 %vm7997_vm0, %v7996_v0  ;;  %6842 = vmatprep.mubr.msk.f32.mxu0 %vm7997_vm0, %v7996_v0 }
 0x29e   :  { %v1003_v14 = vpop.permute.xlu0 %1002  ;;  %6863 = vmatpush3.bf16.msra.mxu1 %v7052_v9 }
 0x29f   :  { %6864 = vmatprep.subr.bf16.mxu1 %v7996_v0 }
 0x2a0   :  { %6807 = vmatmul.mubr.msk.f32.gmra.mxu1 %vm1058_vm2, %v8352_v12  ;;  %6843 = vmatmul.mubr.msk.f32.gmra.mxu0 %vm1058_vm2, %v1000_v11  ;;  %v1007_v17 = vpop.permute.xlu1 %1006 }
 0x2a1   :  { %6809 = vmatprep.mubr.msk.f32.mxu1 %vm7997_vm0, %v7996_v0  ;;  %6845 = vmatprep.mubr.msk.f32.mxu0 %vm7997_vm0, %v7996_v0 }
 0x2a2   :  { %6865 = vmatpush3.bf16.msra.mxu1 %v7054_v15  ;;  %v1009_v19 = vpop.permute.xlu0 %1008 }
 0x2a3   :  { %6926 = vmatprep.subr.mxu1 %v7996_v0  ;;  %v1010_v20 = vsel %vm647_vm1, %v1007_v17, %v1009_v19 }
 0x2a4   :  { %6810 = vmatmul.mubr.msk.f32.gmra.mxu1 %vm1058_vm2, %v1003_v14  ;;  %6846 = vmatmul.mubr.msk.f32.gmra.mxu0 %vm1058_vm2, %v1003_v14  ;;  %v1013_v21 = vpop.permute.xlu1 %1012 }
 0x2a5   :  { %6812 = vmatprep.mubr.msk.f32.mxu1 %vm7997_vm0, %v7996_v0  ;;  %6848 = vmatprep.mubr.msk.f32.mxu0 %vm7997_vm0, %v7996_v0  ;;  %v1029_v22 = vmul.f32 0.0, %v1013_v21 }
 0x2a6   :  { %v1016_v23 = vpop.permute.xlu0 %1015 }
 0x2a8   :  { %6813 = vmatmul.mubr.msk.f32.gmra.mxu1 %vm1058_vm2, %v1010_v20  ;;  %6849 = vmatmul.mubr.msk.f32.gmra.mxu0 %vm1058_vm2, %v1010_v20 }
 0x2a9   :  { %6815 = vmatprep.mubr.msk.f32.mxu1 %vm7997_vm0, %v7996_v0  ;;  %6851 = vmatprep.mubr.msk.f32.mxu0 %vm7997_vm0, %v7996_v0 }
 0x2ac   :  { %6816 = vmatmul.mubr.msk.f32.gmra.mxu1 %vm1058_vm2, %v1029_v22  ;;  %6852 = vmatmul.mubr.msk.f32.gmra.mxu0 %vm1058_vm2, %v1013_v21 }
 0x2ad   :  { %6818 = vmatprep.mubr.msk.f32.mxu1 %vm7997_vm0, %v7996_v0  ;;  %6854 = vmatprep.mubr.msk.f32.mxu0 %vm7997_vm0, %v7996_v0 }
 0x2b0   :  { %6819 = vmatmul.mubr.msk.f32.gmra.mxu1 %vm1058_vm2, %v1016_v23  ;;  %6855 = vmatmul.mubr.msk.f32.gmra.mxu0 %vm1058_vm2, %v1016_v23 }
 0x2b1   :  { %6821 = vmatprep.mubr.msk.f32.mxu1 %vm7997_vm0, %v7996_v0  ;;  %6857 = vmatprep.mubr.msk.f32.mxu0 %vm7997_vm0, %v7996_v0 }
 0x2b4   :  { %6822 = vmatmul.mubr.msk.f32.gmra.mxu1 %vm1058_vm2, %v7639_v24  ;;  %6858 = vmatmul.mubr.msk.f32.gmra.mxu0 %vm1058_vm2, %v7639_v24 }
 0x2b5   :  { %6824 = vmatprep.mubr.msk.f32.mxu1 %vm7997_vm0, %v7996_v0  ;;  %6899 = vmatprep.mubr.msk.f32.mxu0 %vm7997_vm0, %v7996_v0 }
 0x2b8   :  { %6825 = vmatmul.mubr.msk.f32.gmra.mxu1 %vm1058_vm2, %v1032_v25  ;;  %6900 = vmatmul.mubr.msk.f32.vlgmr.msra.gmra.mxu0 %vm1058_vm2, %v1003_v14 }
 0x2b9   :  { %6866 = vmatprep.mubr.msk.f32.mxu1 %vm7997_vm0, %v7996_v0  ;;  %6902 = vmatprep.mubr.msk.f32.mxu0 %vm7997_vm0, %v7996_v0 }
 0x2bc   :  { %6867 = vmatmul.mubr.msk.f32.vlgmr.msra.gmra.mxu1 %vm1058_vm2, %v1000_v11  ;;  %6903 = vmatmul.mubr.msk.f32.gmra.mxu0 %vm1058_vm2, %v1010_v20 }
 0x2bd   :  { %6869 = vmatprep.mubr.msk.f32.mxu1 %vm7997_vm0, %v7996_v0  ;;  %6905 = vmatprep.mubr.msk.f32.mxu0 %vm7997_vm0, %v7996_v0 }
 0x2be   :  { %6927 = vmatpush3.msra.mxu1 %v1654_v30 }
 0x2bf   :  { %6928 = vmatprep.subr.mxu1 %v7996_v0 }
 0x2c0   :  { %6870 = vmatmul.mubr.msk.f32.gmra.mxu1 %vm1058_vm2, %v1003_v14  ;;  %6906 = vmatmul.mubr.msk.f32.gmra.mxu0 %vm1058_vm2, %v1029_v22 }
 0x2c1   :  { %6872 = vmatprep.mubr.msk.f32.mxu1 %vm7997_vm0, %v7996_v0  ;;  %6908 = vmatprep.mubr.msk.f32.mxu0 %vm7997_vm0, %v7996_v0 }
 0x2c2   :  { %6929 = vmatpush3.msra.mxu1 %v1653_v31 }
 0x2c3   :  { %6930 = vmatprep.subr.mxu1 %v7996_v0 }
 0x2c4   :  { %6873 = vmatmul.mubr.msk.f32.gmra.mxu1 %vm1058_vm2, %v1010_v20  ;;  %6909 = vmatmul.mubr.msk.f32.gmra.mxu0 %vm1058_vm2, %v1016_v23 }
 0x2c5   :  { %6875 = vmatprep.mubr.msk.f32.mxu1 %vm7997_vm0, %v7996_v0  ;;  %6911 = vmatprep.mubr.msk.f32.mxu0 %vm7997_vm0, %v7996_v0 }
 0x2c6   :  { %6931 = vmatpush3.msra.mxu1 %v1652_v32 }
 0x2c7   :  { %6932 = vmatprep.subr.mxu1 %v7996_v0 }
 0x2c8   :  { %6876 = vmatmul.mubr.msk.f32.gmra.mxu1 %vm1058_vm2, %v1013_v21  ;;  %6912 = vmatmul.mubr.msk.f32.gmra.mxu0 %vm1058_vm2, %v7639_v24 }
 0x2c9   :  { %6878 = vmatprep.mubr.msk.f32.mxu1 %vm7997_vm0, %v7996_v0  ;;  %6914 = vmatprep.mubr.msk.f32.mxu0 %vm7997_vm0, %v7996_v0 }
 0x2ca   :  { %6933 = vmatpush3.msra.mxu1 %v1651_v33 }
 0x2cb   :  { %6934 = vmatprep.subr.mxu1 %v7996_v0 }
 0x2cc   :  { %6879 = vmatmul.mubr.msk.f32.gmra.mxu1 %vm1058_vm2, %v1016_v23  ;;  %6915 = vmatmul.mubr.msk.f32.gmra.mxu0 %vm1058_vm2, %v1032_v25 }
 0x2cd   :  { %6881 = vmatprep.mubr.msk.f32.mxu1 %vm7997_vm0, %v7996_v0  ;;  %6917 = vmatprep.mubr.msk.f32.mxu0 %vm7997_vm0, %v7996_v0 }
 0x2ce   :  { %6935 = vmatpush3.msra.mxu1 %v1650_v34 }
 0x2cf   :  { %6936 = vmatprep.subr.mxu1 %v7996_v0 }
 0x2d0   :  { %6882 = vmatmul.mubr.msk.f32.gmra.mxu1 %vm1058_vm2, %v7639_v24  ;;  %6918 = vmatmul.mubr.msk.f32.gmra.mxu0 %vm1058_vm2, %v1286_v26 }
 0x2d1   :  { %6884 = vmatprep.mubr.msk.f32.mxu1 %vm7997_vm0, %v7996_v0  ;;  %6920 = vmatprep.mubr.msk.f32.mxu0 %vm7997_vm0, %v7996_v0 }
 0x2d2   :  { %6937 = vmatpush3.msra.mxu1 %v1649_v35 }
 0x2d3   :  { %6938 = vmatprep.subr.mxu1 %v7996_v0 }
 0x2d4   :  { %6885 = vmatmul.mubr.msk.f32.gmra.mxu1 %vm1058_vm2, %v1032_v25  ;;  %6921 = vmatmul.mubr.msk.f32.gmra.mxu0 %vm1058_vm2, %v1287_v27 }
 0x2d5   :  { %6887 = vmatprep.mubr.msk.f32.mxu1 %vm7997_vm0, %v7996_v0  ;;  %6923 = vmatprep.mubr.msk.f32.mxu0 %vm7997_vm0, %v7996_v0 }
 0x2d6   :  { %6939 = vmatpush3.msra.mxu1 %v1648_v36 }
 0x2d7   :  { %6940 = vmatprep.subr.mxu1 %v7996_v0 }
 0x2d8   :  { %6888 = vmatmul.mubr.msk.f32.gmra.mxu1 %vm1058_vm2, %v1286_v26  ;;  %6924 = vmatmul.mubr.msk.f32.gmra.mxu0 %vm1058_vm2, %v8352_v12 }
 0x2d9   :  { %6890 = vmatprep.mubr.msk.f32.mxu1 %vm7997_vm0, %v7996_v0  ;;  %6969 = vmatprep.mubr.msk.f32.mxu0 %vm7997_vm0, %v7996_v0 }
 0x2da   :  { %6941 = vmatpush3.msra.mxu1 %v1647_v37 }
 0x2db   :  { %6942 = vmatprep.subr.mxu1 %v7996_v0 }
 0x2dc   :  { %6891 = vmatmul.mubr.msk.f32.gmra.mxu1 %vm1058_vm2, %v1287_v27 }
 0x2dd   :  { %6958 = vmatprep.mubr.msk.f32.mxu1 %vm7997_vm0, %v7996_v0  ;;  %6943 = vmatpush3.msra.mxu1 %v1646_v38 }
 0x2de   :  { %6944 = vmatprep.subr.mxu1 %v7996_v0 }
 0x2df   :  { %6945 = vmatpush3.msra.mxu1 %v1645_v39 }
 0x2e0   :  { %6946 = vmatprep.subr.mxu1 %v7996_v0 }
 0x2e1   :  { %6947 = vmatpush3.msra.mxu1 %v1644_v40  ;;  %v191_v40 = vadd.s32 8, %v8287_v47 }
 0x2e2   :  { %6948 = vmatprep.subr.mxu1 %v7996_v0 }
 0x2e3   :  { %6949 = vmatpush3.msra.mxu1 %v1643_v41  ;;  %vm371_vm4 = vcmp.lt.s32.totalorder %v191_v40, 10  ;;  %v197_v40 = vadd.s32 56, %v8287_v47 }
 0x2e4   :  { %v8465_v28 = vpop.f32.mrf.mxu0  ;;  %6950 = vmatprep.subr.mxu1 %v7996_v0 }
 0x2e5   :  { %6951 = vmatpush3.msra.mxu1 %v1642_v42  ;;  %vm566_vm11 = vcmp.lt.s32.totalorder %v197_v40, 58 }
 0x2e6   :  { %v6835_v29 = vpop.f32.mrf.mxu0  ;;  %6952 = vmatprep.subr.mxu1 %v7996_v0 }
 0x2e7   :  { %6953 = vmatpush3.msra.mxu1 %v1641_v43 }
 0x2e8   :  { %6954 = vmatprep.subr.mxu1 %v7996_v0 }
 0x2e9   :  { %6955 = vmatpush3.msra.mxu1 %v1640_v44 }
 0x2ea   :  { %6956 = vmatprep.subr.mxu1 %v7996_v0 }
 0x2eb   :  { %6957 = vmatpush3.msra.mxu1 %v1639_v45 }
 0x357   :  { %v1120_v46 = vpop.f32.mrf.mxu1  ;;  %v1240_v49 = vpop.f32.mrf.mxu0 }
 0x358   :  { %v1236_v34 = vadd.f32 %v8465_v28, %v1120_v46  ;;  %v193_v46 = vadd.s32 24, %v8287_v47 }
 0x359   :  { %v6802_v51 = vpop.f32.mrf.mxu1  ;;  %v6838_v52 = vpop.f32.mrf.mxu0 }
 0x35a   :  { %v192_v51 = vadd.s32 16, %v8287_v47  ;;  %vm436_vm7 = vcmp.lt.s32.totalorder %v193_v46, 26 }
 0x35c   :  { %v1125_v53 = vpop.f32.mrf.mxu1  ;;  %v1245_v54 = vpop.f32.mrf.mxu0  ;;  %vm399_vm6 = vcmp.lt.s32.totalorder %v192_v51, 18 }
 0x35d   :  { %v1241_v31 = vadd.f32 %v1240_v49, %v1125_v53 }
 0x35e   :  { %v6805_v55 = vpop.f32.mrf.mxu1  ;;  %v6841_v57 = vpop.f32.mrf.mxu0 }
 0x360   :  { %v1130_v58 = vpop.f32.mrf.mxu1  ;;  %v1250_v59 = vpop.f32.mrf.mxu0 }
 0x361   :  { %v1246_v35 = vadd.f32 %v1245_v54, %v1130_v58 }
 0x362   :  { %v6808_v60 = vpop.f32.mrf.mxu1  ;;  %v6844_v61 = vpop.f32.mrf.mxu0 }
 0x363   :  { %v8551_v60 = vld [vmem:[#allocation4] ss:$0 sm:$0xff] }
 0x364   :  { %v1135_v62 = vpop.f32.mrf.mxu1  ;;  %v1255_v63 = vpop.f32.mrf.mxu0 }
 0x365   :  { %v1251_v44 = vadd.f32 %v1250_v59, %v1135_v62  ;;  %v194_v62 = vadd.s32 32, %v8287_v47 }
 0x366   :  { %v6811_v1 = vpop.f32.mrf.mxu1  ;;  %v6847_v2 = vpop.f32.mrf.mxu0 }
 0x367   :  { %vm473_vm8 = vcmp.lt.s32.totalorder %v194_v62, 34 }
 0x368   :  { %v1140_v3 = vpop.f32.mrf.mxu1  ;;  %v8530_v4 = vpop.f32.mrf.mxu0 }
 0x369   :  { %v1256_v58 = vadd.f32 %v1255_v63, %v1140_v3 }
 0x36a   :  { %v6814_v5 = vpop.f32.mrf.mxu1  ;;  %v6850_v6 = vpop.f32.mrf.mxu0 }
 0x36b   :  { %v8558_v5 = vsel %vm371_vm4, 1.0, %v7996_v0 }
 0x36c   :  { %v8532_v8 = vpop.f32.mrf.mxu1  ;;  %v8534_v9 = vpop.f32.mrf.mxu0 }
 0x36e   :  { %v6817_v10 = vpop.f32.mrf.mxu1  ;;  %v6853_v11 = vpop.f32.mrf.mxu0 }
 0x36f   :  { %v8561_v10 = vsel %vm352_vm5, 1.0, %v7996_v0 }
 0x370   :  { %v8536_v12 = vpop.f32.mrf.mxu1  ;;  %v8538_v13 = vpop.f32.mrf.mxu0 }
 0x372   :  { %v6820_v14 = vpop.f32.mrf.mxu1  ;;  %v6856_v15 = vpop.f32.mrf.mxu0 }
 0x373   :  { %v1261_v15 = vadd.f32 %v8530_v4, %v8532_v8 }
 0x374   :  { %v8540_v16 = vpop.f32.mrf.mxu1  ;;  %v8542_v17 = vpop.f32.mrf.mxu0 }
 0x376   :  { %v6823_v18 = vpop.f32.mrf.mxu1  ;;  %v6859_v19 = vpop.f32.mrf.mxu0 }
 0x377   :  { %v8572_v18 = vsel %vm399_vm6, 1.0, %v7996_v0 }
 0x378   :  { %v8544_v20 = vpop.f32.mrf.mxu1  ;;  %v1522_v21 = vpop.f32.mrf.mxu0 }
 0x37a   :  { %v6826_v22 = vpop.f32.mrf.mxu1  ;;  %v6901_v23 = vpop.f32.mrf.mxu0 }
 0x37c   :  { %v1374_v24 = vpop.f32.mrf.mxu1  ;;  %v1527_v25 = vpop.f32.mrf.mxu0 }
 0x37d   :  { %v1418_v39 = vadd.f32 %v1374_v24, %v1236_v34  ;;  %v8594_v34 = vsel %vm473_vm8, 1.0, %v7996_v0 }
 0x37e   :  { %v6868_v26 = vpop.f32.mrf.mxu1  ;;  %v6904_v27 = vpop.f32.mrf.mxu0  ;;  %9961 = vst [vmem:[#allocation27_spill] sm:$0xff] %v8594_v34 }
 0x37f   :  { %v1566_v55 = vadd.f32 %v1522_v21, %v1418_v39  ;;  %v195_v21 = vadd.s32 40, %v8287_v47  ;;  %v196_v26 = vadd.s32 48, %v8287_v47  ;;  %v8582_v27 = vsel %vm436_vm7, 1.0, %v7996_v0 }
 0x380   :  { %v1379_v29 = vpop.f32.mrf.mxu1  ;;  %v1532_v30 = vpop.f32.mrf.mxu0 }
 0x381   :  { %v1419_v36 = vadd.f32 %v1379_v29, %v1241_v31  ;;  %v8564_v63 = vadd.f32 %v8551_v60, %v1566_v55  ;;  %vm501_vm9 = vcmp.lt.s32.totalorder %v195_v21, 42  ;;  %vm529_vm10 = vcmp.lt.s32.totalorder %v196_v26, 50 }
 0x382   :  { %v6871_v32 = vpop.f32.mrf.mxu1  ;;  %v6907_v33 = vpop.f32.mrf.mxu0 }
 0x383   :  { %v1567_v45 = vadd.f32 %v1527_v25, %v1419_v36  ;;  %v1591_v8 = vmul.f32 %v8561_v10, %v8564_v63  ;;  %v1266_v33 = vadd.f32 %v8534_v9, %v8536_v12 }
 0x384   :  { %v1384_v37 = vpop.f32.mrf.mxu1  ;;  %v1537_v38 = vpop.f32.mrf.mxu0 }
 0x385   :  { %v1420_v41 = vadd.f32 %v1384_v37, %v1246_v35  ;;  %v8554_v59 = vadd.f32 %v8551_v60, %v1567_v45 }
 0x386   :  { %v6874_v42 = vpop.f32.mrf.mxu1  ;;  %v6910_v43 = vpop.f32.mrf.mxu0 }
 0x387   :  { %v1568_v28 = vadd.f32 %v1532_v30, %v1420_v41  ;;  %v1592_v22 = vmul.f32 %v8558_v5, %v8554_v59  ;;  %v1614_v43 = vmul.f32 %v1591_v8, %v1591_v8 }
 0x388   :  { %v1389_v52 = vpop.f32.mrf.mxu1  ;;  %v1542_v49 = vpop.f32.mrf.mxu0 }
 0x389   :  { %v1421_v53 = vadd.f32 %v1389_v52, %v1251_v44  ;;  %v8567_v3 = vadd.f32 %v8551_v60, %v1568_v28  ;;  %v1615_v36 = vmul.f32 %v1592_v22, %v1592_v22  ;;  %v8605_v44 = vsel %vm501_vm9, 1.0, %v7996_v0 }
 0x38a   :  { %v6877_v54 = vpop.f32.mrf.mxu1  ;;  %v6913_v57 = vpop.f32.mrf.mxu0  ;;  %9962 = vst [vmem:[#allocation28_spill] sm:$0xff] %v8605_v44  ;;  %v1271_v52 = vadd.f32 %v8538_v13, %v8540_v16 }
 0x38b   :  { %v1569_v61 = vadd.f32 %v1537_v38, %v1421_v53  ;;  %v1593_v29 = vmul.f32 %v8572_v18, %v8567_v3  ;;  %v8610_v53 = vsel %vm529_vm10, 1.0, %v7996_v0  ;;  %v1623_v28 = vadd.f32 %v1615_v36, %v1614_v43 }
 0x38c   :  { %v1394_v1 = vpop.f32.mrf.mxu1  ;;  %v1547_v2 = vpop.f32.mrf.mxu0  ;;  %9963 = vst [vmem:[#allocation29_spill] sm:$0xff] %v8610_v53 }
 0x38d   :  { %v1422_v6 = vadd.f32 %v1394_v1, %v1256_v58  ;;  %v8578_v23 = vadd.f32 %v8551_v60, %v1569_v61  ;;  %v1616_v9 = vmul.f32 %v1593_v29, %v1593_v29  ;;  %v198_v58 = vadd.s32 64, %v8287_v47 }
 0x38e   :  { %v6880_v11 = vpop.f32.mrf.mxu1  ;;  %v6916_v14 = vpop.f32.mrf.mxu0 }
 0x38f   :  { %v1570_v19 = vadd.f32 %v1542_v49, %v1422_v6  ;;  %v1594_v37 = vmul.f32 %v8582_v27, %v8578_v23  ;;  %v1600_v49 = vadd.f32 %v1592_v22, %v1591_v8  ;;  %v1624_v16 = vadd.f32 %v1623_v28, %v1616_v9 }
 0x390   :  { %v1399_v24 = vpop.f32.mrf.mxu1  ;;  %v1552_v25 = vpop.f32.mrf.mxu0  ;;  %v1276_v14 = vadd.f32 %v8542_v17, %v8544_v20  ;;  %vm594_vm12 = vcmp.lt.s32.totalorder %v198_v58, 66 }
 0x391   :  { %v1423_v4 = vadd.f32 %v1399_v24, %v1261_v15  ;;  %v8589_v30 = vadd.f32 %v8551_v60, %v1570_v19  ;;  %v1617_v46 = vmul.f32 %v1594_v37, %v1594_v37  ;;  %v1601_v61 = vadd.f32 %v1600_v49, %v1593_v29 }
 0x392   :  { %v6883_v31 = vpop.f32.mrf.mxu1  ;;  %v6919_v32 = vpop.f32.mrf.mxu0  ;;  %v8624_v24 = vsel %vm566_vm11, 1.0, %v7996_v0  ;;  %v8632_v36 = vsel %vm594_vm12, 1.0, %v7996_v0 }
 0x393   :  { %v1571_v35 = vadd.f32 %v1547_v2, %v1423_v4  ;;  %v1595_v12 = vmul.f32 %v8594_v34, %v8589_v30  ;;  %v1602_v15 = vadd.f32 %v1601_v61, %v1594_v37  ;;  %v1625_v22 = vadd.f32 %v1624_v16, %v1617_v46  ;;  %9964 = vst [vmem:[#allocation30_spill] sm:$0xff] %v8624_v24 }
 0x394   :  { %v1404_v38 = vpop.f32.mrf.mxu1  ;;  %v1557_v39 = vpop.f32.mrf.mxu0  ;;  %9965 = vst [vmem:[#allocation31_spill] sm:$0xff] %v8632_v36 }
 0x395   :  { %v8600_v41 = vadd.f32 %v8551_v60, %v1571_v35  ;;  %v1424_v42 = vadd.f32 %v1404_v38, %v1266_v33  ;;  %v1618_v2 = vmul.f32 %v1595_v12, %v1595_v12  ;;  %v1603_v26 = vadd.f32 %v1602_v15, %v1595_v12  ;;  %v1762_v15 = vld [vmem:[%s9912_s8] sm:$0xff] }
 0x396   :  { %v6886_v45 = vpop.f32.mrf.mxu1  ;;  %v6922_v51 = vpop.f32.mrf.mxu0 }
 0x397   :  { %v1572_v55 = vadd.f32 %v1552_v25, %v1424_v42  ;;  %v1596_v62 = vmul.f32 %v8605_v44, %v8600_v41  ;;  %v1626_v31 = vadd.f32 %v1625_v22, %v1618_v2  ;;  %v7061_v22 = vld [vmem:[%s9915_s11 + $0x74] ss:$8 sps:$4 sm:$0xff]  }
 0x398   :  { %v1409_v54 = vpop.f32.mrf.mxu1  ;;  %v1562_v57 = vpop.f32.mrf.mxu0 }
 0x399   :  { %v8616_v1 = vadd.f32 %v8551_v60, %v1572_v55  ;;  %v1425_v13 = vadd.f32 %v1409_v54, %v1271_v52  ;;  %v1619_v4 = vmul.f32 %v1596_v62, %v1596_v62  ;;  %v1604_v20 = vadd.f32 %v1603_v26, %v1596_v62  ;;  %v7062_v26 = vld [vmem:[%s9915_s11 + $0xe0] ss:$8 sps:$4 sm:$0xff]  }
 0x39a   :  { %v6889_v6 = vpop.f32.mrf.mxu1  ;;  %v6925_v11 = vpop.f32.mrf.mxu0 }
 0x39b   :  { %v1597_v19 = vmul.f32 %v8610_v53, %v8616_v1  ;;  %v1573_v21 = vadd.f32 %v1557_v39, %v1425_v13  ;;  %v1627_v37 = vadd.f32 %v1626_v31, %v1619_v4  ;;  %v1765_v6 = vld [vmem:[%s9912_s8 + $0x18] sm:$0xff]  ;;  %v1764_v11 = vld [vmem:[%s9912_s8 + $0x10] sm:$0xff] }
 0x39c   :  { %v1414_v25 = vpop.f32.mrf.mxu1  ;;  %6962 = vmatpush3.msra.mxu0 %v1765_v6  ;;  %v7070_v4 = vld [vmem:[%s9915_s11 + $0xd4] ss:$8 sps:$4 sm:$0xff]   ;;  %v7074_v6 = vld [vmem:[%s9915_s11 + $0xc0] ss:$8 sps:$4 sm:$0xff]  }
 0x39d   :  { %v8627_v8 = vadd.f32 %v8551_v60, %v1573_v21  ;;  %v1426_v29 = vadd.f32 %v1414_v25, %v1276_v14  ;;  %v1620_v32 = vmul.f32 %v1597_v19, %v1597_v19  ;;  %v1605_v38 = vadd.f32 %v1604_v20, %v1597_v19  ;;  %6963 = vmatprep.subr.mxu0 %v7996_v0  ;;  %v1763_v14 = vld [vmem:[%s9912_s8 + $0x8] sm:$0xff]  ;;  %v7056_v19 = vld [vmem:[%s9915_s11 + $0xf0] ss:$8 sps:$4 sm:$0xff]   ;;  %v7058_v21 = vld [vmem:[%s9915_s11 + $0xf4] ss:$8 sps:$4 sm:$0xff]  }
 0x39e   :  { %v6892_v17 = vpop.f32.mrf.mxu1  ;;  %6964 = vmatpush3.msra.mxu0 %v1764_v11  ;;  %v7064_v25 = vld [vmem:[%s9915_s11 + $0xe4] ss:$8 sps:$4 sm:$0xff]   ;;  %1996 = vmatprep.subr.bf16.mxu1 %v7058_v21  ;;  %v7077_v11 = vld [vmem:[%s9915_s11 + $0x40] ss:$8 sps:$4 sm:$0xff]   ;;  %v7083_v21 = vld [vmem:[%s9915_s11 + $0x30] ss:$8 sps:$4 sm:$0xff]  }
 0x39f   :  { %v1598_v33 = vmul.f32 %v8624_v24, %v8627_v8  ;;  %v1574_v35 = vadd.f32 %v1562_v57, %v1426_v29  ;;  %v1628_v42 = vadd.f32 %v1627_v37, %v1620_v32  ;;  %6965 = vmatprep.subr.mxu0 %v7996_v0  ;;  %v7068_v29 = vld [vmem:[%s9915_s11 + $0xd0] ss:$8 sps:$4 sm:$0xff]  }
 0x3a0   :  { %6966 = vmatpush3.msra.mxu0 %v1763_v14  ;;  %v7082_v14 = vld [vmem:[%s9915_s11 + $0xb4] ss:$8 sps:$4 sm:$0xff]  }
 0x3a1   :  { %v1621_v39 = vmul.f32 %v1598_v33, %v1598_v33  ;;  %v8635_v40 = vadd.f32 %v8551_v60, %v1574_v35  ;;  %v1606_v43 = vadd.f32 %v1605_v38, %v1598_v33  ;;  %6967 = vmatprep.subr.mxu0 %v7996_v0  ;;  %v8004_v38 = vmov 1966171168  }
 0x3a2   :  { %6968 = vmatpush3.msra.mxu0 %v1762_v15  ;;  %v7085_v15 = vld [vmem:[%s9915_s11 + $0x34] ss:$8 sps:$4 sm:$0xff]  }
 0x3a3   :  { %v1599_v9 = vmul.f32 %v8632_v36, %v8635_v40  ;;  %v1629_v12 = vadd.f32 %v1628_v42, %v1621_v39  ;;  %2163 = vmatprep.subr.bf16.mxu0 %v7061_v22  ;;  %v1736_v39 = vunpack.c.l.s4 %v8004_v38  ;;  %v7086_v22 = vld [vmem:[%s9915_s11 + $0xa0] ss:$8 sps:$4 sm:$0xff]   ;;  %v7106_v38 = vld [vmem:[%s9915_s11 + $0x174] ss:$8 sps:$4 sm:$0xff]  }
 0x3a5   :  { %v1607_v45 = vadd.f32 %v1606_v43, %v1599_v9  ;;  %v1622_v51 = vmul.f32 %v1599_v9, %v1599_v9  ;;  %v1737_v42 = vunpack.c.0.s8 %v1736_v39  ;;  %v7109_v39 = vld [vmem:[%s9915_s11 + $0x1f4] ss:$8 sps:$4 sm:$0xff]  }
 0x3a7   :  { %v1608_v52 = vrot.slane %v1607_v45, 4  ;;  %v1630_v49 = vadd.f32 %v1629_v12, %v1622_v51  ;;  %v8678_v43 = vsub.s32 %v1737_v42, %v8287_v47  ;;  %v1731_v51 = vld [vmem:[#allocation6] sm:$0x1] }
 0x3a9   :  { %v1609_v55 = vadd.f32 %v1608_v52, %v1607_v45  ;;  %v1631_v28 = vrot.slane %v1630_v49, 4  ;;  %9966 = vst [vmem:[#allocation32_spill] sm:$0xff] %v8678_v43 }
 0x3ab   :  { %v1610_v46 = vrot.slane %v1609_v55, 2  ;;  %v1632_v54 = vadd.f32 %v1631_v28, %v1630_v49 }
 0x3ad   :  { %v1611_v57 = vadd.f32 %v1610_v46, %v1609_v55  ;;  %v1633_v58 = vrot.slane %v1632_v54, 2  ;;  %v1752_v55 = vld [vmem:[#allocation7] sm:$0x1] }
 0x3af   :  { %v1612_v61 = vrot.slane %v1611_v57, 1  ;;  %v1634_v62 = vadd.f32 %v1633_v58, %v1632_v54  ;;  %v7067_v58 = vld [vmem:[%s9915_s11 + $0x64] ss:$8 sps:$4 sm:$0xff]  }
 0x3b1   :  { %v1635_v60 = vrot.slane %v1634_v62, 1  ;;  %v1613_v13 = vadd.f32 %v1612_v61, %v1611_v57  ;;  %v7059_v57 = vld [vmem:[%s9915_s11 + $0x70] ss:$8 sps:$4 sm:$0xff]  }
 0x3b3   :  { %v1636_v16 = vadd.f32 %v1635_v60, %v1634_v62  ;;  %v7065_v62 = vld [vmem:[%s9915_s11 + $0x60] ss:$8 sps:$4 sm:$0xff]   ;;  %v7073_v60 = vld [vmem:[%s9915_s11 + $0x54] ss:$8 sps:$4 sm:$0xff]  }
 0x3b5   :  { %v1638_v2 = vsel %vm1637_vm13, %v1613_v13, %v1636_v16  ;;  %v7071_v13 = vld [vmem:[%s9915_s11 + $0x50] ss:$8 sps:$4 sm:$0xff]   ;;  %v7076_v16 = vld [vmem:[%s9915_s11 + $0xc4] ss:$8 sps:$4 sm:$0xff]  }
 0x3b6   :  { %6959 = vmatmul.mubr.f32.vlgmr.msra.gmra.mxu1 %v1638_v2  ;;  %v7079_v2 = vld [vmem:[%s9915_s11 + $0x44] ss:$8 sps:$4 sm:$0xff]  }
 0x3b7   :  { %2028 = vmatprep.mubr.f32.mxu1 %v7996_v0  ;;  %1997 = vmatpush1.bf16.msra.mxu1 %v7056_v19  ;;  %v7080_v19 = vld [vmem:[%s9915_s11 + $0xb0] ss:$8 sps:$4 sm:$0xff]  }
 0x3b8   :  { %1998 = vmatprep.subr.bf16.mxu1 %v7064_v25  ;;  %v7088_v25 = vld [vmem:[%s9915_s11 + $0xa4] ss:$8 sps:$4 sm:$0xff]  }
 0x3bb   :  { %1999 = vmatpush1.bf16.msra.mxu1 %v7062_v26  ;;  %v7089_v26 = vld [vmem:[%s9915_s11 + $0x20] ss:$8 sps:$4 sm:$0xff]  }
 0x3bc   :  { %2000 = vmatprep.subr.bf16.mxu1 %v7070_v4  ;;  %v7091_v4 = vld [vmem:[%s9915_s11 + $0x24] ss:$8 sps:$4 sm:$0xff]  }
 0x3bf   :  { %2001 = vmatpush1.bf16.msra.mxu1 %v7068_v29  ;;  %v7094_v29 = vld [vmem:[%s9915_s11 + $0x94] ss:$8 sps:$4 sm:$0xff]  }
 0x3c0   :  { %2002 = vmatprep.subr.bf16.mxu1 %v7076_v16  ;;  %v7113_v16 = vld [vmem:[%s9915_s11 + $0x1e0] ss:$8 sps:$4 sm:$0xff]  }
 0x3c3   :  { %2003 = vmatpush1.bf16.msra.mxu1 %v7074_v6  ;;  %v7110_v6 = vld [vmem:[%s9915_s11 + $0x160] ss:$8 sps:$4 sm:$0xff]  }
 0x3c4   :  { %2004 = vmatprep.subr.bf16.mxu1 %v7082_v14  ;;  %v7118_v14 = vld [vmem:[%s9915_s11 + $0x154] ss:$8 sps:$4 sm:$0xff]  }
 0x3c7   :  { %2005 = vmatpush1.bf16.msra.mxu1 %v7080_v19  ;;  %v7119_v19 = vld [vmem:[%s9915_s11 + $0x1d0] ss:$8 sps:$4 sm:$0xff]  }
 0x3c8   :  { %2006 = vmatprep.subr.bf16.mxu1 %v7088_v25 }
 0x3cb   :  { %2007 = vmatpush1.bf16.msra.mxu1 %v7086_v22  ;;  %v7116_v22 = vld [vmem:[%s9915_s11 + $0x150] ss:$8 sps:$4 sm:$0xff]  }
 0x3cc   :  { %2008 = vmatprep.subr.bf16.mxu1 %v7094_v29  ;;  %v7124_v29 = vld [vmem:[%s9915_s11 + $0x144] ss:$8 sps:$4 sm:$0xff]  }
 0x476   :  { %v1721_v31 = vpop.f32.mrf.mxu1 }
 0x477   :  { %v1725_v17 = vmul.f32 0.013888889, %v1721_v31  ;;  %v7097_v31 = vld [vmem:[%s9915_s11 + $0x14] ss:$8 sps:$4 sm:$0xff]  }
 0x478   :  { %v6960_v20 = vpop.f32.mrf.mxu1 }
 0x479   :  { %v1726_v32 = vmul.f32 %v1725_v17, %v1725_v17  ;;  %v7095_v20 = vld [vmem:[%s9915_s11 + $0x10] ss:$8 sps:$4 sm:$0xff]  }
 0x47b   :  { %v1728_v33 = vrot.slane %v1726_v32, 7  ;;  %v7100_v32 = vld [vmem:[%s9915_s11 + $0x84] ss:$8 sps:$4 sm:$0xff]  }
 0x47d   :  { %v1730_v35 = vsub.f32 %v1725_v17, %v1728_v33  ;;  %v7103_v33 = vld [vmem:[%s9915_s11 + $0x4] ss:$8 sps:$4 sm:$0xff]  }
 0x47f   :  { %v1732_v37 = vadd.f32 1e-05, %v1730_v35  ;;  %v7098_v35 = vld [vmem:[%s9915_s11 + $0x80] ss:$8 sps:$4 sm:$0xff]  }
 0x481   :  { %7640 = vrsqrt.f32 %v1732_v37  ;;  %v7101_v37 = vld [vmem:[%s9915_s11] ss:$8 sps:$4 sm:$0xff]  }
 0x48e   :  { %v7641_v9 = vpop.eup %7640 }
 0x48f   :  { %v1741_v12 = vrot.slane %v7641_v9, %v8678_v43 }
 0x491   :  { %v1742_v45 = vcombine.high %v1741_v12, %v1741_v12 }
 0x493   :  { %v1749_v52 = vrot.slane %v1742_v45, %v8678_v43 }
 0x495   :  { %v1751_v49 = vmul.f32 %v1749_v52, %v1731_v51 }
 0x497   :  { %v1753_v28 = vmul.f32 %v1751_v49, %v1725_v17  ;;  %v7092_v17 = vld [vmem:[%s9915_s11 + $0x90] ss:$8 sps:$4 sm:$0xff]  }
 0x498   :  { %2009 = vmatpush1.bf16.msra.mxu1 %v7092_v17  ;;  %v7122_v17 = vld [vmem:[%s9915_s11 + $0x140] ss:$8 sps:$4 sm:$0xff]  }
 0x499   :  { %v1754_v46 = vsub.f32 %v1752_v55, %v1753_v28  ;;  %2010 = vmatprep.subr.bf16.mxu1 %v7100_v32  ;;  %v7130_v32 = vld [vmem:[%s9915_s11 + $0x134] ss:$8 sps:$4 sm:$0xff]  }
 0x49b   :  { %v1759_v54 = vrot.slane %v1754_v46, %v8290_v48 }
 0x49c   :  { %2011 = vmatpush1.bf16.msra.mxu1 %v7098_v35  ;;  %v7131_v35 = vld [vmem:[%s9915_s11 + $0x1b0] ss:$8 sps:$4 sm:$0xff]  }
 0x49d   :  { %v1761_v61 = vsel %vm1637_vm13, %v1751_v49, %v1759_v54  ;;  %2356 = vmatprep.subr.bf16.mxu1 %v7106_v38  ;;  %v7128_v38 = vld [vmem:[%s9915_s11 + $0x130] ss:$8 sps:$4 sm:$0xff]  }
 0x49e   :  { %6970 = vmatmul.mubr.msk.f32.vlgmr.msra.gmra.mxu0 %vm996_vm3, %v1761_v61 }
 0x49f   :  { %2164 = vmatpush1.bf16.msra.mxu0 %v7059_v57  ;;  %2195 = vmatprep.mubr.f32.mxu0 %v7996_v0 }
 0x4a0   :  { %2165 = vmatprep.subr.bf16.mxu0 %v7067_v58 }
 0x4a3   :  { %2166 = vmatpush1.bf16.msra.mxu0 %v7065_v62 }
 0x4a4   :  { %2167 = vmatprep.subr.bf16.mxu0 %v7073_v60 }
 0x4a7   :  { %2168 = vmatpush1.bf16.msra.mxu0 %v7071_v13 }
 0x4a8   :  { %2169 = vmatprep.subr.bf16.mxu0 %v7079_v2  ;;  %v7121_v2 = vld [vmem:[%s9915_s11 + $0x1d4] ss:$8 sps:$4 sm:$0xff]  }
 0x4ab   :  { %2170 = vmatpush1.bf16.msra.mxu0 %v7077_v11 }
 0x4ac   :  { %2171 = vmatprep.subr.bf16.mxu0 %v7085_v15 }
 0x4af   :  { %2172 = vmatpush1.bf16.msra.mxu0 %v7083_v21 }
 0x4b0   :  { %2173 = vmatprep.subr.bf16.mxu0 %v7091_v4 }
 0x4b3   :  { %2174 = vmatpush1.bf16.msra.mxu0 %v7089_v26 }
 0x4b4   :  { %2175 = vmatprep.subr.bf16.mxu0 %v7097_v31  ;;  %v7125_v31 = vld [vmem:[%s9915_s11 + $0x1c0] ss:$8 sps:$4 sm:$0xff]  }
 0x4b7   :  { %2176 = vmatpush1.bf16.msra.mxu0 %v7095_v20 }
 0x4b8   :  { %2177 = vmatprep.subr.bf16.mxu0 %v7103_v33 }
 0x4bb   :  { %2178 = vmatpush1.bf16.msra.mxu0 %v7101_v37  ;;  %v7139_v37 = vld [vmem:[%s9915_s11 + $0x1a4] ss:$8 sps:$4 sm:$0xff]  }
 0x4bc   :  { %2567 = vmatprep.subr.bf16.mxu0 %v7109_v39 }
 0x55e   :  { %v1835_v42 = vpop.f32.mrf.mxu0 }
 0x55f   :  { %v1842_v9 = vrot.slane %v1835_v42, %v8290_v48  ;;  %v8771_v52 = vrot.slane %v1835_v42, %v8295_v50  ;;  %v7136_v42 = vld [vmem:[%s9915_s11 + $0x124] ss:$8 sps:$4 sm:$0xff]  }
 0x560   :  { %v6971_v12 = vpop.f32.mrf.mxu0 }
 0x561   :  { %v1843_v45 = vmul.f32 %v1842_v9, %v8564_v63  ;;  %v1844_v51 = vmul.f32 %v1842_v9, %v8554_v59  ;;  %v1845_v28 = vmul.f32 %v1842_v9, %v8567_v3  ;;  %v1846_v46 = vmul.f32 %v1842_v9, %v8578_v23  ;;  %v7107_v3 = vld [vmem:[%s9915_s11 + $0x1f0] ss:$8 sps:$4 sm:$0xff]   ;;  %v7137_v12 = vld [vmem:[%s9915_s11 + $0x1a0] ss:$8 sps:$4 sm:$0xff]  }
 0x562   :  { %v1847_v63 = vmul.f32 %v1842_v9, %v8589_v30  ;;  %v1848_v59 = vmul.f32 %v1842_v9, %v8600_v41  ;;  %v1849_v61 = vmul.f32 %v1842_v9, %v8616_v1  ;;  %v7104_v23 = vld [vmem:[%s9915_s11 + $0x170] ss:$8 sps:$4 sm:$0xff]   ;;  %v7112_v41 = vld [vmem:[%s9915_s11 + $0x164] ss:$8 sps:$4 sm:$0xff]   ;;  %v1850_v11 = vmul.f32 %v1842_v9, %v8627_v8 }
 0x563   :  { %v1856_v49 = vadd.f32 %v8771_v52, %v1843_v45  ;;  %v1857_v55 = vadd.f32 %v8771_v52, %v1844_v51  ;;  %v1858_v54 = vadd.f32 %v8771_v52, %v1845_v28  ;;  %v1859_v57 = vadd.f32 %v8771_v52, %v1846_v46  ;;  %v7115_v1 = vld [vmem:[%s9915_s11 + $0x1e4] ss:$8 sps:$4 sm:$0xff]   ;;  %v7145_v45 = vld [vmem:[%s9915_s11 + $0x194] ss:$8 sps:$4 sm:$0xff]   ;;  %v7134_v51 = vld [vmem:[%s9915_s11 + $0x120] ss:$8 sps:$4 sm:$0xff]  }
 0x564   :  { %v1860_v58 = vadd.f32 %v8771_v52, %v1847_v63  ;;  %v1861_v30 = vadd.f32 %v8771_v52, %v1848_v59  ;;  %v1862_v13 = vadd.f32 %v8771_v52, %v1849_v61  ;;  %v7127_v8 = vld [vmem:[%s9915_s11 + $0x1c4] ss:$8 sps:$4 sm:$0xff]   ;;  %v1851_v25 = vmul.f32 %v1842_v9, %v8635_v40  ;;  %v7133_v40 = vld [vmem:[%s9915_s11 + $0x1b4] ss:$8 sps:$4 sm:$0xff]   ;;  %v7140_v46 = vld [vmem:[%s9915_s11 + $0x110] ss:$8 sps:$4 sm:$0xff]  }
 0x565   :  { %7642 = vtanh.f32 %v1856_v49  ;;  %v1863_v26 = vadd.f32 %v8771_v52, %v1850_v11  ;;  %v7142_v49 = vld [vmem:[%s9915_s11 + $0x114] ss:$8 sps:$4 sm:$0xff]   ;;  %v7151_v28 = vld [vmem:[%s9915_s11 + $0x184] ss:$8 sps:$4 sm:$0xff]   ;;  %v7149_v63 = vld [vmem:[%s9915_s11 + $0x180] ss:$8 sps:$4 sm:$0xff]  }
 0x566   :  { %7644 = vtanh.f32 %v1857_v55  ;;  %v1864_v20 = vadd.f32 %v8771_v52, %v1851_v25  ;;  %v7143_v55 = vld [vmem:[%s9915_s11 + $0x190] ss:$8 sps:$4 sm:$0xff]   ;;  %v7146_v59 = vld [vmem:[%s9915_s11 + $0x100] ss:$8 sps:$4 sm:$0xff]  }
 0x567   :  { %7646 = vtanh.f32 %v1858_v54  ;;  %v7148_v54 = vld [vmem:[%s9915_s11 + $0x104] ss:$8 sps:$4 sm:$0xff]   ;;  %v2822_v11 = vld [vmem:[%s9917_s13 + $0xd0] sm:$0xff]  ;;  %v2803_v25 = vld [vmem:[%s9917_s13 + $0x38] sm:$0xff] }
 0x568   :  { %7648 = vtanh.f32 %v1859_v57 }
 0x569   :  { %7650 = vtanh.f32 %v1860_v58 }
 0x56a   :  { %7652 = vtanh.f32 %v1861_v30  ;;  %v2811_v30 = vld [vmem:[%s9917_s13 + $0x78] sm:$0xff] }
 0x56b   :  { %7654 = vtanh.f32 %v1862_v13  ;;  %v2824_v13 = vld [vmem:[%s9917_s13 + $0xe0] sm:$0xff] }
 0x56c   :  { %7656 = vtanh.f32 %v1863_v26  ;;  %v2818_v26 = vld [vmem:[%s9917_s13 + $0xb0] sm:$0xff] }
 0x56d   :  { %7658 = vtanh.f32 %v1864_v20  ;;  %v2815_v20 = vld [vmem:[%s9917_s13 + $0x98] sm:$0xff] }
 0x572   :  { %v8789_v62 = vpop.eup %7642 }
 0x573   :  { %v8795_v60 = vpop.eup %7644  ;;  %2196 = vmatmul.mubr.f32.vlgmr.msra.gmra.mxu0 %v8789_v62  ;;  %v1898_v61 = vmul.f32 0.0, %v8789_v62  ;;  %v2827_v62 = vld [vmem:[%s9917_s13 + $0xf8] sm:$0xff] }
 0x574   :  { %2029 = vmatmul.mubr.f32.vlgmr.msra.gmra.mxu1 %v8795_v60  ;;  %2568 = vmatpush1.bf16.msra.mxu0 %v7107_v3  ;;  %v8819_v15 = vpop.eup %7646  ;;  %v2257_v3 = vmul.f32 0.0, %v8795_v60 }
 0x575   :  { %2357 = vmatpush1.bf16.msra.mxu1 %v7104_v23  ;;  %2034 = vmatprep.mubr.f32.mxu1 %v7996_v0  ;;  %v8825_v21 = vpop.eup %7648  ;;  %v2258_v23 = vmul.f32 0.0, %v8819_v15 }
 0x576   :  { %2201 = vmatprep.mubr.f32.mxu0 %v7996_v0  ;;  %2358 = vmatprep.subr.bf16.mxu1 %v7112_v41  ;;  %v8838_v4 = vmul.f32 0.0, %v8825_v21  ;;  %v8861_v33 = vpop.eup %7650  ;;  %v2826_v41 = vld [vmem:[%s9917_s13 + $0xf0] sm:$0xff] }
 0x577   :  { %2202 = vmatmul.mubr.f32.gmra.mxu0 %v8795_v60  ;;  %2569 = vmatprep.subr.bf16.mxu0 %v7115_v1  ;;  %v7653_v39 = vpop.eup %7652  ;;  %v2825_v60 = vld [vmem:[%s9917_s13 + $0xe8] sm:$0xff] }
 0x578   :  { %2207 = vmatprep.mubr.f32.mxu0 %v7996_v0  ;;  %2570 = vmatpush1.bf16.msra.mxu0 %v7113_v16  ;;  %v7655_v9 = vpop.eup %7654  ;;  %v2809_v1 = vld [vmem:[%s9917_s13 + $0x68] sm:$0xff]  ;;  %v2808_v16 = vld [vmem:[%s9917_s13 + $0x60] sm:$0xff] }
 0x579   :  { %2035 = vmatmul.mubr.f32.gmra.mxu1 %v8819_v15  ;;  %2571 = vmatprep.subr.bf16.mxu0 %v7121_v2  ;;  %v1895_v52 = vmul.f32 0.0, %v7655_v9  ;;  %v7657_v57 = vpop.eup %7656  ;;  %v2823_v2 = vld [vmem:[%s9917_s13 + $0xd8] sm:$0xff] }
 0x57a   :  { %2359 = vmatpush1.bf16.msra.mxu1 %v7110_v6  ;;  %2040 = vmatprep.mubr.f32.mxu1 %v7996_v0  ;;  %v7659_v58 = vpop.eup %7658  ;;  %v2807_v6 = vld [vmem:[%s9917_s13 + $0x58] sm:$0xff] }
 0x57b   :  { %2208 = vmatmul.mubr.f32.gmra.mxu0 %v8819_v15  ;;  %2360 = vmatprep.subr.bf16.mxu1 %v7118_v14  ;;  %v2806_v14 = vld [vmem:[%s9917_s13 + $0x50] sm:$0xff]  ;;  %v2821_v15 = vld [vmem:[%s9917_s13 + $0xc8] sm:$0xff] }
 0x57c   :  { %2213 = vmatprep.mubr.f32.mxu0 %v7996_v0  ;;  %2572 = vmatpush1.bf16.msra.mxu0 %v7119_v19  ;;  %v2805_v19 = vld [vmem:[%s9917_s13 + $0x48] sm:$0xff] }
 0x57d   :  { %2041 = vmatmul.mubr.f32.gmra.mxu1 %v8838_v4  ;;  %2573 = vmatprep.subr.bf16.mxu0 %v7127_v8  ;;  %v2804_v8 = vld [vmem:[%s9917_s13 + $0x40] sm:$0xff] }
 0x57e   :  { %2361 = vmatpush1.bf16.msra.mxu1 %v7116_v22  ;;  %2046 = vmatprep.mubr.f32.mxu1 %v7996_v0  ;;  %v2819_v22 = vld [vmem:[%s9917_s13 + $0xb8] sm:$0xff] }
 0x57f   :  { %2214 = vmatmul.mubr.f32.gmra.mxu0 %v8825_v21  ;;  %2362 = vmatprep.subr.bf16.mxu1 %v7124_v29  ;;  %v2817_v29 = vld [vmem:[%s9917_s13 + $0xa8] sm:$0xff] }
 0x580   :  { %2219 = vmatprep.mubr.f32.mxu0 %v7996_v0  ;;  %2574 = vmatpush1.bf16.msra.mxu0 %v7125_v31  ;;  %v2801_v31 = vld [vmem:[%s9917_s13 + $0x28] sm:$0xff] }
 0x581   :  { %2047 = vmatmul.mubr.f32.gmra.mxu1 %v8861_v33  ;;  %2575 = vmatprep.subr.bf16.mxu0 %v7133_v40  ;;  %v2816_v40 = vld [vmem:[%s9917_s13 + $0xa0] sm:$0xff] }
 0x582   :  { %2363 = vmatpush1.bf16.msra.mxu1 %v7122_v17  ;;  %2052 = vmatprep.mubr.f32.mxu1 %v7996_v0  ;;  %v2800_v17 = vld [vmem:[%s9917_s13 + $0x20] sm:$0xff] }
 0x583   :  { %2220 = vmatmul.mubr.f32.gmra.mxu0 %v8861_v33  ;;  %2364 = vmatprep.subr.bf16.mxu1 %v7130_v32  ;;  %v2799_v32 = vld [vmem:[%s9917_s13 + $0x18] sm:$0xff] }
 0x584   :  { %2225 = vmatprep.mubr.f32.mxu0 %v7996_v0  ;;  %2576 = vmatpush1.bf16.msra.mxu0 %v7131_v35  ;;  %v2798_v35 = vld [vmem:[%s9917_s13 + $0x10] sm:$0xff] }
 0x585   :  { %2053 = vmatmul.mubr.f32.gmra.mxu1 %v7653_v39  ;;  %2577 = vmatprep.subr.bf16.mxu0 %v7139_v37  ;;  %v2813_v37 = vld [vmem:[%s9917_s13 + $0x88] sm:$0xff] }
 0x586   :  { %2365 = vmatpush1.bf16.msra.mxu1 %v7128_v38  ;;  %2058 = vmatprep.mubr.f32.mxu1 %v7996_v0  ;;  %v2797_v38 = vld [vmem:[%s9917_s13 + $0x8] sm:$0xff] }
 0x587   :  { %2226 = vmatmul.mubr.f32.gmra.mxu0 %v7653_v39  ;;  %2366 = vmatprep.subr.bf16.mxu1 %v7136_v42  ;;  %v2796_v42 = vld [vmem:[%s9917_s13] sm:$0xff] }
 0x588   :  { %2231 = vmatprep.mubr.f32.mxu0 %v7996_v0  ;;  %2578 = vmatpush1.bf16.msra.mxu0 %v7137_v12 }
 0x589   :  { %2059 = vmatmul.mubr.f32.gmra.mxu1 %v1895_v52  ;;  %2579 = vmatprep.subr.bf16.mxu0 %v7145_v45 }
 0x58a   :  { %2064 = vmatprep.mubr.f32.mxu1 %v7996_v0  ;;  %2367 = vmatpush1.bf16.msra.mxu1 %v7134_v51 }
 0x58b   :  { %2232 = vmatmul.mubr.f32.gmra.mxu0 %v7655_v9  ;;  %2368 = vmatprep.subr.bf16.mxu1 %v7142_v49 }
 0x58c   :  { %2237 = vmatprep.mubr.f32.mxu0 %v7996_v0  ;;  %2580 = vmatpush1.bf16.msra.mxu0 %v7143_v55 }
 0x58d   :  { %2065 = vmatmul.mubr.f32.gmra.mxu1 %v7657_v57  ;;  %2581 = vmatprep.subr.bf16.mxu0 %v7151_v28 }
 0x58e   :  { %2070 = vmatprep.mubr.f32.mxu1 %v7996_v0  ;;  %2369 = vmatpush1.bf16.msra.mxu1 %v7140_v46 }
 0x58f   :  { %2238 = vmatmul.mubr.f32.gmra.mxu0 %v7657_v57  ;;  %2370 = vmatprep.subr.bf16.mxu1 %v7148_v54 }
 0x590   :  { %2243 = vmatprep.mubr.f32.mxu0 %v7996_v0  ;;  %2582 = vmatpush1.bf16.msra.mxu0 %v7149_v63 }
 0x591   :  { %2071 = vmatmul.mubr.f32.gmra.mxu1 %v7659_v58 }
 0x592   :  { %2076 = vmatprep.mubr.f32.mxu1 %v7996_v0  ;;  %2371 = vmatpush1.bf16.msra.mxu1 %v7146_v59 }
 0x593   :  { %2244 = vmatmul.mubr.f32.gmra.mxu0 %v7659_v58  ;;  %6754 = vmatprep.subr.mxu1 %v2827_v62 }
 0x594   :  { %2599 = vmatprep.mubr.f32.mxu0 %v7996_v0 }
 0x595   :  { %2077 = vmatmul.mubr.f32.gmra.mxu1 %v1898_v61 }
 0x596   :  { %2388 = vmatprep.mubr.f32.mxu1 %v7996_v0 }
 0x597   :  { %2600 = vmatmul.mubr.f32.vlgmr.msra.gmra.mxu0 %v8861_v33 }
 0x598   :  { %2605 = vmatprep.mubr.f32.mxu0 %v7996_v0 }
 0x599   :  { %2389 = vmatmul.mubr.f32.vlgmr.msra.gmra.mxu1 %v8825_v21  ;;  %v2820_v21 = vld [vmem:[%s9917_s13 + $0xc0] sm:$0xff] }
 0x59a   :  { %2394 = vmatprep.mubr.f32.mxu1 %v7996_v0  ;;  %6755 = vmatpush3.msra.mxu1 %v2811_v30 }
 0x59b   :  { %2606 = vmatmul.mubr.f32.gmra.mxu0 %v7653_v39  ;;  %6756 = vmatprep.subr.mxu1 %v2826_v41 }
 0x59c   :  { %2611 = vmatprep.mubr.f32.mxu0 %v7996_v0 }
 0x59d   :  { %2395 = vmatmul.mubr.f32.gmra.mxu1 %v8861_v33  ;;  %v2814_v33 = vld [vmem:[%s9917_s13 + $0x90] sm:$0xff] }
 0x59e   :  { %2400 = vmatprep.mubr.f32.mxu1 %v7996_v0 }
 0x59f   :  { %2612 = vmatmul.mubr.f32.gmra.mxu0 %v1895_v52 }
 0x5a0   :  { %2617 = vmatprep.mubr.f32.mxu0 %v7996_v0 }
 0x5a1   :  { %2401 = vmatmul.mubr.f32.gmra.mxu1 %v7653_v39  ;;  %v2812_v39 = vld [vmem:[%s9917_s13 + $0x80] sm:$0xff] }
 0x5a2   :  { %2406 = vmatprep.mubr.f32.mxu1 %v7996_v0 }
 0x5a3   :  { %2618 = vmatmul.mubr.f32.gmra.mxu0 %v7657_v57 }
 0x5a4   :  { %2623 = vmatprep.mubr.f32.mxu0 %v7996_v0 }
 0x5a5   :  { %2407 = vmatmul.mubr.f32.gmra.mxu1 %v7655_v9 }
 0x5a6   :  { %2412 = vmatprep.mubr.f32.mxu1 %v7996_v0 }
 0x5a7   :  { %2624 = vmatmul.mubr.f32.gmra.mxu0 %v7659_v58 }
 0x5a8   :  { %2629 = vmatprep.mubr.f32.mxu0 %v7996_v0 }
 0x5a9   :  { %2413 = vmatmul.mubr.f32.gmra.mxu1 %v7657_v57 }
 0x5aa   :  { %2418 = vmatprep.mubr.f32.mxu1 %v7996_v0 }
 0x5ab   :  { %2630 = vmatmul.mubr.f32.gmra.mxu0 %v1898_v61 }
 0x5ac   :  { %2635 = vmatprep.mubr.f32.mxu0 %v7996_v0 }
 0x5ad   :  { %2419 = vmatmul.mubr.f32.gmra.mxu1 %v7659_v58 }
 0x5ae   :  { %2424 = vmatprep.mubr.f32.mxu1 %v7996_v0 }
 0x5af   :  { %2636 = vmatmul.mubr.f32.gmra.mxu0 %v2257_v3 }
 0x5b0   :  { %2641 = vmatprep.mubr.f32.mxu0 %v7996_v0 }
 0x5b1   :  { %2425 = vmatmul.mubr.f32.gmra.mxu1 %v1898_v61 }
 0x5b2   :  { %2430 = vmatprep.mubr.f32.mxu1 %v7996_v0 }
 0x5b3   :  { %2642 = vmatmul.mubr.f32.gmra.mxu0 %v2258_v23 }
 0x5b4   :  { %2647 = vmatprep.mubr.f32.mxu0 %v7996_v0 }
 0x5b5   :  { %2431 = vmatmul.mubr.f32.gmra.mxu1 %v2257_v3 }
 0x5b6   :  { %2436 = vmatprep.mubr.f32.mxu1 %v7996_v0 }
 0x5b7   :  { %2648 = vmatmul.mubr.f32.gmra.mxu0 %v8838_v4  ;;  %v2802_v4 = vld [vmem:[%s9917_s13 + $0x30] sm:$0xff] }
 0x5b8   :  { %3006 = vmatprep.mubr.f32.mxu0 %v7996_v0  ;;  %v2810_v0 = vld [vmem:[%s9917_s13 + $0x70] sm:$0xff] }
 0x5b9   :  { %2437 = vmatmul.mubr.f32.gmra.mxu1 %v2258_v23 }
 0x5ba   :  { %6757 = vmatpush3.msra.mxu1 %v2810_v0 }
 0x5bb   :  { %6758 = vmatprep.subr.mxu1 %v2825_v60 }
 0x5bc   :  { %6759 = vmatpush3.msra.mxu1 %v2809_v1 }
 0x5bd   :  { %6760 = vmatprep.subr.mxu1 %v2824_v13 }
 0x5be   :  { %6761 = vmatpush3.msra.mxu1 %v2808_v16 }
 0x5bf   :  { %6762 = vmatprep.subr.mxu1 %v2823_v2 }
 0x5c0   :  { %6763 = vmatpush3.msra.mxu1 %v2807_v6 }
 0x5c1   :  { %6764 = vmatprep.subr.mxu1 %v2822_v11 }
 0x5c2   :  { %6765 = vmatpush3.msra.mxu1 %v2806_v14 }
 0x5c3   :  { %6766 = vmatprep.subr.mxu1 %v2821_v15 }
 0x5c4   :  { %6767 = vmatpush3.msra.mxu1 %v2805_v19 }
 0x5c5   :  { %6768 = vmatprep.subr.mxu1 %v2820_v21 }
 0x5c6   :  { %6769 = vmatpush3.msra.mxu1 %v2804_v8 }
 0x5c7   :  { %6770 = vmatprep.subr.mxu1 %v2819_v22 }
 0x5c8   :  { %6771 = vmatpush3.msra.mxu1 %v2803_v25 }
 0x5c9   :  { %6772 = vmatprep.subr.mxu1 %v2818_v26 }
 0x5ca   :  { %6773 = vmatpush3.msra.mxu1 %v2802_v4 }
 0x5cb   :  { %6774 = vmatprep.subr.mxu1 %v2817_v29 }
 0x5cc   :  { %6775 = vmatpush3.msra.mxu1 %v2801_v31 }
 0x5cd   :  { %6776 = vmatprep.subr.mxu1 %v2816_v40 }
 0x5ce   :  { %6777 = vmatpush3.msra.mxu1 %v2800_v17 }
 0x5cf   :  { %6778 = vmatprep.subr.mxu1 %v2815_v20 }
 0x5d0   :  { %6779 = vmatpush3.msra.mxu1 %v2799_v32 }
 0x5d1   :  { %6780 = vmatprep.subr.mxu1 %v2814_v33 }
 0x5d2   :  { %6781 = vmatpush3.msra.mxu1 %v2798_v35 }
 0x5d3   :  { %6782 = vmatprep.subr.mxu1 %v2813_v37 }
 0x5d4   :  { %6783 = vmatpush3.msra.mxu1 %v2797_v38 }
 0x5d5   :  { %6784 = vmatprep.subr.mxu1 %v2812_v39 }
 0x5d6   :  { %6785 = vmatpush3.msra.mxu1 %v2796_v42 }
 0x633   :  { %v2197_v9 = vpop.f32.mrf.mxu0 }
 0x634   :  { %v2030_v12 = vpop.f32.mrf.mxu1 }
 0x635   :  { %v2199_v45 = vpop.f32.mrf.mxu0  ;;  %v2198_v32 = vadd.f32 %v2197_v9, %v2030_v12  ;;  %v9077_v9 = vrot.slane %v2672_v7, %v8290_v48 }
 0x636   :  { %v2032_v51 = vpop.f32.mrf.mxu1 }
 0x637   :  { %v2203_v52 = vpop.f32.mrf.mxu0  ;;  %v2200_v33 = vadd.f32 %v2199_v45, %v2032_v51 }
 0x639   :  { %v2036_v49 = vpop.f32.mrf.mxu1  ;;  %v2205_v55 = vpop.f32.mrf.mxu0 }
 0x63a   :  { %v2204_v20 = vadd.f32 %v2203_v52, %v2036_v49  ;;  %v9080_v49 = vrot.slane %v2672_v7, %v8295_v50 }
 0x63b   :  { %v2038_v28 = vpop.f32.mrf.mxu1  ;;  %v2209_v46 = vpop.f32.mrf.mxu0 }
 0x63c   :  { %v2206_v38 = vadd.f32 %v2205_v55, %v2038_v28 }
 0x63d   :  { %v2042_v54 = vpop.f32.mrf.mxu1  ;;  %v2211_v57 = vpop.f32.mrf.mxu0 }
 0x63e   :  { %v2210_v24 = vadd.f32 %v2209_v46, %v2042_v54 }
 0x63f   :  { %v2044_v63 = vpop.f32.mrf.mxu1  ;;  %v2215_v59 = vpop.f32.mrf.mxu0 }
 0x640   :  { %v2212_v52 = vadd.f32 %v2211_v57, %v2044_v63 }
 0x641   :  { %v2048_v58 = vpop.f32.mrf.mxu1  ;;  %v2217_v61 = vpop.f32.mrf.mxu0 }
 0x643   :  { %v2050_v3 = vpop.f32.mrf.mxu1  ;;  %v2221_v23 = vpop.f32.mrf.mxu0 }
 0x644   :  { %v2218_v63 = vadd.f32 %v2217_v61, %v2050_v3 }
 0x645   :  { %v2054_v62 = vpop.f32.mrf.mxu1  ;;  %v9039_v30 = vpop.f32.mrf.mxu0 }
 0x647   :  { %v9041_v41 = vpop.f32.mrf.mxu1  ;;  %v9043_v0 = vpop.f32.mrf.mxu0 }
 0x649   :  { %v2060_v60 = vpop.f32.mrf.mxu1  ;;  %v9045_v1 = vpop.f32.mrf.mxu0 }
 0x64b   :  { %v9047_v13 = vpop.f32.mrf.mxu1  ;;  %v9049_v16 = vpop.f32.mrf.mxu0 }
 0x64c   :  { %v2230_v3 = vadd.f32 %v9045_v1, %v9047_v13 }
 0x64d   :  { %v9051_v2 = vpop.f32.mrf.mxu1  ;;  %v9053_v6 = vpop.f32.mrf.mxu0 }
 0x64f   :  { %v9055_v11 = vpop.f32.mrf.mxu1  ;;  %v9057_v14 = vpop.f32.mrf.mxu0 }
 0x651   :  { %v9059_v15 = vpop.f32.mrf.mxu1  ;;  %v9061_v19 = vpop.f32.mrf.mxu0 }
 0x653   :  { %v9063_v21 = vpop.f32.mrf.mxu1  ;;  %v9065_v8 = vpop.f32.mrf.mxu0 }
 0x655   :  { %v9067_v22 = vpop.f32.mrf.mxu1  ;;  %v9069_v25 = vpop.f32.mrf.mxu0 }
 0x657   :  { %v9071_v26 = vpop.f32.mrf.mxu1  ;;  %v2601_v4 = vpop.f32.mrf.mxu0 }
 0x659   :  { %v2390_v29 = vpop.f32.mrf.mxu1  ;;  %v2603_v31 = vpop.f32.mrf.mxu0 }
 0x65a   :  { %v2443_v42 = vadd.f32 %v2390_v29, %v2198_v32 }
 0x65b   :  { %v2392_v40 = vpop.f32.mrf.mxu1  ;;  %v2607_v17 = vpop.f32.mrf.mxu0 }
 0x65c   :  { %v2444_v56 = vadd.f32 %v2392_v40, %v2200_v33  ;;  %v2654_v45 = vadd.f32 %v2601_v4, %v2443_v42 }
 0x65d   :  { %v2396_v35 = vpop.f32.mrf.mxu1  ;;  %v2609_v37 = vpop.f32.mrf.mxu0 }
 0x65e   :  { %v2445_v39 = vadd.f32 %v2396_v35, %v2204_v20  ;;  %v2655_v51 = vadd.f32 %v2603_v31, %v2444_v56  ;;  %v2216_v20 = vadd.f32 %v2215_v59, %v2048_v58  ;;  %v2222_v56 = vadd.f32 %v2221_v23, %v2054_v62 }
 0x65f   :  { %v2398_v47 = vpop.f32.mrf.mxu1  ;;  %v2613_v43 = vpop.f32.mrf.mxu0  ;;  %v9089_v7 = vadd.f32 %v9077_v9, %v2654_v45 }
 0x660   :  { %v2446_v36 = vadd.f32 %v2398_v47, %v2206_v38  ;;  %v2656_v53 = vadd.f32 %v2607_v17, %v2445_v39  ;;  %v9130_v39 = vadd.f32 %v9065_v8, %v9067_v22 }
 0x661   :  { %v2402_v44 = vpop.f32.mrf.mxu1  ;;  %v2615_v34 = vpop.f32.mrf.mxu0  ;;  %v2702_v1 = vmul.f32 %v8561_v10, %v9089_v7 }
 0x662   :  { %v2657_v12 = vadd.f32 %v2609_v37, %v2446_v36  ;;  %v2447_v55 = vadd.f32 %v2402_v44, %v2210_v24  ;;  %v9083_v47 = vadd.f32 %v9077_v9, %v2656_v53  ;;  %v9092_v44 = vadd.f32 %v9080_v49, %v2655_v51 }
 0x663   :  { %v2404_v28 = vpop.f32.mrf.mxu1  ;;  %v2619_v29 = vpop.f32.mrf.mxu0  ;;  %v2224_v53 = vadd.f32 %v9039_v30, %v9041_v41  ;;  %v2234_v30 = vadd.f32 %v9049_v16, %v9051_v2  ;;  %v2236_v41 = vadd.f32 %v9053_v6, %v9055_v11  ;;  %v2240_v11 = vadd.f32 %v9057_v14, %v9059_v15 }
 0x664   :  { %v2448_v40 = vadd.f32 %v2404_v28, %v2212_v52  ;;  %v2658_v46 = vadd.f32 %v2613_v43, %v2447_v55  ;;  %v9086_v17 = vadd.f32 %v9080_v49, %v2657_v12  ;;  %v2228_v43 = vadd.f32 %v9043_v0, %v2060_v60 }
 0x665   :  { %v2408_v54 = vpop.f32.mrf.mxu1  ;;  %v2621_v57 = vpop.f32.mrf.mxu0  ;;  %v2704_v23 = vmul.f32 %v8558_v5, %v9083_v47  ;;  %v2703_v13 = vmul.f32 %v8561_v10, %v9092_v44  ;;  %v2242_v10 = vadd.f32 %v9061_v19, %v9063_v21  ;;  %v2748_v28 = vmul.f32 %v2702_v1, %v2702_v1 }
 0x666   :  { %v2659_v36 = vadd.f32 %v2615_v34, %v2448_v40  ;;  %v2449_v24 = vadd.f32 %v2408_v54, %v2216_v20  ;;  %v9098_v61 = vadd.f32 %v9077_v9, %v2658_v46  ;;  %v2705_v0 = vmul.f32 %v8558_v5, %v9086_v17 }
 0x667   :  { %v2410_v59 = vpop.f32.mrf.mxu1  ;;  %v2625_v58 = vpop.f32.mrf.mxu0  ;;  %v2750_v42 = vmul.f32 %v2704_v23, %v2704_v23  ;;  %v2749_v14 = vmul.f32 %v2703_v13, %v2703_v13  ;;  %v2248_v46 = vadd.f32 %v9069_v25, %v9071_v26  ;;  %v2720_v54 = vadd.f32 %v2704_v23, %v2702_v1  ;;  %v9968_v1 = vld [vmem:[#allocation28_spill] sm:$0xff] }
 0x668   :  { %v9101_v34 = vadd.f32 %v9080_v49, %v2659_v36  ;;  %v2660_v62 = vadd.f32 %v2619_v29, %v2449_v24  ;;  %v2450_v4 = vadd.f32 %v2410_v59, %v2218_v63  ;;  %v2706_v16 = vmul.f32 %v8572_v18, %v9098_v61 }
 0x669   :  { %v2414_v31 = vpop.f32.mrf.mxu1  ;;  %v2627_v32 = vpop.f32.mrf.mxu0  ;;  %v2751_v45 = vmul.f32 %v2705_v0, %v2705_v0  ;;  %v2734_v63 = vadd.f32 %v2705_v0, %v2703_v13 }
 0x66a   :  { %v2451_v60 = vadd.f32 %v2414_v31, %v2222_v56  ;;  %v9118_v33 = vadd.f32 %v9077_v9, %v2660_v62  ;;  %v2661_v35 = vadd.f32 %v2621_v57, %v2450_v4  ;;  %v2707_v2 = vmul.f32 %v8572_v18, %v9101_v34 }
 0x66b   :  { %v2416_v37 = vpop.f32.mrf.mxu1  ;;  %v2631_v38 = vpop.f32.mrf.mxu0  ;;  %v2752_v22 = vmul.f32 %v2706_v16, %v2706_v16  ;;  %v2766_v57 = vadd.f32 %v2750_v42, %v2748_v28  ;;  %v2780_v24 = vadd.f32 %v2751_v45, %v2749_v14  ;;  %v2721_v31 = vadd.f32 %v2720_v54, %v2706_v16 }
 0x66c   :  { %v2662_v5 = vadd.f32 %v2625_v58, %v2451_v60  ;;  %v2452_v6 = vadd.f32 %v2416_v37, %v2224_v53  ;;  %v2708_v51 = vmul.f32 %v8582_v27, %v9118_v33  ;;  %v9138_v15 = vadd.f32 %v9080_v49, %v2661_v35  ;;  %v9967_v58 = vld [vmem:[#allocation27_spill] sm:$0xff] }
 0x66d   :  { %v2420_v52 = vpop.f32.mrf.mxu1  ;;  %v2633_v12 = vpop.f32.mrf.mxu0  ;;  %v2753_v29 = vmul.f32 %v2707_v2, %v2707_v2  ;;  %v2735_v0 = vadd.f32 %v2734_v63, %v2707_v2 }
 0x66e   :  { %v9135_v18 = vadd.f32 %v9077_v9, %v2662_v5  ;;  %v2453_v55 = vadd.f32 %v2420_v52, %v2228_v43  ;;  %v2663_v19 = vadd.f32 %v2627_v32, %v2452_v6  ;;  %v2754_v59 = vmul.f32 %v2708_v51, %v2708_v51 }
 0x66f   :  { %v2422_v21 = vpop.f32.mrf.mxu1  ;;  %v2637_v8 = vpop.f32.mrf.mxu0  ;;  %v2709_v62 = vmul.f32 %v8582_v27, %v9138_v15  ;;  %v2767_v32 = vadd.f32 %v2766_v57, %v2752_v22  ;;  %v2781_v60 = vadd.f32 %v2780_v24, %v2753_v29  ;;  %v2722_v5 = vadd.f32 %v2721_v31, %v2708_v51 }
 0x670   :  { %v2664_v40 = vadd.f32 %v2631_v38, %v2453_v55  ;;  %v2454_v20 = vadd.f32 %v2422_v21, %v2230_v3  ;;  %v2710_v53 = vmul.f32 %v9967_v58, %v9135_v18  ;;  %v9150_v3 = vadd.f32 %v9080_v49, %v2663_v19 }
 0x671   :  { %v2426_v36 = vpop.f32.mrf.mxu1  ;;  %v2639_v56 = vpop.f32.mrf.mxu0  ;;  %v2768_v6 = vadd.f32 %v2767_v32, %v2754_v59  ;;  %v2755_v28 = vmul.f32 %v2709_v62, %v2709_v62 }
 0x672   :  { %v9145_v43 = vadd.f32 %v9077_v9, %v2664_v40  ;;  %v2665_v25 = vadd.f32 %v2633_v12, %v2454_v20  ;;  %v2455_v26 = vadd.f32 %v2426_v36, %v2234_v30  ;;  %v2756_v42 = vmul.f32 %v2710_v53, %v2710_v53 }
 0x673   :  { %v2428_v23 = vpop.f32.mrf.mxu1  ;;  %v2643_v4 = vpop.f32.mrf.mxu0  ;;  %v2736_v12 = vadd.f32 %v2735_v0, %v2709_v62  ;;  %v2711_v16 = vmul.f32 %v9967_v58, %v9150_v3  ;;  %v2723_v14 = vadd.f32 %v2722_v5, %v2710_v53  ;;  %v9970_v58 = vld [vmem:[#allocation30_spill] sm:$0xff] }
 0x674   :  { %v2712_v13 = vmul.f32 %v9968_v1, %v9145_v43  ;;  %v9155_v35 = vadd.f32 %v9080_v49, %v2665_v25  ;;  %v2666_v37 = vadd.f32 %v2637_v8, %v2455_v26  ;;  %v2456_v38 = vadd.f32 %v2428_v23, %v2236_v41 }
 0x675   :  { %v2432_v27 = vpop.f32.mrf.mxu1  ;;  %v2645_v30 = vpop.f32.mrf.mxu0  ;;  %v2769_v40 = vadd.f32 %v2768_v6, %v2756_v42  ;;  %v2782_v23 = vadd.f32 %v2781_v60, %v2755_v28 }
 0x676   :  { %v2457_v52 = vadd.f32 %v2432_v27, %v2240_v11  ;;  %v9160_v2 = vadd.f32 %v9077_v9, %v2666_v37  ;;  %v2667_v45 = vadd.f32 %v2639_v56, %v2456_v38  ;;  %v2758_v41 = vmul.f32 %v2712_v13, %v2712_v13  ;;  %v9969_v11 = vld [vmem:[#allocation29_spill] sm:$0xff] }
 0x677   :  { %v2434_v55 = vpop.f32.mrf.mxu1  ;;  %v2713_v51 = vmul.f32 %v9968_v1, %v9155_v35  ;;  %v2649_v63 = vpop.f32.mrf.mxu0  ;;  %v2724_v36 = vadd.f32 %v2723_v14, %v2712_v13 }
 0x678   :  { %v2668_v19 = vadd.f32 %v2643_v4, %v2457_v52  ;;  %v2458_v21 = vadd.f32 %v2434_v55, %v2242_v10  ;;  %v2714_v8 = vmul.f32 %v9969_v11, %v9160_v2  ;;  %v9167_v22 = vadd.f32 %v9080_v49, %v2667_v45 }
 0x679   :  { %v2438_v29 = vpop.f32.mrf.mxu1  ;;  %v2757_v10 = vmul.f32 %v2711_v16, %v2711_v16  ;;  %v2737_v4 = vadd.f32 %v2736_v12, %v2711_v16  ;;  %v2770_v31 = vadd.f32 %v2769_v40, %v2758_v41  ;;  %v2651_v37 = vpop.f32.mrf.mxu0 }
 0x67a   :  { %v9170_v20 = vadd.f32 %v9077_v9, %v2668_v19  ;;  %v2669_v54 = vadd.f32 %v2645_v30, %v2458_v21  ;;  %v2459_v57 = vadd.f32 %v2438_v29, %v9130_v39  ;;  %v2760_v56 = vmul.f32 %v2714_v8, %v2714_v8 }
 0x67b   :  { %v2715_v24 = vmul.f32 %v9969_v11, %v9167_v22  ;;  %v2440_v59 = vpop.f32.mrf.mxu1  ;;  %v2759_v39 = vmul.f32 %v2713_v51, %v2713_v51  ;;  %v2725_v32 = vadd.f32 %v2724_v36, %v2714_v8  ;;  %v2783_v38 = vadd.f32 %v2782_v23, %v2757_v10 }
 0x67c   :  { %v2716_v53 = vmul.f32 %v9970_v58, %v9170_v20  ;;  %v9178_v62 = vadd.f32 %v9080_v49, %v2669_v54  ;;  %v2670_v25 = vadd.f32 %v2649_v63, %v2459_v57  ;;  %v2460_v26 = vadd.f32 %v2440_v59, %v2248_v46  ;;  %v9971_v46 = vld [vmem:[#allocation31_spill] sm:$0xff] }
 0x67d   :  { %v2738_v27 = vadd.f32 %v2737_v4, %v2713_v51  ;;  %v2761_v5 = vmul.f32 %v2715_v24, %v2715_v24  ;;  %v2771_v42 = vadd.f32 %v2770_v31, %v2760_v56  ;;  %v2784_v30 = vadd.f32 %v2783_v38, %v2759_v39 }
 0x67e   :  { %v2762_v0 = vmul.f32 %v2716_v53, %v2716_v53  ;;  %v2717_v1 = vmul.f32 %v9970_v58, %v9178_v62  ;;  %v9183_v13 = vadd.f32 %v9077_v9, %v2670_v25  ;;  %v2671_v6 = vadd.f32 %v2651_v37, %v2460_v26 }
 0x67f   :  { %v2726_v52 = vadd.f32 %v2725_v32, %v2716_v53  ;;  %v2739_v12 = vadd.f32 %v2738_v27, %v2715_v24  ;;  %v2785_v14 = vadd.f32 %v2784_v30, %v2761_v5  ;;  %v7152_v30 = vld [vmem:[#allocation12 + $0x2e0] ss:$16 sps:$4 sm:$0xff]  }
 0x680   :  { %v2718_v60 = vmul.f32 %v9971_v46, %v9183_v13  ;;  %v2763_v16 = vmul.f32 %v2717_v1, %v2717_v1  ;;  %v9188_v45 = vadd.f32 %v9080_v49, %v2671_v6  ;;  %v2772_v55 = vadd.f32 %v2771_v42, %v2762_v0  ;;  %v2938_v42 = vld [vmem:[%s9918_s14 + $0x18] sm:$0xff] }
 0x681   :  { %v2740_v19 = vadd.f32 %v2739_v12, %v2717_v1  ;;  %2970 = vmatprep.subr.mxu0 %v2938_v42  ;;  %v7154_v12 = vld [vmem:[#allocation12 + $0x2e4] ss:$16 sps:$4 sm:$0xff]  }
 0x682   :  { %v2727_v28 = vadd.f32 %v2726_v52, %v2718_v60  ;;  %v2764_v9 = vmul.f32 %v2718_v60, %v2718_v60  ;;  %v2719_v21 = vmul.f32 %v9971_v46, %v9188_v45  ;;  %v2786_v11 = vadd.f32 %v2785_v14, %v2763_v16  ;;  %v2937_v52 = vld [vmem:[%s9918_s14 + $0x10] sm:$0xff]  ;;  %v2936_v46 = vld [vmem:[%s9918_s14 + $0x8] sm:$0xff]  ;;  %v2935_v60 = vld [vmem:[%s9918_s14] sm:$0xff]  ;;  %3550 = vmatprep.subr.bf16.mxu1 %v7154_v12 }
 0x683   :  { %2971 = vmatpush1.msra.mxu0 %v2937_v52  ;;  %v7157_v16 = vld [vmem:[#allocation12 + $0x2ec] ss:$16 sps:$4 sm:$0xff]   ;;  %v7164_v14 = vld [vmem:[#allocation12 + $0x2a0] ss:$16 sps:$4 sm:$0xff]   ;;  %v7161_v12 = vld [vmem:[#allocation12 + $0x2c8] ss:$16 sps:$4 sm:$0xff]  }
 0x684   :  { %v2728_v41 = vrot.slane %v2727_v28, 4  ;;  %v2773_v51 = vadd.f32 %v2772_v55, %v2764_v9  ;;  %v2741_v8 = vadd.f32 %v2740_v19, %v2719_v21  ;;  %v2765_v29 = vmul.f32 %v2719_v21, %v2719_v21  ;;  %2972 = vmatprep.subr.mxu0 %v2936_v46  ;;  %v7160_v55 = vld [vmem:[#allocation12 + $0x2c4] ss:$16 sps:$4 sm:$0xff]   ;;  %v7170_v21 = vld [vmem:[#allocation12 + $0x280] ss:$16 sps:$4 sm:$0xff]  }
 0x685   :  { %2973 = vmatpush1.msra.mxu0 %v2935_v60  ;;  %v7166_v9 = vld [vmem:[#allocation12 + $0x2a4] ss:$16 sps:$4 sm:$0xff]   ;;  %v7155_v46 = vld [vmem:[#allocation12 + $0x2e8] ss:$16 sps:$4 sm:$0xff]   ;;  %v7163_v60 = vld [vmem:[#allocation12 + $0x2cc] ss:$16 sps:$4 sm:$0xff]  }
 0x686   :  { %v2729_v40 = vadd.f32 %v2728_v41, %v2727_v28  ;;  %v2774_v54 = vrot.slane %v2773_v51, 4  ;;  %v2742_v57 = vrot.slane %v2741_v8, 4  ;;  %v2787_v63 = vadd.f32 %v2786_v11, %v2765_v29  ;;  %3637 = vmatprep.subr.bf16.mxu0 %v7157_v16  ;;  %v7158_v28 = vld [vmem:[#allocation12 + $0x2c0] ss:$16 sps:$4 sm:$0xff]   ;;  %v7172_v19 = vld [vmem:[#allocation12 + $0x284] ss:$16 sps:$4 sm:$0xff]  }
 0x687   :  { %v7178_v41 = vld [vmem:[#allocation12 + $0x264] ss:$16 sps:$4 sm:$0xff]   ;;  %v7169_v16 = vld [vmem:[#allocation12 + $0x2ac] ss:$16 sps:$4 sm:$0xff]  }
 0x688   :  { %v2730_v10 = vrot.slane %v2729_v40, 2  ;;  %v2775_v49 = vadd.f32 %v2774_v54, %v2773_v51  ;;  %v2743_v36 = vadd.f32 %v2742_v57, %v2741_v8  ;;  %v2788_v56 = vrot.slane %v2787_v63, 4  ;;  %v7176_v51 = vld [vmem:[#allocation12 + $0x260] ss:$16 sps:$4 sm:$0xff]   ;;  %v7184_v11 = vld [vmem:[#allocation12 + $0x244] ss:$16 sps:$4 sm:$0xff]  }
 0x689   :  { %v7182_v8 = vld [vmem:[#allocation12 + $0x240] ss:$16 sps:$4 sm:$0xff]   ;;  %v7190_v29 = vld [vmem:[#allocation12 + $0x224] ss:$16 sps:$4 sm:$0xff]  }
 0x68a   :  { %v2776_v24 = vrot.slane %v2775_v49, 2  ;;  %v2744_v59 = vrot.slane %v2743_v36, 2  ;;  %v2789_v58 = vadd.f32 %v2788_v56, %v2787_v63  ;;  %v2731_v53 = vadd.f32 %v2730_v10, %v2729_v40  ;;  %v7188_v40 = vld [vmem:[#allocation12 + $0x220] ss:$16 sps:$4 sm:$0xff]   ;;  %v7196_v54 = vld [vmem:[#allocation12 + $0x204] ss:$16 sps:$4 sm:$0xff]  }
 0x68b   :  { %v7194_v57 = vld [vmem:[#allocation12 + $0x200] ss:$16 sps:$4 sm:$0xff]   ;;  %v7202_v63 = vld [vmem:[#allocation12 + $0x3e4] ss:$16 sps:$4 sm:$0xff]  }
 0x68c   :  { %v2777_v25 = vadd.f32 %v2776_v24, %v2775_v49  ;;  %v2745_v26 = vadd.f32 %v2744_v59, %v2743_v36  ;;  %v2790_v23 = vrot.slane %v2789_v58, 2  ;;  %v2732_v32 = vrot.slane %v2731_v53, 1  ;;  %v7200_v10 = vld [vmem:[#allocation12 + $0x3e0] ss:$16 sps:$4 sm:$0xff]   ;;  %v7208_v49 = vld [vmem:[#allocation12 + $0x3c4] ss:$16 sps:$4 sm:$0xff]  }
 0x68d   :  { %v7206_v36 = vld [vmem:[#allocation12 + $0x3c0] ss:$16 sps:$4 sm:$0xff]   ;;  %v7214_v56 = vld [vmem:[#allocation12 + $0x3a4] ss:$16 sps:$4 sm:$0xff]  }
 0x68e   :  { %v2778_v4 = vrot.slane %v2777_v25, 1  ;;  %v2746_v31 = vrot.slane %v2745_v26, 1  ;;  %v2791_v39 = vadd.f32 %v2790_v23, %v2789_v58  ;;  %v2733_v27 = vadd.f32 %v2732_v32, %v2731_v53  ;;  %v7212_v24 = vld [vmem:[#allocation12 + $0x3a0] ss:$16 sps:$4 sm:$0xff]   ;;  %v9972_v32 = vld [vmem:[#allocation32_spill] sm:$0xff] }
 0x690   :  { %v2792_v0 = vrot.slane %v2791_v39, 1  ;;  %v2779_v1 = vadd.f32 %v2778_v4, %v2777_v25  ;;  %v2747_v37 = vadd.f32 %v2746_v31, %v2745_v26 }
 0x692   :  { %v2793_v38 = vadd.f32 %v2792_v0, %v2791_v39  ;;  %v2794_v6 = vsel %vm1637_vm13, %v2733_v27, %v2779_v1 }
 0x694   :  { %v2795_v5 = vsel %vm1637_vm13, %v2747_v37, %v2793_v38  ;;  %v2904_v37 = vld [vmem:[#allocation9] sm:$0x1] }
 0x695   :  { %2892 = vmatprep.mubr.f32.mxu1 %v2795_v5  ;;  %v2925_v5 = vld [vmem:[#allocation10] sm:$0x1] }
 0x696   :  { %2893 = vmatmul.mubr.f32.vlgmr.msra.gmra.mxu1 %v2794_v6 }
 0x697   :  { %3551 = vmatpush1.bf16.msra.mxu1 %v7152_v30 }
 0x698   :  { %3552 = vmatprep.subr.bf16.mxu1 %v7160_v55  ;;  %v7167_v55 = vld [vmem:[#allocation12 + $0x2a8] ss:$16 sps:$4 sm:$0xff]  }
 0x69b   :  { %3553 = vmatpush1.bf16.msra.mxu1 %v7158_v28  ;;  %v7175_v28 = vld [vmem:[#allocation12 + $0x28c] ss:$16 sps:$4 sm:$0xff]  }
 0x69c   :  { %3554 = vmatprep.subr.bf16.mxu1 %v7166_v9  ;;  %v7173_v9 = vld [vmem:[#allocation12 + $0x288] ss:$16 sps:$4 sm:$0xff]  }
 0x69f   :  { %3555 = vmatpush1.bf16.msra.mxu1 %v7164_v14  ;;  %v7181_v14 = vld [vmem:[#allocation12 + $0x26c] ss:$16 sps:$4 sm:$0xff]  }
 0x6a0   :  { %3556 = vmatprep.subr.bf16.mxu1 %v7172_v19  ;;  %v7179_v19 = vld [vmem:[#allocation12 + $0x268] ss:$16 sps:$4 sm:$0xff]  }
 0x6a3   :  { %3557 = vmatpush1.bf16.msra.mxu1 %v7170_v21  ;;  %v7187_v21 = vld [vmem:[#allocation12 + $0x24c] ss:$16 sps:$4 sm:$0xff]  }
 0x6a4   :  { %3558 = vmatprep.subr.bf16.mxu1 %v7178_v41  ;;  %v7185_v41 = vld [vmem:[#allocation12 + $0x248] ss:$16 sps:$4 sm:$0xff]  }
 0x6a7   :  { %3559 = vmatpush1.bf16.msra.mxu1 %v7176_v51  ;;  %v7193_v51 = vld [vmem:[#allocation12 + $0x22c] ss:$16 sps:$4 sm:$0xff]  }
 0x6a8   :  { %3560 = vmatprep.subr.bf16.mxu1 %v7184_v11  ;;  %v7191_v11 = vld [vmem:[#allocation12 + $0x228] ss:$16 sps:$4 sm:$0xff]  }
 0x6ab   :  { %3561 = vmatpush1.bf16.msra.mxu1 %v7182_v8  ;;  %v7199_v8 = vld [vmem:[#allocation12 + $0x20c] ss:$16 sps:$4 sm:$0xff]  }
 0x6ac   :  { %3562 = vmatprep.subr.bf16.mxu1 %v7190_v29  ;;  %v7197_v29 = vld [vmem:[#allocation12 + $0x208] ss:$16 sps:$4 sm:$0xff]  }
 0x6af   :  { %3563 = vmatpush1.bf16.msra.mxu1 %v7188_v40  ;;  %v7205_v40 = vld [vmem:[#allocation12 + $0x3ec] ss:$16 sps:$4 sm:$0xff]  }
 0x6b0   :  { %3564 = vmatprep.subr.bf16.mxu1 %v7196_v54  ;;  %v7203_v54 = vld [vmem:[#allocation12 + $0x3e8] ss:$16 sps:$4 sm:$0xff]  }
 0x6b3   :  { %3565 = vmatpush1.bf16.msra.mxu1 %v7194_v57  ;;  %v7211_v57 = vld [vmem:[#allocation12 + $0x3cc] ss:$16 sps:$4 sm:$0xff]  }
 0x6b4   :  { %3566 = vmatprep.subr.bf16.mxu1 %v7202_v63  ;;  %v7209_v63 = vld [vmem:[#allocation12 + $0x3c8] ss:$16 sps:$4 sm:$0xff]  }
 0x6b7   :  { %3567 = vmatpush2.bf16.msra.mxu1 %v7200_v10  ;;  %v7217_v10 = vld [vmem:[#allocation12 + $0x3ac] ss:$16 sps:$4 sm:$0xff]  }
 0x6b8   :  { %3568 = vmatprep.subr.bf16.mxu1 %v7208_v49  ;;  %v7215_v49 = vld [vmem:[#allocation12 + $0x3a8] ss:$16 sps:$4 sm:$0xff]  }
 0x6bb   :  { %3569 = vmatpush2.bf16.msra.mxu1 %v7206_v36  ;;  %v7220_v36 = vld [vmem:[#allocation12 + $0x384] ss:$16 sps:$4 sm:$0xff]  }
 0x6bc   :  { %3570 = vmatprep.subr.bf16.mxu1 %v7214_v56  ;;  %v7223_v56 = vld [vmem:[#allocation12 + $0x38c] ss:$16 sps:$4 sm:$0xff]  }
 0x6bf   :  { %3571 = vmatpush2.bf16.msra.mxu1 %v7212_v24  ;;  %v7218_v24 = vld [vmem:[#allocation12 + $0x380] ss:$16 sps:$4 sm:$0xff]  }
 0x6c0   :  { %3572 = vmatprep.subr.bf16.mxu1 %v7220_v36 }
 0x6c3   :  { %3573 = vmatpush2.bf16.msra.mxu1 %v7218_v24 }
 0x756   :  { %v6786_v59 = vpop.f32.mrf.mxu1 }
 0x758   :  { %v6787_v58 = vpop.f32.mrf.mxu1 }
 0x759   :  { %v6788_v53 = vadd.f32 %v6787_v58, %v6786_v59  ;;  %v7221_v59 = vld [vmem:[#allocation12 + $0x388] ss:$16 sps:$4 sm:$0xff]   ;;  %v7226_v58 = vld [vmem:[#allocation12 + $0x364] ss:$16 sps:$4 sm:$0xff]  }
 0x75a   :  { %3574 = vmatprep.subr.bf16.mxu1 %v7226_v58 }
 0x75b   :  { %v2898_v25 = vmul.f32 0.0034722222, %v6788_v53  ;;  %v7229_v53 = vld [vmem:[#allocation12 + $0x36c] ss:$16 sps:$4 sm:$0xff]  }
 0x75d   :  { %v2899_v26 = vmul.f32 %v2898_v25, %v2898_v25 }
 0x75f   :  { %v2901_v23 = vrot.slane %v2899_v26, 7  ;;  %v7227_v26 = vld [vmem:[#allocation12 + $0x368] ss:$16 sps:$4 sm:$0xff]  }
 0x761   :  { %v2903_v4 = vsub.f32 %v2898_v25, %v2901_v23  ;;  %v7230_v23 = vld [vmem:[#allocation12 + $0x340] ss:$16 sps:$4 sm:$0xff]  }
 0x763   :  { %v2905_v31 = vadd.f32 1e-05, %v2903_v4  ;;  %v7232_v4 = vld [vmem:[#allocation12 + $0x344] ss:$16 sps:$4 sm:$0xff]  }
 0x765   :  { %7660 = vrsqrt.f32 %v2905_v31  ;;  %v7233_v31 = vld [vmem:[#allocation12 + $0x348] ss:$16 sps:$4 sm:$0xff]  }
 0x772   :  { %v7661_v39 = vpop.eup %7660 }
 0x773   :  { %v2914_v0 = vrot.slane %v7661_v39, %v9972_v32  ;;  %v7235_v39 = vld [vmem:[#allocation12 + $0x34c] ss:$16 sps:$4 sm:$0xff]  }
 0x775   :  { %v2915_v1 = vcombine.high %v2914_v0, %v2914_v0  ;;  %v7241_v0 = vld [vmem:[#allocation12 + $0x32c] ss:$16 sps:$4 sm:$0xff]  }
 0x777   :  { %v2922_v38 = vrot.slane %v2915_v1, %v9972_v32  ;;  %v7238_v32 = vld [vmem:[#allocation12 + $0x324] ss:$16 sps:$4 sm:$0xff]   ;;  %v7236_v1 = vld [vmem:[#allocation12 + $0x320] ss:$16 sps:$4 sm:$0xff]  }
 0x779   :  { %v2924_v27 = vmul.f32 %v2922_v38, %v2904_v37  ;;  %v7239_v37 = vld [vmem:[#allocation12 + $0x328] ss:$16 sps:$4 sm:$0xff]   ;;  %v7244_v38 = vld [vmem:[#allocation12 + $0x304] ss:$16 sps:$4 sm:$0xff]  }
 0x77b   :  { %v2926_v6 = vmul.f32 %v2924_v27, %v2898_v25  ;;  %v7224_v25 = vld [vmem:[#allocation12 + $0x360] ss:$16 sps:$4 sm:$0xff]  }
 0x77c   :  { %3575 = vmatpush2.bf16.msra.mxu1 %v7224_v25  ;;  %v7257_v25 = vld [vmem:[#allocation12 + $0xc8] ss:$16 sps:$4 sm:$0xff]  }
 0x77d   :  { %v2927_v42 = vsub.f32 %v2925_v5, %v2926_v6  ;;  %3576 = vmatprep.subr.bf16.mxu1 %v7232_v4  ;;  %v7242_v5 = vld [vmem:[#allocation12 + $0x300] ss:$16 sps:$4 sm:$0xff]   ;;  %v7245_v6 = vld [vmem:[#allocation12 + $0x308] ss:$16 sps:$4 sm:$0xff]  }
 0x77f   :  { %v2932_v52 = vrot.slane %v2927_v42, %v8290_v48  ;;  %v7250_v42 = vld [vmem:[#allocation12 + $0xe4] ss:$16 sps:$4 sm:$0xff]  }
 0x780   :  { %3577 = vmatpush2.bf16.msra.mxu1 %v7230_v23 }
 0x781   :  { %v2934_v30 = vsel %vm1637_vm13, %v2924_v27, %v2932_v52  ;;  %3578 = vmatprep.subr.bf16.mxu1 %v7238_v32  ;;  %v7247_v27 = vld [vmem:[#allocation12 + $0x30c] ss:$16 sps:$4 sm:$0xff]  }
 0x782   :  { %6361 = vmatmul.mubr.msk.f32.vlgmr.msra.gmra.mxu0 %vm647_vm1, %v2934_v30  ;;  %v7253_v52 = vld [vmem:[#allocation12 + $0xec] ss:$16 sps:$4 sm:$0xff]  }
 0x783   :  { %3638 = vmatpush1.bf16.msra.mxu0 %v7155_v46 }
 0x784   :  { %3639 = vmatprep.subr.bf16.mxu0 %v7163_v60  ;;  %3579 = vmatpush2.bf16.msra.mxu1 %v7236_v1 }
 0x785   :  { %3580 = vmatprep.subr.bf16.mxu1 %v7244_v38 }
 0x787   :  { %3640 = vmatpush1.bf16.msra.mxu0 %v7161_v12 }
 0x788   :  { %3641 = vmatprep.subr.bf16.mxu0 %v7169_v16  ;;  %3581 = vmatpush2.bf16.msra.mxu1 %v7242_v5 }
 0x789   :  { %4044 = vmatprep.subr.bf16.mxu1 %v7250_v42 }
 0x78b   :  { %3642 = vmatpush1.bf16.msra.mxu0 %v7167_v55 }
 0x78c   :  { %3643 = vmatprep.subr.bf16.mxu0 %v7175_v28 }
 0x78f   :  { %3644 = vmatpush1.bf16.msra.mxu0 %v7173_v9 }
 0x790   :  { %3645 = vmatprep.subr.bf16.mxu0 %v7181_v14 }
 0x793   :  { %3646 = vmatpush1.bf16.msra.mxu0 %v7179_v19 }
 0x794   :  { %3647 = vmatprep.subr.bf16.mxu0 %v7187_v21 }
 0x797   :  { %3648 = vmatpush1.bf16.msra.mxu0 %v7185_v41 }
 0x798   :  { %3649 = vmatprep.subr.bf16.mxu0 %v7193_v51 }
 0x79b   :  { %3650 = vmatpush1.bf16.msra.mxu0 %v7191_v11 }
 0x79c   :  { %3651 = vmatprep.subr.bf16.mxu0 %v7199_v8 }
 0x79f   :  { %3652 = vmatpush1.bf16.msra.mxu0 %v7197_v29 }
 0x7a0   :  { %3653 = vmatprep.subr.bf16.mxu0 %v7205_v40 }
 0x7a3   :  { %3654 = vmatpush2.bf16.msra.mxu0 %v7203_v54 }
 0x7a4   :  { %3655 = vmatprep.subr.bf16.mxu0 %v7211_v57 }
 0x7a7   :  { %3656 = vmatpush2.bf16.msra.mxu0 %v7209_v63 }
 0x7a8   :  { %3657 = vmatprep.subr.bf16.mxu0 %v7217_v10  ;;  %v7248_v10 = vld [vmem:[#allocation12 + $0xe0] ss:$16 sps:$4 sm:$0xff]  }
 0x7ab   :  { %3658 = vmatpush2.bf16.msra.mxu0 %v7215_v49  ;;  %v7251_v49 = vld [vmem:[#allocation12 + $0xe8] ss:$16 sps:$4 sm:$0xff]  }
 0x7ac   :  { %3659 = vmatprep.subr.bf16.mxu0 %v7223_v56  ;;  %v7259_v56 = vld [vmem:[#allocation12 + $0xcc] ss:$16 sps:$4 sm:$0xff]  }
 0x7af   :  { %3660 = vmatpush2.bf16.msra.mxu0 %v7221_v59 }
 0x7b0   :  { %3661 = vmatprep.subr.bf16.mxu0 %v7229_v53  ;;  %v7254_v53 = vld [vmem:[#allocation12 + $0xc0] ss:$16 sps:$4 sm:$0xff]  }
 0x7b3   :  { %3662 = vmatpush2.bf16.msra.mxu0 %v7227_v26 }
 0x7b4   :  { %3663 = vmatprep.subr.bf16.mxu0 %v7235_v39  ;;  %v7265_v39 = vld [vmem:[#allocation12 + $0xac] ss:$16 sps:$4 sm:$0xff]  }
 0x7b7   :  { %3664 = vmatpush2.bf16.msra.mxu0 %v7233_v31  ;;  %v7262_v31 = vld [vmem:[#allocation12 + $0xa4] ss:$16 sps:$4 sm:$0xff]  }
 0x7b8   :  { %3665 = vmatprep.subr.bf16.mxu0 %v7241_v0 }
 0x7bb   :  { %3666 = vmatpush2.bf16.msra.mxu0 %v7239_v37  ;;  %v7263_v37 = vld [vmem:[#allocation12 + $0xa8] ss:$16 sps:$4 sm:$0xff]  }
 0x7bc   :  { %3667 = vmatprep.subr.bf16.mxu0 %v7247_v27 }
 0x7bf   :  { %3668 = vmatpush2.bf16.msra.mxu0 %v7245_v6  ;;  %v7271_v6 = vld [vmem:[#allocation12 + $0x8c] ss:$16 sps:$4 sm:$0xff]  }
 0x7c0   :  { %4131 = vmatprep.subr.bf16.mxu0 %v7253_v52 }
 0x842   :  { %v3008_v46 = vpop.f32.mrf.mxu0 }
 0x843   :  { %v9212_v30 = vrot.slane %v3008_v46, %v8290_v48  ;;  %v9227_v14 = vrot.slane %v3008_v46, %v8295_v50  ;;  %v7266_v46 = vld [vmem:[#allocation12 + $0x80] ss:$16 sps:$4 sm:$0xff]  }
 0x844   :  { %v3010_v60 = vpop.f32.mrf.mxu0 }
 0x845   :  { %v9215_v12 = vrot.slane %v3010_v60, %v8290_v48  ;;  %v3023_v55 = vmul.f32 %v9212_v30, %v9083_v47  ;;  %v9224_v9 = vrot.slane %v3010_v60, %v8295_v50  ;;  %v3025_v21 = vmul.f32 %v9212_v30, %v9098_v61  ;;  %v7269_v60 = vld [vmem:[#allocation12 + $0x88] ss:$16 sps:$4 sm:$0xff]  }
 0x846   :  { %v3027_v47 = vmul.f32 %v9212_v30, %v9118_v33  ;;  %v3029_v33 = vmul.f32 %v9212_v30, %v9135_v18  ;;  %v3031_v54 = vmul.f32 %v9212_v30, %v9145_v43  ;;  %v3035_v23 = vmul.f32 %v9212_v30, %v9170_v20 }
 0x847   :  { %v3024_v16 = vmul.f32 %v9215_v12, %v9086_v17  ;;  %v3026_v28 = vmul.f32 %v9215_v12, %v9101_v34  ;;  %v3028_v19 = vmul.f32 %v9215_v12, %v9138_v15  ;;  %v3049_v41 = vadd.f32 %v9227_v14, %v3023_v55  ;;  %v7277_v55 = vld [vmem:[#allocation12 + $0x6c] ss:$16 sps:$4 sm:$0xff]  }
 0x848   :  { %v3051_v11 = vadd.f32 %v9227_v14, %v3025_v21  ;;  %v3053_v8 = vadd.f32 %v9227_v14, %v3027_v47  ;;  %v3030_v61 = vmul.f32 %v9215_v12, %v9150_v3  ;;  %v3032_v15 = vmul.f32 %v9215_v12, %v9155_v35  ;;  %v7280_v47 = vld [vmem:[#allocation12 + $0x44] ss:$16 sps:$4 sm:$0xff]  }
 0x849   :  { %v3050_v17 = vadd.f32 %v9224_v9, %v3024_v16  ;;  %v3052_v34 = vadd.f32 %v9224_v9, %v3026_v28  ;;  %v3054_v51 = vadd.f32 %v9224_v9, %v3028_v19  ;;  %v3034_v29 = vmul.f32 %v9215_v12, %v9167_v22  ;;  %v7274_v16 = vld [vmem:[#allocation12 + $0x64] ss:$16 sps:$4 sm:$0xff]   ;;  %v7275_v19 = vld [vmem:[#allocation12 + $0x68] ss:$16 sps:$4 sm:$0xff]  }
 0x84a   :  { %v3056_v40 = vadd.f32 %v9224_v9, %v3030_v61  ;;  %v3033_v3 = vmul.f32 %v9212_v30, %v9160_v2  ;;  %v3055_v57 = vadd.f32 %v9227_v14, %v3029_v33  ;;  %v3058_v63 = vadd.f32 %v9224_v9, %v3032_v15  ;;  %v7256_v2 = vld [vmem:[#allocation12 + $0xc4] ss:$16 sps:$4 sm:$0xff]   ;;  %v7289_v33 = vld [vmem:[#allocation12 + $0x2c] ss:$16 sps:$4 sm:$0xff]  }
 0x84b   :  { %7662 = vtanh.f32 %v3050_v17  ;;  %v3060_v18 = vadd.f32 %v9224_v9, %v3034_v29  ;;  %v3057_v35 = vadd.f32 %v9227_v14, %v3031_v54  ;;  %v3036_v59 = vmul.f32 %v9215_v12, %v9178_v62  ;;  %v7286_v61 = vld [vmem:[#allocation12 + $0x24] ss:$16 sps:$4 sm:$0xff]   ;;  %v7284_v29 = vld [vmem:[#allocation12 + $0x20] ss:$16 sps:$4 sm:$0xff]  }
 0x84c   :  { %7664 = vtanh.f32 %v3049_v41  ;;  %v3059_v36 = vadd.f32 %v9227_v14, %v3033_v3  ;;  %v3022_v4 = vmul.f32 %v9215_v12, %v9092_v44  ;;  %v3038_v32 = vmul.f32 %v9215_v12, %v9188_v45  ;;  %v7260_v44 = vld [vmem:[#allocation12 + $0xa0] ss:$16 sps:$4 sm:$0xff]   ;;  %v7283_v41 = vld [vmem:[#allocation12 + $0x4c] ss:$16 sps:$4 sm:$0xff]   ;;  %v7292_v3 = vld [vmem:[#allocation12 + $0x4] ss:$16 sps:$4 sm:$0xff]  }
 0x84d   :  { %7666 = vtanh.f32 %v3052_v34  ;;  %v3062_v0 = vadd.f32 %v9224_v9, %v3036_v59  ;;  %v3021_v1 = vmul.f32 %v9212_v30, %v9089_v7  ;;  %v3037_v38 = vmul.f32 %v9212_v30, %v9183_v13  ;;  %v7268_v7 = vld [vmem:[#allocation12 + $0x84] ss:$16 sps:$4 sm:$0xff]  }
 0x84e   :  { %7668 = vtanh.f32 %v3054_v51  ;;  %v3061_v45 = vadd.f32 %v9227_v14, %v3035_v23  ;;  %v3048_v5 = vadd.f32 %v9224_v9, %v3022_v4  ;;  %v3064_v42 = vadd.f32 %v9224_v9, %v3038_v32  ;;  %v7278_v51 = vld [vmem:[#allocation12 + $0x40] ss:$16 sps:$4 sm:$0xff]   ;;  %v7304_v4 = vld [vmem:[#allocation12 + $0x1c4] ss:$16 sps:$4 sm:$0xff]   ;;  %v7305_v32 = vld [vmem:[#allocation12 + $0x1c8] ss:$16 sps:$4 sm:$0xff]  }
 0x84f   :  { %7670 = vtanh.f32 %v3051_v11  ;;  %v3047_v52 = vadd.f32 %v9227_v14, %v3021_v1  ;;  %v3063_v30 = vadd.f32 %v9227_v14, %v3037_v38  ;;  %v7272_v14 = vld [vmem:[#allocation12 + $0x60] ss:$16 sps:$4 sm:$0xff]   ;;  %v7281_v11 = vld [vmem:[#allocation12 + $0x48] ss:$16 sps:$4 sm:$0xff]   ;;  %v7313_v1 = vld [vmem:[#allocation12 + $0x1ac] ss:$16 sps:$4 sm:$0xff]  }
 0x850   :  { %7672 = vtanh.f32 %v3053_v8  ;;  %v7316_v38 = vld [vmem:[#allocation12 + $0x184] ss:$16 sps:$4 sm:$0xff]  }
 0x851   :  { %7674 = vtanh.f32 %v3056_v40  ;;  %v7287_v40 = vld [vmem:[#allocation12 + $0x28] ss:$16 sps:$4 sm:$0xff]  }
 0x852   :  { %7676 = vtanh.f32 %v3055_v57  ;;  %v7295_v57 = vld [vmem:[#allocation12 + $0xc] ss:$16 sps:$4 sm:$0xff]  }
 0x853   :  { %7678 = vtanh.f32 %v3058_v63 }
 0x854   :  { %7680 = vtanh.f32 %v3060_v18 }
 0x855   :  { %7682 = vtanh.f32 %v3057_v35  ;;  %v7290_v35 = vld [vmem:[#allocation12] ss:$16 sps:$4 sm:$0xff]  }
 0x856   :  { %7684 = vtanh.f32 %v3059_v36 }
 0x857   :  { %7686 = vtanh.f32 %v3062_v0  ;;  %v7310_v0 = vld [vmem:[#allocation12 + $0x1a4] ss:$16 sps:$4 sm:$0xff]  }
 0x858   :  { %v9258_v22 = vpop.eup %7662  ;;  %7688 = vtanh.f32 %v3061_v45  ;;  %v7319_v45 = vld [vmem:[#allocation12 + $0x18c] ss:$16 sps:$4 sm:$0xff]  }
 0x859   :  { %v9261_v43 = vpop.eup %7664  ;;  %3582 = vmatprep.mubr.f32.mxu1 %v9258_v22  ;;  %3669 = vmatprep.mubr.f32.mxu0 %v9258_v22  ;;  %7690 = vtanh.f32 %v3048_v5  ;;  %v7314_v5 = vld [vmem:[#allocation12 + $0x180] ss:$16 sps:$4 sm:$0xff]  }
 0x85a   :  { %v9265_v24 = vpop.eup %7666  ;;  %3583 = vmatmul.mubr.f32.vlgmr.msra.gmra.mxu1 %v9261_v43  ;;  %3670 = vmatmul.mubr.f32.vlgmr.msra.gmra.mxu0 %v9261_v43  ;;  %7692 = vtanh.f32 %v3064_v42  ;;  %v7325_v42 = vld [vmem:[#allocation12 + $0x16c] ss:$16 sps:$4 sm:$0xff]  }
 0x85b   :  { %v9271_v58 = vpop.eup %7668  ;;  %4045 = vmatpush1.bf16.msra.mxu1 %v7248_v10  ;;  %4132 = vmatpush1.bf16.msra.mxu0 %v7251_v49  ;;  %7694 = vtanh.f32 %v3047_v52  ;;  %v7293_v10 = vld [vmem:[#allocation12 + $0x8] ss:$16 sps:$4 sm:$0xff]   ;;  %v7320_v52 = vld [vmem:[#allocation12 + $0x160] ss:$16 sps:$4 sm:$0xff]  }
 0x85c   :  { %v9273_v26 = vpop.eup %7670  ;;  %3588 = vmatprep.mubr.f32.mxu1 %v9265_v24  ;;  %3675 = vmatprep.mubr.f32.mxu0 %v9265_v24  ;;  %v9289_v20 = vmul.f32 0.0, %v9271_v58  ;;  %7696 = vtanh.f32 %v3063_v30  ;;  %v7331_v30 = vld [vmem:[#allocation12 + $0x14c] ss:$16 sps:$4 sm:$0xff]  }
 0x85d   :  { %v9279_v62 = vpop.eup %7672  ;;  %4046 = vmatprep.subr.bf16.mxu1 %v7256_v2  ;;  %4133 = vmatprep.subr.bf16.mxu0 %v7259_v56  ;;  %v7298_v2 = vld [vmem:[#allocation12 + $0x1e4] ss:$16 sps:$4 sm:$0xff]   ;;  %v7301_v56 = vld [vmem:[#allocation12 + $0x1ec] ss:$16 sps:$4 sm:$0xff]  }
 0x85e   :  { %3589 = vmatmul.mubr.f32.gmra.mxu1 %v9273_v26  ;;  %3676 = vmatmul.mubr.f32.gmra.mxu0 %v9273_v26  ;;  %v9299_v27 = vmul.f32 0.0, %v9279_v62  ;;  %v9305_v13 = vpop.eup %7674 }
 0x85f   :  { %4047 = vmatpush1.bf16.msra.mxu1 %v7254_v53  ;;  %4134 = vmatpush1.bf16.msra.mxu0 %v7257_v25  ;;  %v9311_v12 = vpop.eup %7676  ;;  %v7296_v53 = vld [vmem:[#allocation12 + $0x1e0] ss:$16 sps:$4 sm:$0xff]   ;;  %v7299_v25 = vld [vmem:[#allocation12 + $0x1e8] ss:$16 sps:$4 sm:$0xff]  }
 0x860   :  { %3594 = vmatprep.mubr.f32.mxu1 %v9289_v20  ;;  %3681 = vmatprep.mubr.f32.mxu0 %v9289_v20  ;;  %v9313_v28 = vpop.eup %7678 }
 0x861   :  { %4048 = vmatprep.subr.bf16.mxu1 %v7262_v31  ;;  %4135 = vmatprep.subr.bf16.mxu0 %v7265_v39  ;;  %v9317_v9 = vpop.eup %7680  ;;  %v7307_v31 = vld [vmem:[#allocation12 + $0x1cc] ss:$16 sps:$4 sm:$0xff]   ;;  %v7302_v39 = vld [vmem:[#allocation12 + $0x1c0] ss:$16 sps:$4 sm:$0xff]  }
 0x862   :  { %3595 = vmatmul.mubr.f32.gmra.mxu1 %v9299_v27  ;;  %3682 = vmatmul.mubr.f32.gmra.mxu0 %v9299_v27  ;;  %v9319_v21 = vpop.eup %7682  ;;  %v9328_v34 = vmul.f32 0.0, %v9317_v9 }
 0x863   :  { %4049 = vmatpush1.bf16.msra.mxu1 %v7260_v44  ;;  %4136 = vmatpush1.bf16.msra.mxu0 %v7263_v37  ;;  %v9323_v17 = vpop.eup %7684  ;;  %v7308_v44 = vld [vmem:[#allocation12 + $0x1a0] ss:$16 sps:$4 sm:$0xff]   ;;  %v7311_v37 = vld [vmem:[#allocation12 + $0x1a8] ss:$16 sps:$4 sm:$0xff]  }
 0x864   :  { %3600 = vmatprep.mubr.f32.mxu1 %v9305_v13  ;;  %3687 = vmatprep.mubr.f32.mxu0 %v9305_v13  ;;  %v9333_v8 = vmul.f32 0.0, %v9323_v17  ;;  %v9337_v15 = vpop.eup %7686 }
 0x865   :  { %4050 = vmatprep.subr.bf16.mxu1 %v7268_v7  ;;  %4137 = vmatprep.subr.bf16.mxu0 %v7271_v6  ;;  %v9341_v54 = vpop.eup %7688  ;;  %v7317_v7 = vld [vmem:[#allocation12 + $0x188] ss:$16 sps:$4 sm:$0xff]   ;;  %v7322_v6 = vld [vmem:[#allocation12 + $0x164] ss:$16 sps:$4 sm:$0xff]  }
 0x866   :  { %3601 = vmatmul.mubr.f32.gmra.mxu1 %v9311_v12  ;;  %3688 = vmatmul.mubr.f32.gmra.mxu0 %v9311_v12  ;;  %v7691_v63 = vpop.eup %7690 }
 0x867   :  { %4051 = vmatpush1.bf16.msra.mxu1 %v7266_v46  ;;  %4138 = vmatpush1.bf16.msra.mxu0 %v7269_v60  ;;  %v9345_v18 = vpop.eup %7692  ;;  %v9355_v59 = vmul.f32 0.0, %v7691_v63  ;;  %v7323_v46 = vld [vmem:[#allocation12 + $0x168] ss:$16 sps:$4 sm:$0xff]   ;;  %v7328_v60 = vld [vmem:[#allocation12 + $0x144] ss:$16 sps:$4 sm:$0xff]  }
 0x868   :  { %3606 = vmatprep.mubr.f32.mxu1 %v9313_v28  ;;  %3693 = vmatprep.mubr.f32.mxu0 %v9313_v28  ;;  %v9347_v49 = vpop.eup %7694 }
 0x869   :  { %4052 = vmatprep.subr.bf16.mxu1 %v7274_v16  ;;  %4139 = vmatprep.subr.bf16.mxu0 %v7277_v55  ;;  %v9351_v36 = vpop.eup %7696  ;;  %v9360_v23 = vmul.f32 0.0, %v9347_v49  ;;  %v7326_v16 = vld [vmem:[#allocation12 + $0x140] ss:$16 sps:$4 sm:$0xff]   ;;  %v7329_v55 = vld [vmem:[#allocation12 + $0x148] ss:$16 sps:$4 sm:$0xff]  }
 0x86a   :  { %3607 = vmatmul.mubr.f32.gmra.mxu1 %v9319_v21  ;;  %3694 = vmatmul.mubr.f32.gmra.mxu0 %v9319_v21 }
 0x86b   :  { %4053 = vmatpush1.bf16.msra.mxu1 %v7272_v14  ;;  %4140 = vmatpush1.bf16.msra.mxu0 %v7275_v19  ;;  %v7334_v14 = vld [vmem:[#allocation12 + $0x124] ss:$16 sps:$4 sm:$0xff]   ;;  %v7337_v19 = vld [vmem:[#allocation12 + $0x12c] ss:$16 sps:$4 sm:$0xff]  }
 0x86c   :  { %3612 = vmatprep.mubr.f32.mxu1 %v9328_v34  ;;  %3699 = vmatprep.mubr.f32.mxu0 %v9328_v34 }
 0x86d   :  { %4054 = vmatprep.subr.bf16.mxu1 %v7280_v47  ;;  %4141 = vmatprep.subr.bf16.mxu0 %v7283_v41  ;;  %v7332_v47 = vld [vmem:[#allocation12 + $0x120] ss:$16 sps:$4 sm:$0xff]   ;;  %v7335_v41 = vld [vmem:[#allocation12 + $0x128] ss:$16 sps:$4 sm:$0xff]  }
 0x86e   :  { %3613 = vmatmul.mubr.f32.gmra.mxu1 %v9333_v8  ;;  %3700 = vmatmul.mubr.f32.gmra.mxu0 %v9333_v8 }
 0x86f   :  { %4055 = vmatpush1.bf16.msra.mxu1 %v7278_v51  ;;  %4142 = vmatpush1.bf16.msra.mxu0 %v7281_v11  ;;  %v7340_v51 = vld [vmem:[#allocation12 + $0x104] ss:$16 sps:$4 sm:$0xff]   ;;  %v7343_v11 = vld [vmem:[#allocation12 + $0x10c] ss:$16 sps:$4 sm:$0xff]  }
 0x870   :  { %3618 = vmatprep.mubr.f32.mxu1 %v9337_v15  ;;  %3705 = vmatprep.mubr.f32.mxu0 %v9337_v15 }
 0x871   :  { %4056 = vmatprep.subr.bf16.mxu1 %v7286_v61  ;;  %4143 = vmatprep.subr.bf16.mxu0 %v7289_v33  ;;  %v7338_v61 = vld [vmem:[#allocation12 + $0x100] ss:$16 sps:$4 sm:$0xff]   ;;  %v7341_v33 = vld [vmem:[#allocation12 + $0x108] ss:$16 sps:$4 sm:$0xff]  }
 0x872   :  { %3619 = vmatmul.mubr.f32.gmra.mxu1 %v9341_v54  ;;  %3706 = vmatmul.mubr.f32.gmra.mxu0 %v9341_v54 }
 0x873   :  { %4057 = vmatpush1.bf16.msra.mxu1 %v7284_v29  ;;  %4144 = vmatpush1.bf16.msra.mxu0 %v7287_v40  ;;  %v7346_v29 = vld [vmem:[#allocation12 + $0x4e4] ss:$16 sps:$4 sm:$0xff]   ;;  %v7349_v40 = vld [vmem:[#allocation12 + $0x4ec] ss:$16 sps:$4 sm:$0xff]  }
 0x874   :  { %3624 = vmatprep.mubr.f32.mxu1 %v9345_v18  ;;  %3711 = vmatprep.mubr.f32.mxu0 %v9345_v18 }
 0x875   :  { %4058 = vmatprep.subr.bf16.mxu1 %v7292_v3  ;;  %4145 = vmatprep.subr.bf16.mxu0 %v7295_v57  ;;  %v7344_v3 = vld [vmem:[#allocation12 + $0x4e0] ss:$16 sps:$4 sm:$0xff]   ;;  %v7347_v57 = vld [vmem:[#allocation12 + $0x4e8] ss:$16 sps:$4 sm:$0xff]  }
 0x876   :  { %3625 = vmatmul.mubr.f32.gmra.mxu1 %v9351_v36  ;;  %3712 = vmatmul.mubr.f32.gmra.mxu0 %v9351_v36 }
 0x877   :  { %4059 = vmatpush1.bf16.msra.mxu1 %v7290_v35  ;;  %4146 = vmatpush1.bf16.msra.mxu0 %v7293_v10  ;;  %v7355_v35 = vld [vmem:[#allocation12 + $0x4cc] ss:$16 sps:$4 sm:$0xff]   ;;  %v7350_v10 = vld [vmem:[#allocation12 + $0x4c0] ss:$16 sps:$4 sm:$0xff]  }
 0x878   :  { %3630 = vmatprep.mubr.f32.mxu1 %v9355_v59  ;;  %3717 = vmatprep.mubr.f32.mxu0 %v9355_v59 }
 0x879   :  { %4060 = vmatprep.subr.bf16.mxu1 %v7298_v2  ;;  %4147 = vmatprep.subr.bf16.mxu0 %v7301_v56  ;;  %v7353_v2 = vld [vmem:[#allocation12 + $0x4c8] ss:$16 sps:$4 sm:$0xff]   ;;  %v7358_v56 = vld [vmem:[#allocation12 + $0x4a4] ss:$16 sps:$4 sm:$0xff]  }
 0x87a   :  { %3631 = vmatmul.mubr.f32.gmra.mxu1 %v9360_v23  ;;  %3718 = vmatmul.mubr.f32.gmra.mxu0 %v9360_v23 }
 0x87b   :  { %4061 = vmatpush2.bf16.msra.mxu1 %v7296_v53  ;;  %4148 = vmatpush2.bf16.msra.mxu0 %v7299_v25  ;;  %v7361_v53 = vld [vmem:[#allocation12 + $0x4ac] ss:$16 sps:$4 sm:$0xff]   ;;  %v7359_v25 = vld [vmem:[#allocation12 + $0x4a8] ss:$16 sps:$4 sm:$0xff]  }
 0x87c   :  { %4076 = vmatprep.mubr.f32.mxu1 %v7691_v63  ;;  %4163 = vmatprep.mubr.f32.mxu0 %v7691_v63  ;;  %v7352_v63 = vld [vmem:[#allocation12 + $0x4c4] ss:$16 sps:$4 sm:$0xff]  }
 0x87d   :  { %4062 = vmatprep.subr.bf16.mxu1 %v7304_v4  ;;  %4149 = vmatprep.subr.bf16.mxu0 %v7307_v31  ;;  %v7364_v4 = vld [vmem:[#allocation12 + $0x484] ss:$16 sps:$4 sm:$0xff]   ;;  %v7367_v31 = vld [vmem:[#allocation12 + $0x48c] ss:$16 sps:$4 sm:$0xff]  }
 0x87f   :  { %4063 = vmatpush2.bf16.msra.mxu1 %v7302_v39  ;;  %4150 = vmatpush2.bf16.msra.mxu0 %v7305_v32  ;;  %v7362_v39 = vld [vmem:[#allocation12 + $0x480] ss:$16 sps:$4 sm:$0xff]   ;;  %v7365_v32 = vld [vmem:[#allocation12 + $0x488] ss:$16 sps:$4 sm:$0xff]  }
 0x880   :  { %4064 = vmatprep.subr.bf16.mxu1 %v7310_v0  ;;  %4151 = vmatprep.subr.bf16.mxu0 %v7313_v1  ;;  %v7370_v0 = vld [vmem:[#allocation12 + $0x464] ss:$16 sps:$4 sm:$0xff]   ;;  %v7373_v1 = vld [vmem:[#allocation12 + $0x46c] ss:$16 sps:$4 sm:$0xff]  }
 0x883   :  { %4065 = vmatpush2.bf16.msra.mxu1 %v7308_v44  ;;  %4152 = vmatpush2.bf16.msra.mxu0 %v7311_v37  ;;  %v7368_v44 = vld [vmem:[#allocation12 + $0x460] ss:$16 sps:$4 sm:$0xff]   ;;  %v7371_v37 = vld [vmem:[#allocation12 + $0x468] ss:$16 sps:$4 sm:$0xff]  }
 0x884   :  { %4066 = vmatprep.subr.bf16.mxu1 %v7316_v38  ;;  %4153 = vmatprep.subr.bf16.mxu0 %v7319_v45  ;;  %v7376_v38 = vld [vmem:[#allocation12 + $0x444] ss:$16 sps:$4 sm:$0xff]   ;;  %v7379_v45 = vld [vmem:[#allocation12 + $0x44c] ss:$16 sps:$4 sm:$0xff]  }
 0x887   :  { %4067 = vmatpush2.bf16.msra.mxu1 %v7314_v5  ;;  %4154 = vmatpush2.bf16.msra.mxu0 %v7317_v7  ;;  %v7374_v5 = vld [vmem:[#allocation12 + $0x440] ss:$16 sps:$4 sm:$0xff]   ;;  %v7377_v7 = vld [vmem:[#allocation12 + $0x448] ss:$16 sps:$4 sm:$0xff]  }
 0x888   :  { %4068 = vmatprep.subr.bf16.mxu1 %v7322_v6  ;;  %4155 = vmatprep.subr.bf16.mxu0 %v7325_v42  ;;  %v7382_v6 = vld [vmem:[#allocation12 + $0x424] ss:$16 sps:$4 sm:$0xff]   ;;  %v7385_v42 = vld [vmem:[#allocation12 + $0x42c] ss:$16 sps:$4 sm:$0xff]  }
 0x88b   :  { %4069 = vmatpush2.bf16.msra.mxu1 %v7320_v52  ;;  %4156 = vmatpush2.bf16.msra.mxu0 %v7323_v46  ;;  %v7380_v52 = vld [vmem:[#allocation12 + $0x420] ss:$16 sps:$4 sm:$0xff]   ;;  %v7383_v46 = vld [vmem:[#allocation12 + $0x428] ss:$16 sps:$4 sm:$0xff]  }
 0x88c   :  { %4070 = vmatprep.subr.bf16.mxu1 %v7328_v60  ;;  %4157 = vmatprep.subr.bf16.mxu0 %v7331_v30  ;;  %v7388_v60 = vld [vmem:[#allocation12 + $0x404] ss:$16 sps:$4 sm:$0xff]   ;;  %v7391_v30 = vld [vmem:[#allocation12 + $0x40c] ss:$16 sps:$4 sm:$0xff]  }
 0x88f   :  { %4071 = vmatpush2.bf16.msra.mxu1 %v7326_v16  ;;  %4158 = vmatpush2.bf16.msra.mxu0 %v7329_v55  ;;  %v7386_v16 = vld [vmem:[#allocation12 + $0x400] ss:$16 sps:$4 sm:$0xff]   ;;  %v7389_v55 = vld [vmem:[#allocation12 + $0x408] ss:$16 sps:$4 sm:$0xff]  }
 0x890   :  { %4072 = vmatprep.subr.bf16.mxu1 %v7334_v14  ;;  %4159 = vmatprep.subr.bf16.mxu0 %v7337_v19  ;;  %v7394_v14 = vld [vmem:[#allocation12 + $0x5e4] ss:$16 sps:$4 sm:$0xff]   ;;  %v7397_v19 = vld [vmem:[#allocation12 + $0x5ec] ss:$16 sps:$4 sm:$0xff]  }
 0x893   :  { %4073 = vmatpush2.bf16.msra.mxu1 %v7332_v47  ;;  %4160 = vmatpush2.bf16.msra.mxu0 %v7335_v41  ;;  %v7392_v47 = vld [vmem:[#allocation12 + $0x5e0] ss:$16 sps:$4 sm:$0xff]   ;;  %v7395_v41 = vld [vmem:[#allocation12 + $0x5e8] ss:$16 sps:$4 sm:$0xff]  }
 0x894   :  { %4074 = vmatprep.subr.bf16.mxu1 %v7340_v51  ;;  %4161 = vmatprep.subr.bf16.mxu0 %v7343_v11  ;;  %v7400_v51 = vld [vmem:[#allocation12 + $0x5c4] ss:$16 sps:$4 sm:$0xff]   ;;  %v7403_v11 = vld [vmem:[#allocation12 + $0x5cc] ss:$16 sps:$4 sm:$0xff]  }
 0x897   :  { %4075 = vmatpush2.bf16.msra.mxu1 %v7338_v61  ;;  %4162 = vmatpush2.bf16.msra.mxu0 %v7341_v33  ;;  %v7398_v61 = vld [vmem:[#allocation12 + $0x5c0] ss:$16 sps:$4 sm:$0xff]   ;;  %v7401_v33 = vld [vmem:[#allocation12 + $0x5c8] ss:$16 sps:$4 sm:$0xff]  }
 0x898   :  { %4621 = vmatprep.subr.bf16.mxu1 %v7346_v29  ;;  %4708 = vmatprep.subr.bf16.mxu0 %v7349_v40  ;;  %v7406_v29 = vld [vmem:[#allocation12 + $0x5a4] ss:$16 sps:$4 sm:$0xff]   ;;  %v7409_v40 = vld [vmem:[#allocation12 + $0x5ac] ss:$16 sps:$4 sm:$0xff]  }
 0x89a   :  { %4077 = vmatmul.mubr.f32.vlgmr.msra.gmra.mxu1 %v9347_v49  ;;  %4164 = vmatmul.mubr.f32.vlgmr.msra.gmra.mxu0 %v9347_v49  ;;  %v7356_v49 = vld [vmem:[#allocation12 + $0x4a0] ss:$16 sps:$4 sm:$0xff]  }
 0x89b   :  { %4082 = vmatprep.mubr.f32.mxu1 %v9258_v22  ;;  %4169 = vmatprep.mubr.f32.mxu0 %v9258_v22 }
 0x89c   :  { %4622 = vmatpush1.bf16.msra.mxu1 %v7344_v3  ;;  %4709 = vmatpush1.bf16.msra.mxu0 %v7347_v57  ;;  %v7404_v3 = vld [vmem:[#allocation12 + $0x5a0] ss:$16 sps:$4 sm:$0xff]   ;;  %v7407_v57 = vld [vmem:[#allocation12 + $0x5a8] ss:$16 sps:$4 sm:$0xff]  }
 0x89d   :  { %4623 = vmatprep.subr.bf16.mxu1 %v7352_v63  ;;  %4710 = vmatprep.subr.bf16.mxu0 %v7355_v35  ;;  %v7412_v63 = vld [vmem:[#allocation12 + $0x584] ss:$16 sps:$4 sm:$0xff]   ;;  %v7415_v35 = vld [vmem:[#allocation12 + $0x58c] ss:$16 sps:$4 sm:$0xff]  }
 0x89e   :  { %4083 = vmatmul.mubr.f32.gmra.mxu1 %v9261_v43  ;;  %4170 = vmatmul.mubr.f32.gmra.mxu0 %v9261_v43 }
 0x89f   :  { %4088 = vmatprep.mubr.f32.mxu1 %v9265_v24  ;;  %4175 = vmatprep.mubr.f32.mxu0 %v9265_v24 }
 0x8a0   :  { %4624 = vmatpush1.bf16.msra.mxu1 %v7350_v10  ;;  %4711 = vmatpush1.bf16.msra.mxu0 %v7353_v2  ;;  %v7410_v10 = vld [vmem:[#allocation12 + $0x580] ss:$16 sps:$4 sm:$0xff]   ;;  %v7418_v2 = vld [vmem:[#allocation12 + $0x564] ss:$16 sps:$4 sm:$0xff]  }
 0x8a1   :  { %4625 = vmatprep.subr.bf16.mxu1 %v7358_v56  ;;  %4712 = vmatprep.subr.bf16.mxu0 %v7361_v53  ;;  %v7421_v56 = vld [vmem:[#allocation12 + $0x56c] ss:$16 sps:$4 sm:$0xff]   ;;  %v7416_v53 = vld [vmem:[#allocation12 + $0x560] ss:$16 sps:$4 sm:$0xff]  }
 0x8a2   :  { %4089 = vmatmul.mubr.f32.gmra.mxu1 %v9273_v26  ;;  %4176 = vmatmul.mubr.f32.gmra.mxu0 %v9273_v26 }
 0x8a3   :  { %4094 = vmatprep.mubr.f32.mxu1 %v9271_v58  ;;  %4181 = vmatprep.mubr.f32.mxu0 %v9271_v58 }
 0x8a4   :  { %4626 = vmatpush1.bf16.msra.mxu1 %v7356_v49  ;;  %4713 = vmatpush1.bf16.msra.mxu0 %v7359_v25  ;;  %v7419_v49 = vld [vmem:[#allocation12 + $0x568] ss:$16 sps:$4 sm:$0xff]   ;;  %v7424_v25 = vld [vmem:[#allocation12 + $0x544] ss:$16 sps:$4 sm:$0xff]  }
 0x8a5   :  { %4627 = vmatprep.subr.bf16.mxu1 %v7364_v4  ;;  %4714 = vmatprep.subr.bf16.mxu0 %v7367_v31  ;;  %v7427_v4 = vld [vmem:[#allocation12 + $0x54c] ss:$16 sps:$4 sm:$0xff]   ;;  %v7422_v31 = vld [vmem:[#allocation12 + $0x540] ss:$16 sps:$4 sm:$0xff]  }
 0x8a6   :  { %4095 = vmatmul.mubr.f32.gmra.mxu1 %v9279_v62  ;;  %4182 = vmatmul.mubr.f32.gmra.mxu0 %v9279_v62 }
 0x8a7   :  { %4100 = vmatprep.mubr.f32.mxu1 %v9305_v13  ;;  %4187 = vmatprep.mubr.f32.mxu0 %v9305_v13 }
 0x8a8   :  { %4628 = vmatpush1.bf16.msra.mxu1 %v7362_v39  ;;  %4715 = vmatpush1.bf16.msra.mxu0 %v7365_v32  ;;  %v7425_v39 = vld [vmem:[#allocation12 + $0x548] ss:$16 sps:$4 sm:$0xff]   ;;  %v7430_v32 = vld [vmem:[#allocation12 + $0x524] ss:$16 sps:$4 sm:$0xff]  }
 0x8a9   :  { %4629 = vmatprep.subr.bf16.mxu1 %v7370_v0  ;;  %4716 = vmatprep.subr.bf16.mxu0 %v7373_v1  ;;  %v7433_v0 = vld [vmem:[#allocation12 + $0x52c] ss:$16 sps:$4 sm:$0xff]   ;;  %v7428_v1 = vld [vmem:[#allocation12 + $0x520] ss:$16 sps:$4 sm:$0xff]  }
 0x8aa   :  { %4101 = vmatmul.mubr.f32.gmra.mxu1 %v9311_v12  ;;  %4188 = vmatmul.mubr.f32.gmra.mxu0 %v9311_v12 }
 0x8ab   :  { %4106 = vmatprep.mubr.f32.mxu1 %v9313_v28  ;;  %4193 = vmatprep.mubr.f32.mxu0 %v9313_v28 }
 0x8ac   :  { %4630 = vmatpush1.bf16.msra.mxu1 %v7368_v44  ;;  %4717 = vmatpush1.bf16.msra.mxu0 %v7371_v37  ;;  %v7431_v44 = vld [vmem:[#allocation12 + $0x528] ss:$16 sps:$4 sm:$0xff]   ;;  %v7436_v37 = vld [vmem:[#allocation12 + $0x504] ss:$16 sps:$4 sm:$0xff]  }
 0x8ad   :  { %4631 = vmatprep.subr.bf16.mxu1 %v7376_v38  ;;  %4718 = vmatprep.subr.bf16.mxu0 %v7379_v45  ;;  %v7439_v38 = vld [vmem:[#allocation12 + $0x50c] ss:$16 sps:$4 sm:$0xff]   ;;  %v7434_v45 = vld [vmem:[#allocation12 + $0x500] ss:$16 sps:$4 sm:$0xff]  }
 0x8ae   :  { %4107 = vmatmul.mubr.f32.gmra.mxu1 %v9319_v21  ;;  %4194 = vmatmul.mubr.f32.gmra.mxu0 %v9319_v21 }
 0x8af   :  { %4112 = vmatprep.mubr.f32.mxu1 %v9317_v9  ;;  %4199 = vmatprep.mubr.f32.mxu0 %v9317_v9 }
 0x8b0   :  { %4632 = vmatpush1.bf16.msra.mxu1 %v7374_v5  ;;  %4719 = vmatpush1.bf16.msra.mxu0 %v7377_v7  ;;  %v7437_v5 = vld [vmem:[#allocation12 + $0x508] ss:$16 sps:$4 sm:$0xff]   ;;  %v7442_v7 = vld [vmem:[#allocation12 + $0x6e4] ss:$16 sps:$4 sm:$0xff]  }
 0x8b1   :  { %4633 = vmatprep.subr.bf16.mxu1 %v7382_v6  ;;  %4720 = vmatprep.subr.bf16.mxu0 %v7385_v42  ;;  %v7445_v6 = vld [vmem:[#allocation12 + $0x6ec] ss:$16 sps:$4 sm:$0xff]   ;;  %v7440_v42 = vld [vmem:[#allocation12 + $0x6e0] ss:$16 sps:$4 sm:$0xff]  }
 0x8b2   :  { %4113 = vmatmul.mubr.f32.gmra.mxu1 %v9323_v17  ;;  %4200 = vmatmul.mubr.f32.gmra.mxu0 %v9323_v17 }
 0x8b3   :  { %4118 = vmatprep.mubr.f32.mxu1 %v9337_v15  ;;  %4205 = vmatprep.mubr.f32.mxu0 %v9337_v15 }
 0x8b4   :  { %4634 = vmatpush1.bf16.msra.mxu1 %v7380_v52  ;;  %4721 = vmatpush1.bf16.msra.mxu0 %v7383_v46  ;;  %v7443_v52 = vld [vmem:[#allocation12 + $0x6e8] ss:$16 sps:$4 sm:$0xff]   ;;  %v7448_v46 = vld [vmem:[#allocation12 + $0x6c4] ss:$16 sps:$4 sm:$0xff]  }
 0x8b5   :  { %4635 = vmatprep.subr.bf16.mxu1 %v7388_v60  ;;  %4722 = vmatprep.subr.bf16.mxu0 %v7391_v30  ;;  %v7451_v60 = vld [vmem:[#allocation12 + $0x6cc] ss:$16 sps:$4 sm:$0xff]   ;;  %v7446_v30 = vld [vmem:[#allocation12 + $0x6c0] ss:$16 sps:$4 sm:$0xff]  }
 0x8b6   :  { %4119 = vmatmul.mubr.f32.gmra.mxu1 %v9341_v54  ;;  %4206 = vmatmul.mubr.f32.gmra.mxu0 %v9341_v54 }
 0x8b7   :  { %4124 = vmatprep.mubr.f32.mxu1 %v9345_v18  ;;  %4211 = vmatprep.mubr.f32.mxu0 %v9345_v18 }
 0x8b8   :  { %4636 = vmatpush1.bf16.msra.mxu1 %v7386_v16  ;;  %4723 = vmatpush1.bf16.msra.mxu0 %v7389_v55  ;;  %v7449_v16 = vld [vmem:[#allocation12 + $0x6c8] ss:$16 sps:$4 sm:$0xff]   ;;  %v7454_v55 = vld [vmem:[#allocation12 + $0x6a4] ss:$16 sps:$4 sm:$0xff]  }
 0x8b9   :  { %4637 = vmatprep.subr.bf16.mxu1 %v7394_v14  ;;  %4724 = vmatprep.subr.bf16.mxu0 %v7397_v19  ;;  %v7457_v14 = vld [vmem:[#allocation12 + $0x6ac] ss:$16 sps:$4 sm:$0xff]   ;;  %v7455_v19 = vld [vmem:[#allocation12 + $0x6a8] ss:$16 sps:$4 sm:$0xff]  }
 0x8ba   :  { %4125 = vmatmul.mubr.f32.gmra.mxu1 %v9351_v36  ;;  %4212 = vmatmul.mubr.f32.gmra.mxu0 %v9351_v36 }
 0x8bb   :  { %4653 = vmatprep.mubr.f32.mxu1 %v9271_v58  ;;  %4740 = vmatprep.mubr.f32.mxu0 %v9271_v58  ;;  %v7413_v58 = vld [vmem:[#allocation12 + $0x588] ss:$16 sps:$4 sm:$0xff]  }
 0x8bc   :  { %4638 = vmatpush2.bf16.msra.mxu1 %v7392_v47  ;;  %4725 = vmatpush2.bf16.msra.mxu0 %v7395_v41  ;;  %v7460_v47 = vld [vmem:[#allocation12 + $0x684] ss:$16 sps:$4 sm:$0xff]   ;;  %v7463_v41 = vld [vmem:[#allocation12 + $0x68c] ss:$16 sps:$4 sm:$0xff]  }
 0x8bd   :  { %4639 = vmatprep.subr.bf16.mxu1 %v7400_v51  ;;  %4726 = vmatprep.subr.bf16.mxu0 %v7403_v11  ;;  %v7458_v51 = vld [vmem:[#allocation12 + $0x680] ss:$16 sps:$4 sm:$0xff]   ;;  %v7461_v11 = vld [vmem:[#allocation12 + $0x688] ss:$16 sps:$4 sm:$0xff]  }
 0x8c0   :  { %4640 = vmatpush2.bf16.msra.mxu1 %v7398_v61  ;;  %4727 = vmatpush2.bf16.msra.mxu0 %v7401_v33  ;;  %v7466_v61 = vld [vmem:[#allocation12 + $0x664] ss:$16 sps:$4 sm:$0xff]   ;;  %v7469_v33 = vld [vmem:[#allocation12 + $0x66c] ss:$16 sps:$4 sm:$0xff]  }
 0x8c1   :  { %4641 = vmatprep.subr.bf16.mxu1 %v7406_v29  ;;  %4728 = vmatprep.subr.bf16.mxu0 %v7409_v40  ;;  %v7464_v29 = vld [vmem:[#allocation12 + $0x660] ss:$16 sps:$4 sm:$0xff]   ;;  %v7472_v40 = vld [vmem:[#allocation12 + $0x644] ss:$16 sps:$4 sm:$0xff]  }
 0x8c4   :  { %4642 = vmatpush2.bf16.msra.mxu1 %v7404_v3  ;;  %4729 = vmatpush2.bf16.msra.mxu0 %v7407_v57  ;;  %v7475_v3 = vld [vmem:[#allocation12 + $0x64c] ss:$16 sps:$4 sm:$0xff]   ;;  %v7473_v57 = vld [vmem:[#allocation12 + $0x648] ss:$16 sps:$4 sm:$0xff]  }
 0x8c5   :  { %4643 = vmatprep.subr.bf16.mxu1 %v7412_v63  ;;  %4730 = vmatprep.subr.bf16.mxu0 %v7415_v35  ;;  %v7478_v63 = vld [vmem:[#allocation12 + $0x624] ss:$16 sps:$4 sm:$0xff]   ;;  %v7481_v35 = vld [vmem:[#allocation12 + $0x62c] ss:$16 sps:$4 sm:$0xff]  }
 0x8c8   :  { %4644 = vmatpush2.bf16.msra.mxu1 %v7410_v10  ;;  %4731 = vmatpush2.bf16.msra.mxu0 %v7413_v58  ;;  %v7476_v10 = vld [vmem:[#allocation12 + $0x620] ss:$16 sps:$4 sm:$0xff]   ;;  %v7479_v58 = vld [vmem:[#allocation12 + $0x628] ss:$16 sps:$4 sm:$0xff]  }
 0x8c9   :  { %4645 = vmatprep.subr.bf16.mxu1 %v7418_v2  ;;  %4732 = vmatprep.subr.bf16.mxu0 %v7421_v56  ;;  %v9425_v2 = vmul.f32 0.0, %v9258_v22  ;;  %v7484_v56 = vld [vmem:[#allocation12 + $0x604] ss:$16 sps:$4 sm:$0xff]   ;;  %v9435_v22 = vmul.f32 0.0, %v9265_v24 }
 0x8ca   :  { %v7496_v24 = vld [vmem:[#allocation12 + $0x7c4] ss:$16 sps:$4 sm:$0xff]  }
 0x8cc   :  { %4646 = vmatpush2.bf16.msra.mxu1 %v7416_v53  ;;  %4733 = vmatpush2.bf16.msra.mxu0 %v7419_v49  ;;  %v7487_v53 = vld [vmem:[#allocation12 + $0x60c] ss:$16 sps:$4 sm:$0xff]   ;;  %v9432_v49 = vmul.f32 0.0, %v9261_v43  ;;  %v9442_v43 = vmul.f32 0.0, %v9273_v26  ;;  %v7502_v26 = vld [vmem:[#allocation12 + $0x7a4] ss:$16 sps:$4 sm:$0xff]  }
 0x8cd   :  { %4647 = vmatprep.subr.bf16.mxu1 %v7424_v25  ;;  %4734 = vmatprep.subr.bf16.mxu0 %v7427_v4  ;;  %v7482_v25 = vld [vmem:[#allocation12 + $0x600] ss:$16 sps:$4 sm:$0xff]   ;;  %v7485_v4 = vld [vmem:[#allocation12 + $0x608] ss:$16 sps:$4 sm:$0xff]  }
 0x8d0   :  { %4648 = vmatpush2.bf16.msra.mxu1 %v7422_v31  ;;  %4735 = vmatpush2.bf16.msra.mxu0 %v7425_v39  ;;  %v7490_v31 = vld [vmem:[#allocation12 + $0x7e4] ss:$16 sps:$4 sm:$0xff]   ;;  %v7493_v39 = vld [vmem:[#allocation12 + $0x7ec] ss:$16 sps:$4 sm:$0xff]  }
 0x8d1   :  { %4649 = vmatprep.subr.bf16.mxu1 %v7430_v32  ;;  %4736 = vmatprep.subr.bf16.mxu0 %v7433_v0  ;;  %v7488_v32 = vld [vmem:[#allocation12 + $0x7e0] ss:$16 sps:$4 sm:$0xff]   ;;  %v7491_v0 = vld [vmem:[#allocation12 + $0x7e8] ss:$16 sps:$4 sm:$0xff]  }
 0x8d4   :  { %4650 = vmatpush2.bf16.msra.mxu1 %v7428_v1  ;;  %4737 = vmatpush2.bf16.msra.mxu0 %v7431_v44  ;;  %v7499_v1 = vld [vmem:[#allocation12 + $0x7cc] ss:$16 sps:$4 sm:$0xff]   ;;  %v7494_v44 = vld [vmem:[#allocation12 + $0x7c0] ss:$16 sps:$4 sm:$0xff]  }
 0x8d5   :  { %4651 = vmatprep.subr.bf16.mxu1 %v7436_v37  ;;  %4738 = vmatprep.subr.bf16.mxu0 %v7439_v38  ;;  %v7497_v37 = vld [vmem:[#allocation12 + $0x7c8] ss:$16 sps:$4 sm:$0xff]   ;;  %v7505_v38 = vld [vmem:[#allocation12 + $0x7ac] ss:$16 sps:$4 sm:$0xff]  }
 0x8d8   :  { %4652 = vmatpush2.bf16.msra.mxu1 %v7434_v45  ;;  %4739 = vmatpush2.bf16.msra.mxu0 %v7437_v5  ;;  %v7500_v45 = vld [vmem:[#allocation12 + $0x7a0] ss:$16 sps:$4 sm:$0xff]   ;;  %v7503_v5 = vld [vmem:[#allocation12 + $0x7a8] ss:$16 sps:$4 sm:$0xff]  }
 0x8d9   :  { %5234 = vmatprep.subr.bf16.mxu1 %v7442_v7  ;;  %5321 = vmatprep.subr.bf16.mxu0 %v7445_v6  ;;  %v7508_v7 = vld [vmem:[#allocation12 + $0x784] ss:$16 sps:$4 sm:$0xff]   ;;  %v7511_v6 = vld [vmem:[#allocation12 + $0x78c] ss:$16 sps:$4 sm:$0xff]  }
 0x8db   :  { %4654 = vmatmul.mubr.f32.vlgmr.msra.gmra.mxu1 %v9279_v62  ;;  %4741 = vmatmul.mubr.f32.vlgmr.msra.gmra.mxu0 %v9279_v62  ;;  %v7452_v62 = vld [vmem:[#allocation12 + $0x6a0] ss:$16 sps:$4 sm:$0xff]  }
 0x8dc   :  { %4659 = vmatprep.mubr.f32.mxu1 %v9305_v13  ;;  %4746 = vmatprep.mubr.f32.mxu0 %v9305_v13 }
 0x8dd   :  { %5235 = vmatpush1.bf16.msra.mxu1 %v7440_v42  ;;  %5322 = vmatpush1.bf16.msra.mxu0 %v7443_v52  ;;  %v7506_v42 = vld [vmem:[#allocation12 + $0x780] ss:$16 sps:$4 sm:$0xff]   ;;  %v7514_v52 = vld [vmem:[#allocation12 + $0x764] ss:$16 sps:$4 sm:$0xff]  }
 0x8de   :  { %5236 = vmatprep.subr.bf16.mxu1 %v7448_v46  ;;  %5323 = vmatprep.subr.bf16.mxu0 %v7451_v60  ;;  %v7517_v46 = vld [vmem:[#allocation12 + $0x76c] ss:$16 sps:$4 sm:$0xff]   ;;  %v7512_v60 = vld [vmem:[#allocation12 + $0x760] ss:$16 sps:$4 sm:$0xff]  }
 0x8df   :  { %4660 = vmatmul.mubr.f32.gmra.mxu1 %v9311_v12  ;;  %4747 = vmatmul.mubr.f32.gmra.mxu0 %v9311_v12 }
 0x8e0   :  { %4665 = vmatprep.mubr.f32.mxu1 %v9313_v28  ;;  %4752 = vmatprep.mubr.f32.mxu0 %v9313_v28 }
 0x8e1   :  { %5237 = vmatpush1.bf16.msra.mxu1 %v7446_v30  ;;  %5324 = vmatpush1.bf16.msra.mxu0 %v7449_v16  ;;  %v7515_v30 = vld [vmem:[#allocation12 + $0x768] ss:$16 sps:$4 sm:$0xff]   ;;  %v7520_v16 = vld [vmem:[#allocation12 + $0x744] ss:$16 sps:$4 sm:$0xff]  }
 0x8e2   :  { %5238 = vmatprep.subr.bf16.mxu1 %v7454_v55  ;;  %5325 = vmatprep.subr.bf16.mxu0 %v7457_v14  ;;  %v7523_v55 = vld [vmem:[#allocation12 + $0x74c] ss:$16 sps:$4 sm:$0xff]   ;;  %v7518_v14 = vld [vmem:[#allocation12 + $0x740] ss:$16 sps:$4 sm:$0xff]  }
 0x8e3   :  { %4666 = vmatmul.mubr.f32.gmra.mxu1 %v9319_v21  ;;  %4753 = vmatmul.mubr.f32.gmra.mxu0 %v9319_v21 }
 0x8e4   :  { %4671 = vmatprep.mubr.f32.mxu1 %v9317_v9  ;;  %4758 = vmatprep.mubr.f32.mxu0 %v9317_v9  ;;  %v7467_v9 = vld [vmem:[#allocation12 + $0x668] ss:$16 sps:$4 sm:$0xff]  }
 0x8e5   :  { %5239 = vmatpush1.bf16.msra.mxu1 %v7452_v62  ;;  %5326 = vmatpush1.bf16.msra.mxu0 %v7455_v19  ;;  %v7521_v62 = vld [vmem:[#allocation12 + $0x748] ss:$16 sps:$4 sm:$0xff]   ;;  %v7526_v19 = vld [vmem:[#allocation12 + $0x724] ss:$16 sps:$4 sm:$0xff]  }
 0x8e6   :  { %5240 = vmatprep.subr.bf16.mxu1 %v7460_v47  ;;  %5327 = vmatprep.subr.bf16.mxu0 %v7463_v41  ;;  %v7529_v47 = vld [vmem:[#allocation12 + $0x72c] ss:$16 sps:$4 sm:$0xff]   ;;  %v7524_v41 = vld [vmem:[#allocation12 + $0x720] ss:$16 sps:$4 sm:$0xff]  }
 0x8e7   :  { %4672 = vmatmul.mubr.f32.gmra.mxu1 %v9323_v17  ;;  %4759 = vmatmul.mubr.f32.gmra.mxu0 %v9323_v17  ;;  %v7470_v17 = vld [vmem:[#allocation12 + $0x640] ss:$16 sps:$4 sm:$0xff]  }
 0x8e8   :  { %4677 = vmatprep.mubr.f32.mxu1 %v9337_v15  ;;  %4764 = vmatprep.mubr.f32.mxu0 %v9337_v15 }
 0x8e9   :  { %5241 = vmatpush1.bf16.msra.mxu1 %v7458_v51  ;;  %5328 = vmatpush1.bf16.msra.mxu0 %v7461_v11  ;;  %v7527_v51 = vld [vmem:[#allocation12 + $0x728] ss:$16 sps:$4 sm:$0xff]   ;;  %v7532_v11 = vld [vmem:[#allocation12 + $0x704] ss:$16 sps:$4 sm:$0xff]  }
 0x8ea   :  { %5242 = vmatprep.subr.bf16.mxu1 %v7466_v61  ;;  %5329 = vmatprep.subr.bf16.mxu0 %v7469_v33  ;;  %v7535_v61 = vld [vmem:[#allocation12 + $0x70c] ss:$16 sps:$4 sm:$0xff]   ;;  %v7530_v33 = vld [vmem:[#allocation12 + $0x700] ss:$16 sps:$4 sm:$0xff]  }
 0x8eb   :  { %4678 = vmatmul.mubr.f32.gmra.mxu1 %v9341_v54  ;;  %4765 = vmatmul.mubr.f32.gmra.mxu0 %v9341_v54 }
 0x8ec   :  { %4683 = vmatprep.mubr.f32.mxu1 %v9345_v18  ;;  %4770 = vmatprep.mubr.f32.mxu0 %v9345_v18 }
 0x8ed   :  { %5243 = vmatpush1.bf16.msra.mxu1 %v7464_v29  ;;  %5330 = vmatpush1.bf16.msra.mxu0 %v7467_v9  ;;  %v7533_v29 = vld [vmem:[#allocation12 + $0x708] ss:$16 sps:$4 sm:$0xff]  }
 0x8ee   :  { %5244 = vmatprep.subr.bf16.mxu1 %v7472_v40  ;;  %5331 = vmatprep.subr.bf16.mxu0 %v7475_v3 }
 0x8ef   :  { %4684 = vmatmul.mubr.f32.gmra.mxu1 %v9351_v36  ;;  %4771 = vmatmul.mubr.f32.gmra.mxu0 %v9351_v36 }
 0x8f0   :  { %4689 = vmatprep.mubr.f32.mxu1 %v9355_v59  ;;  %4776 = vmatprep.mubr.f32.mxu0 %v9355_v59 }
 0x8f1   :  { %5245 = vmatpush1.bf16.msra.mxu1 %v7470_v17  ;;  %5332 = vmatpush1.bf16.msra.mxu0 %v7473_v57 }
 0x8f2   :  { %5246 = vmatprep.subr.bf16.mxu1 %v7478_v63  ;;  %5333 = vmatprep.subr.bf16.mxu0 %v7481_v35 }
 0x8f3   :  { %4690 = vmatmul.mubr.f32.gmra.mxu1 %v9360_v23  ;;  %4777 = vmatmul.mubr.f32.gmra.mxu0 %v9360_v23 }
 0x8f4   :  { %4695 = vmatprep.mubr.f32.mxu1 %v9425_v2  ;;  %4782 = vmatprep.mubr.f32.mxu0 %v9425_v2 }
 0x8f5   :  { %5247 = vmatpush1.bf16.msra.mxu1 %v7476_v10  ;;  %5334 = vmatpush1.bf16.msra.mxu0 %v7479_v58 }
 0x8f6   :  { %5248 = vmatprep.subr.bf16.mxu1 %v7484_v56  ;;  %5335 = vmatprep.subr.bf16.mxu0 %v7487_v53  ;;  %v7539_v53 = vld [vmem:[#allocation15 + $0x170] ss:$8 sps:$4 sm:$0xff]  }
 0x8f7   :  { %4696 = vmatmul.mubr.f32.gmra.mxu1 %v9432_v49  ;;  %4783 = vmatmul.mubr.f32.gmra.mxu0 %v9432_v49 }
 0x8f8   :  { %4701 = vmatprep.mubr.f32.mxu1 %v9435_v22  ;;  %4788 = vmatprep.mubr.f32.mxu0 %v9435_v22 }
 0x8f9   :  { %5249 = vmatpush1.bf16.msra.mxu1 %v7482_v25  ;;  %5336 = vmatpush1.bf16.msra.mxu0 %v7485_v4 }
 0x8fa   :  { %5250 = vmatprep.subr.bf16.mxu1 %v7490_v31  ;;  %5337 = vmatprep.subr.bf16.mxu0 %v7493_v39  ;;  %v7547_v31 = vld [vmem:[#allocation15 + $0x164] ss:$8 sps:$4 sm:$0xff]  }
 0x8fb   :  { %4702 = vmatmul.mubr.f32.gmra.mxu1 %v9442_v43  ;;  %4789 = vmatmul.mubr.f32.gmra.mxu0 %v9442_v43 }
 0x8fc   :  { %5266 = vmatprep.mubr.f32.mxu1 %v9305_v13  ;;  %5353 = vmatprep.mubr.f32.mxu0 %v9305_v13  ;;  %v7509_v13 = vld [vmem:[#allocation12 + $0x788] ss:$16 sps:$4 sm:$0xff]  }
 0x8fd   :  { %5251 = vmatpush2.bf16.msra.mxu1 %v7488_v32  ;;  %5338 = vmatpush2.bf16.msra.mxu0 %v7491_v0  ;;  %v7551_v0 = vld [vmem:[#allocation15 + $0x150] ss:$8 sps:$4 sm:$0xff]  }
 0x8fe   :  { %5252 = vmatprep.subr.bf16.mxu1 %v7496_v24  ;;  %5339 = vmatprep.subr.bf16.mxu0 %v7499_v1  ;;  %v7553_v24 = vld [vmem:[#allocation15 + $0x154] ss:$8 sps:$4 sm:$0xff]  }
 0x901   :  { %5253 = vmatpush2.bf16.msra.mxu1 %v7494_v44  ;;  %5340 = vmatpush2.bf16.msra.mxu0 %v7497_v37  ;;  %v7557_v37 = vld [vmem:[#allocation15 + $0x140] ss:$8 sps:$4 sm:$0xff]  }
 0x902   :  { %5254 = vmatprep.subr.bf16.mxu1 %v7502_v26  ;;  %5341 = vmatprep.subr.bf16.mxu0 %v7505_v38  ;;  %v7559_v26 = vld [vmem:[#allocation15 + $0x144] ss:$8 sps:$4 sm:$0xff]  }
 0x905   :  { %5255 = vmatpush2.bf16.msra.mxu1 %v7500_v45  ;;  %5342 = vmatpush2.bf16.msra.mxu0 %v7503_v5  ;;  %v7562_v5 = vld [vmem:[#allocation15 + $0x34] ss:$8 sps:$4 sm:$0xff]  }
 0x906   :  { %5256 = vmatprep.subr.bf16.mxu1 %v7508_v7  ;;  %5343 = vmatprep.subr.bf16.mxu0 %v7511_v6  ;;  %v7565_v7 = vld [vmem:[#allocation15 + $0x134] ss:$8 sps:$4 sm:$0xff]   ;;  %v7560_v6 = vld [vmem:[#allocation15 + $0x30] ss:$8 sps:$4 sm:$0xff]  }
 0x909   :  { %5257 = vmatpush2.bf16.msra.mxu1 %v7506_v42  ;;  %5344 = vmatpush2.bf16.msra.mxu0 %v7509_v13 }
 0x90a   :  { %5258 = vmatprep.subr.bf16.mxu1 %v7514_v52  ;;  %5345 = vmatprep.subr.bf16.mxu0 %v7517_v46  ;;  %v7568_v52 = vld [vmem:[#allocation15 + $0x24] ss:$8 sps:$4 sm:$0xff]  }
 0x90b   :  { %v7571_v46 = vld [vmem:[#allocation15 + $0x124] ss:$8 sps:$4 sm:$0xff]  }
 0x90d   :  { %5259 = vmatpush2.bf16.msra.mxu1 %v7512_v60  ;;  %5346 = vmatpush2.bf16.msra.mxu0 %v7515_v30  ;;  %v7566_v60 = vld [vmem:[#allocation15 + $0x20] ss:$8 sps:$4 sm:$0xff]  }
 0x90e   :  { %5260 = vmatprep.subr.bf16.mxu1 %v7520_v16  ;;  %5347 = vmatprep.subr.bf16.mxu0 %v7523_v55  ;;  %v7569_v30 = vld [vmem:[#allocation15 + $0x120] ss:$8 sps:$4 sm:$0xff]  }
 0x911   :  { %5261 = vmatpush2.bf16.msra.mxu1 %v7518_v14  ;;  %5348 = vmatpush2.bf16.msra.mxu0 %v7521_v62  ;;  %v7574_v14 = vld [vmem:[#allocation15 + $0x14] ss:$8 sps:$4 sm:$0xff]  }
 0x912   :  { %5262 = vmatprep.subr.bf16.mxu1 %v7526_v19  ;;  %5349 = vmatprep.subr.bf16.mxu0 %v7529_v47  ;;  %v7577_v62 = vld [vmem:[#allocation15 + $0x114] ss:$8 sps:$4 sm:$0xff]   ;;  %v7572_v19 = vld [vmem:[#allocation15 + $0x10] ss:$8 sps:$4 sm:$0xff]  }
 0x913   :  { %v7575_v47 = vld [vmem:[#allocation15 + $0x110] ss:$8 sps:$4 sm:$0xff]  }
 0x915   :  { %5263 = vmatpush2.bf16.msra.mxu1 %v7524_v41  ;;  %5350 = vmatpush2.bf16.msra.mxu0 %v7527_v51 }
 0x916   :  { %5264 = vmatprep.subr.bf16.mxu1 %v7532_v11  ;;  %5351 = vmatprep.subr.bf16.mxu0 %v7535_v61  ;;  %v7580_v11 = vld [vmem:[#allocation15 + $0x4] ss:$8 sps:$4 sm:$0xff]  }
 0x917   :  { %v7583_v61 = vld [vmem:[#allocation15 + $0x104] ss:$8 sps:$4 sm:$0xff]  }
 0x919   :  { %5265 = vmatpush2.bf16.msra.mxu1 %v7530_v33  ;;  %5352 = vmatpush2.bf16.msra.mxu0 %v7533_v29  ;;  %v7578_v33 = vld [vmem:[#allocation15] ss:$8 sps:$4 sm:$0xff]  }
 0x91a   :  { %v9448_v9 = vpop.f32.mrf.mxu1  ;;  %v9450_v40 = vpop.f32.mrf.mxu0  ;;  %v7581_v29 = vld [vmem:[#allocation15 + $0x100] ss:$8 sps:$4 sm:$0xff]  }
 0x91c   :  { %5267 = vmatmul.mubr.f32.vlgmr.msra.gmra.mxu1 %v9311_v12  ;;  %5354 = vmatmul.mubr.f32.vlgmr.msra.gmra.mxu0 %v9311_v12  ;;  %v9454_v3 = vpop.f32.mrf.mxu1  ;;  %v9456_v17 = vpop.f32.mrf.mxu0 }
 0x91d   :  { %5272 = vmatprep.mubr.f32.mxu1 %v9313_v28  ;;  %5359 = vmatprep.mubr.f32.mxu0 %v9313_v28 }
 0x91e   :  { %v9460_v57 = vpop.f32.mrf.mxu1  ;;  %v9462_v63 = vpop.f32.mrf.mxu0 }
 0x920   :  { %5273 = vmatmul.mubr.f32.gmra.mxu1 %v9319_v21  ;;  %5360 = vmatmul.mubr.f32.gmra.mxu0 %v9319_v21  ;;  %v9466_v35 = vpop.f32.mrf.mxu1  ;;  %v9468_v10 = vpop.f32.mrf.mxu0 }
 0x921   :  { %5278 = vmatprep.mubr.f32.mxu1 %v9328_v34  ;;  %5365 = vmatprep.mubr.f32.mxu0 %v9328_v34 }
 0x922   :  { %v9474_v12 = vpop.f32.mrf.mxu1  ;;  %v9476_v28 = vpop.f32.mrf.mxu0 }
 0x924   :  { %5279 = vmatmul.mubr.f32.gmra.mxu1 %v9333_v8  ;;  %5366 = vmatmul.mubr.f32.gmra.mxu0 %v9333_v8  ;;  %v9480_v21 = vpop.f32.mrf.mxu1  ;;  %v9482_v58 = vpop.f32.mrf.mxu0 }
 0x925   :  { %5284 = vmatprep.mubr.f32.mxu1 %v9337_v15  ;;  %5371 = vmatprep.mubr.f32.mxu0 %v9337_v15 }
 0x926   :  { %v9488_v34 = vpop.f32.mrf.mxu1  ;;  %v9490_v8 = vpop.f32.mrf.mxu0 }
 0x928   :  { %5285 = vmatmul.mubr.f32.gmra.mxu1 %v9341_v54  ;;  %5372 = vmatmul.mubr.f32.gmra.mxu0 %v9341_v54  ;;  %v9496_v15 = vpop.f32.mrf.mxu1  ;;  %v9498_v56 = vpop.f32.mrf.mxu0  ;;  %v7538_v54 = vld [vmem:[#allocation15 + $0x74] ss:$8 sps:$4 sm:$0xff]  }
 0x929   :  { %5290 = vmatprep.mubr.f32.mxu1 %v9345_v18  ;;  %5377 = vmatprep.mubr.f32.mxu0 %v9345_v18  ;;  %v7536_v18 = vld [vmem:[#allocation15 + $0x70] ss:$8 sps:$4 sm:$0xff]  }
 0x92a   :  { %v9504_v25 = vpop.f32.mrf.mxu1  ;;  %v9506_v4 = vpop.f32.mrf.mxu0  ;;  %5934 = vmatprep.subr.bf16.mxu1 %v7538_v54 }
 0x92b   :  { %5935 = vmatpush1.bf16.msra.mxu1 %v7536_v18 }
 0x92c   :  { %5291 = vmatmul.mubr.f32.gmra.mxu1 %v9351_v36  ;;  %5378 = vmatmul.mubr.f32.gmra.mxu0 %v9351_v36  ;;  %v7541_v36 = vld [vmem:[#allocation15 + $0x174] ss:$8 sps:$4 sm:$0xff]   ;;  %v9512_v39 = vpop.f32.mrf.mxu1  ;;  %v9514_v32 = vpop.f32.mrf.mxu0 }
 0x92d   :  { %5296 = vmatprep.mubr.f32.mxu1 %v9355_v59  ;;  %5383 = vmatprep.mubr.f32.mxu0 %v9355_v59  ;;  %v7544_v59 = vld [vmem:[#allocation15 + $0x64] ss:$8 sps:$4 sm:$0xff]  }
 0x92e   :  { %6021 = vmatprep.subr.bf16.mxu0 %v7541_v36  ;;  %5936 = vmatprep.subr.bf16.mxu1 %v7544_v59  ;;  %v9520_v1 = vpop.f32.mrf.mxu1  ;;  %v9522_v44 = vpop.f32.mrf.mxu0  ;;  %v7589_v36 = vld [vmem:[#allocation15 + $0x1f4] ss:$8 sps:$4 sm:$0xff]   ;;  %v7584_v59 = vld [vmem:[#allocation15 + $0xf0] ss:$8 sps:$4 sm:$0xff]  }
 0x92f   :  { %6022 = vmatpush1.bf16.msra.mxu0 %v7539_v53  ;;  %v7586_v53 = vld [vmem:[#allocation15 + $0xf4] ss:$8 sps:$4 sm:$0xff]  }
 0x930   :  { %5297 = vmatmul.mubr.f32.gmra.mxu1 %v9360_v23  ;;  %5384 = vmatmul.mubr.f32.gmra.mxu0 %v9360_v23  ;;  %v7542_v23 = vld [vmem:[#allocation15 + $0x60] ss:$8 sps:$4 sm:$0xff]   ;;  %v9526_v38 = vpop.f32.mrf.mxu1  ;;  %v9528_v45 = vpop.f32.mrf.mxu0 }
 0x931   :  { %5302 = vmatprep.mubr.f32.mxu1 %v9425_v2  ;;  %5389 = vmatprep.mubr.f32.mxu0 %v9425_v2  ;;  %v7545_v2 = vld [vmem:[#allocation15 + $0x160] ss:$8 sps:$4 sm:$0xff]  }
 0x932   :  { %6023 = vmatprep.subr.bf16.mxu0 %v7547_v31  ;;  %5937 = vmatpush1.bf16.msra.mxu1 %v7542_v23  ;;  %v9530_v42 = vpop.f32.mrf.mxu1  ;;  %v9532_v13 = vpop.f32.mrf.mxu0  ;;  %v7587_v23 = vld [vmem:[#allocation15 + $0x1f0] ss:$8 sps:$4 sm:$0xff]  }
 0x933   :  { %6024 = vmatpush1.bf16.msra.mxu0 %v7545_v2 }
 0x934   :  { %5303 = vmatmul.mubr.f32.gmra.mxu1 %v9432_v49  ;;  %5390 = vmatmul.mubr.f32.gmra.mxu0 %v9432_v49  ;;  %v7550_v49 = vld [vmem:[#allocation15 + $0x54] ss:$8 sps:$4 sm:$0xff]   ;;  %v9534_v16 = vpop.f32.mrf.mxu1  ;;  %v9536_v55 = vpop.f32.mrf.mxu0 }
 0x935   :  { %5308 = vmatprep.mubr.f32.mxu1 %v9435_v22  ;;  %5395 = vmatprep.mubr.f32.mxu0 %v9435_v22  ;;  %v7548_v22 = vld [vmem:[#allocation15 + $0x50] ss:$8 sps:$4 sm:$0xff]  }
 0x936   :  { %5938 = vmatprep.subr.bf16.mxu1 %v7550_v49  ;;  %6025 = vmatprep.subr.bf16.mxu0 %v7553_v24  ;;  %v9538_v41 = vpop.f32.mrf.mxu1  ;;  %v9540_v51 = vpop.f32.mrf.mxu0  ;;  %v7592_v49 = vld [vmem:[#allocation15 + $0xe4] ss:$8 sps:$4 sm:$0xff]   ;;  %v7593_v24 = vld [vmem:[#allocation15 + $0x1e0] ss:$8 sps:$4 sm:$0xff]  }
 0x937   :  { %5939 = vmatpush1.bf16.msra.mxu1 %v7548_v22  ;;  %6026 = vmatpush1.bf16.msra.mxu0 %v7551_v0  ;;  %v7595_v22 = vld [vmem:[#allocation15 + $0x1e4] ss:$8 sps:$4 sm:$0xff]   ;;  %v7590_v0 = vld [vmem:[#allocation15 + $0xe0] ss:$8 sps:$4 sm:$0xff]  }
 0x938   :  { %5309 = vmatmul.mubr.f32.gmra.mxu1 %v9442_v43  ;;  %5396 = vmatmul.mubr.f32.gmra.mxu0 %v9442_v43  ;;  %v7556_v43 = vld [vmem:[#allocation15 + $0x44] ss:$8 sps:$4 sm:$0xff]   ;;  %v9542_v54 = vpop.f32.mrf.mxu1  ;;  %v9544_v18 = vpop.f32.mrf.mxu0 }
 0x939   :  { %5314 = vmatprep.mubr.f32.mxu1 %v9289_v20  ;;  %5401 = vmatprep.mubr.f32.mxu0 %v9289_v20  ;;  %v7554_v20 = vld [vmem:[#allocation15 + $0x40] ss:$8 sps:$4 sm:$0xff]  }
 0x93a   :  { %5940 = vmatprep.subr.bf16.mxu1 %v7556_v43  ;;  %6027 = vmatprep.subr.bf16.mxu0 %v7559_v26  ;;  %v9546_v2 = vpop.f32.mrf.mxu1  ;;  %v9548_v31 = vpop.f32.mrf.mxu0  ;;  %v7601_v26 = vld [vmem:[#allocation15 + $0x1d4] ss:$8 sps:$4 sm:$0xff]  }
 0x93b   :  { %5941 = vmatpush1.bf16.msra.mxu1 %v7554_v20  ;;  %6028 = vmatpush1.bf16.msra.mxu0 %v7557_v37  ;;  %v7598_v37 = vld [vmem:[#allocation15 + $0xd4] ss:$8 sps:$4 sm:$0xff]  }
 0x93c   :  { %5315 = vmatmul.mubr.f32.gmra.mxu1 %v9299_v27  ;;  %5402 = vmatmul.mubr.f32.gmra.mxu0 %v9299_v27  ;;  %v7563_v27 = vld [vmem:[#allocation15 + $0x130] ss:$8 sps:$4 sm:$0xff]   ;;  %v9550_v43 = vpop.f32.mrf.mxu1  ;;  %v9552_v20 = vpop.f32.mrf.mxu0 }
 0x93d   :  { %5942 = vmatprep.subr.bf16.mxu1 %v7562_v5  ;;  %6029 = vmatprep.subr.bf16.mxu0 %v7565_v7 }
 0x93f   :  { %5943 = vmatpush1.bf16.msra.mxu1 %v7560_v6  ;;  %6030 = vmatpush1.bf16.msra.mxu0 %v7563_v27 }
 0x940   :  { %5944 = vmatprep.subr.bf16.mxu1 %v7568_v52  ;;  %6031 = vmatprep.subr.bf16.mxu0 %v7571_v46  ;;  %v7596_v52 = vld [vmem:[#allocation15 + $0xd0] ss:$8 sps:$4 sm:$0xff]  }
 0x941   :  { %v7599_v46 = vld [vmem:[#allocation15 + $0x1d0] ss:$8 sps:$4 sm:$0xff]  }
 0x943   :  { %5945 = vmatpush1.bf16.msra.mxu1 %v7566_v60  ;;  %6032 = vmatpush1.bf16.msra.mxu0 %v7569_v30 }
 0x944   :  { %5946 = vmatprep.subr.bf16.mxu1 %v7574_v14  ;;  %6033 = vmatprep.subr.bf16.mxu0 %v7577_v62 }
 0x947   :  { %5947 = vmatpush1.bf16.msra.mxu1 %v7572_v19  ;;  %6034 = vmatpush1.bf16.msra.mxu0 %v7575_v47 }
 0x948   :  { %5948 = vmatprep.subr.bf16.mxu1 %v7580_v11  ;;  %6035 = vmatprep.subr.bf16.mxu0 %v7583_v61 }
 0x94b   :  { %5949 = vmatpush1.bf16.msra.mxu1 %v7578_v33  ;;  %6036 = vmatpush1.bf16.msra.mxu0 %v7581_v29  ;;  %v7604_v33 = vld [vmem:[#allocation15 + $0xc4] ss:$8 sps:$4 sm:$0xff]  }
 0x94c   :  { %5950 = vmatprep.subr.bf16.mxu1 %v7586_v53  ;;  %6037 = vmatprep.subr.bf16.mxu0 %v7589_v36  ;;  %v7607_v29 = vld [vmem:[#allocation15 + $0x1c4] ss:$8 sps:$4 sm:$0xff]   ;;  %v7602_v53 = vld [vmem:[#allocation15 + $0xc0] ss:$8 sps:$4 sm:$0xff]  }
 0x94d   :  { %v7605_v36 = vld [vmem:[#allocation15 + $0x1c0] ss:$8 sps:$4 sm:$0xff]  }
 0x94f   :  { %5951 = vmatpush2.bf16.msra.mxu1 %v7584_v59  ;;  %6038 = vmatpush2.bf16.msra.mxu0 %v7587_v23 }
 0x950   :  { %5952 = vmatprep.subr.bf16.mxu1 %v7592_v49  ;;  %6039 = vmatprep.subr.bf16.mxu0 %v7595_v22  ;;  %v7610_v22 = vld [vmem:[#allocation15 + $0xb4] ss:$8 sps:$4 sm:$0xff]  }
 0x953   :  { %5953 = vmatpush2.bf16.msra.mxu1 %v7590_v0  ;;  %6040 = vmatpush2.bf16.msra.mxu0 %v7593_v24  ;;  %v7613_v0 = vld [vmem:[#allocation15 + $0x1b4] ss:$8 sps:$4 sm:$0xff]  }
 0x954   :  { %5954 = vmatprep.subr.bf16.mxu1 %v7598_v37  ;;  %6041 = vmatprep.subr.bf16.mxu0 %v7601_v26  ;;  %v7608_v37 = vld [vmem:[#allocation15 + $0xb0] ss:$8 sps:$4 sm:$0xff]  }
 0x955   :  { %v7611_v26 = vld [vmem:[#allocation15 + $0x1b0] ss:$8 sps:$4 sm:$0xff]  }
 0x957   :  { %5955 = vmatpush2.bf16.msra.mxu1 %v7596_v52  ;;  %6042 = vmatpush2.bf16.msra.mxu0 %v7599_v46  ;;  %v7616_v46 = vld [vmem:[#allocation15 + $0xa4] ss:$8 sps:$4 sm:$0xff]  }
 0x958   :  { %5956 = vmatprep.subr.bf16.mxu1 %v7604_v33  ;;  %6043 = vmatprep.subr.bf16.mxu0 %v7607_v29  ;;  %v7622_v29 = vld [vmem:[#allocation15 + $0x94] ss:$8 sps:$4 sm:$0xff]  }
 0x95a   :  { %v4078_v5 = vpop.f32.mrf.mxu1  ;;  %v4165_v7 = vpop.f32.mrf.mxu0 }
 0x95b   :  { %v9555_v6 = vadd.f32 %v4078_v5, %v9448_v9  ;;  %v9558_v27 = vadd.f32 %v4165_v7, %v9450_v40  ;;  %5957 = vmatpush2.bf16.msra.mxu1 %v7602_v53  ;;  %6044 = vmatpush2.bf16.msra.mxu0 %v7605_v36  ;;  %v7625_v53 = vld [vmem:[#allocation15 + $0x194] ss:$8 sps:$4 sm:$0xff]  }
 0x95c   :  { %v4080_v60 = vpop.f32.mrf.mxu1  ;;  %v4167_v30 = vpop.f32.mrf.mxu0  ;;  %5958 = vmatprep.subr.bf16.mxu1 %v7610_v22  ;;  %6045 = vmatprep.subr.bf16.mxu0 %v7613_v0  ;;  %v7628_v0 = vld [vmem:[#allocation15 + $0x84] ss:$8 sps:$4 sm:$0xff]  }
 0x95d   :  { %v9561_v14 = vadd.f32 %v4080_v60, %v9454_v3  ;;  %v9564_v62 = vadd.f32 %v4167_v30, %v9456_v17  ;;  %v7619_v60 = vld [vmem:[#allocation15 + $0x1a4] ss:$8 sps:$4 sm:$0xff]  }
 0x95e   :  { %v4084_v19 = vpop.f32.mrf.mxu1  ;;  %v4171_v9 = vpop.f32.mrf.mxu0 }
 0x95f   :  { %v9567_v47 = vadd.f32 %v4084_v19, %v9460_v57  ;;  %v9570_v40 = vadd.f32 %v4171_v9, %v9462_v63  ;;  %5959 = vmatpush2.bf16.msra.mxu1 %v7608_v37  ;;  %6046 = vmatpush2.bf16.msra.mxu0 %v7611_v26  ;;  %v7614_v19 = vld [vmem:[#allocation15 + $0xa0] ss:$8 sps:$4 sm:$0xff]   ;;  %v7631_v37 = vld [vmem:[#allocation15 + $0x184] ss:$8 sps:$4 sm:$0xff]  }
 0x960   :  { %v4086_v11 = vpop.f32.mrf.mxu1  ;;  %v4173_v61 = vpop.f32.mrf.mxu0  ;;  %v7617_v9 = vld [vmem:[#allocation15 + $0x1a0] ss:$8 sps:$4 sm:$0xff]   ;;  %5960 = vmatprep.subr.bf16.mxu1 %v7616_v46  ;;  %6047 = vmatprep.subr.bf16.mxu0 %v7619_v60 }
 0x961   :  { %v9573_v3 = vadd.f32 %v4086_v11, %v9466_v35  ;;  %v9576_v17 = vadd.f32 %v4173_v61, %v9468_v10 }
 0x962   :  { %v4090_v59 = vpop.f32.mrf.mxu1  ;;  %v4177_v57 = vpop.f32.mrf.mxu0 }
 0x963   :  { %v9579_v63 = vadd.f32 %v4090_v59, %v9474_v12  ;;  %v9582_v23 = vadd.f32 %v4177_v57, %v9476_v28  ;;  %5961 = vmatpush2.bf16.msra.mxu1 %v7614_v19  ;;  %6048 = vmatpush2.bf16.msra.mxu0 %v7617_v9  ;;  %v7620_v59 = vld [vmem:[#allocation15 + $0x90] ss:$8 sps:$4 sm:$0xff]  }
 0x964   :  { %v4092_v49 = vpop.f32.mrf.mxu1  ;;  %v4179_v35 = vpop.f32.mrf.mxu0  ;;  %v7623_v57 = vld [vmem:[#allocation15 + $0x190] ss:$8 sps:$4 sm:$0xff]   ;;  %5962 = vmatprep.subr.bf16.mxu1 %v7622_v29  ;;  %6049 = vmatprep.subr.bf16.mxu0 %v7625_v53 }
 0x965   :  { %v9585_v10 = vadd.f32 %v4092_v49, %v9480_v21  ;;  %v9588_v24 = vadd.f32 %v4179_v35, %v9482_v58 }
 0x966   :  { %v4096_v5 = vpop.f32.mrf.mxu1  ;;  %v4183_v12 = vpop.f32.mrf.mxu0 }
 0x967   :  { %v9591_v28 = vadd.f32 %v4096_v5, %v9488_v34  ;;  %v9594_v7 = vadd.f32 %v4183_v12, %v9490_v8  ;;  %5963 = vmatpush2.bf16.msra.mxu1 %v7620_v59  ;;  %6050 = vmatpush2.bf16.msra.mxu0 %v7623_v57  ;;  %v7626_v5 = vld [vmem:[#allocation15 + $0x80] ss:$8 sps:$4 sm:$0xff]  }
 0x968   :  { %v4098_v52 = vpop.f32.mrf.mxu1  ;;  %v4185_v21 = vpop.f32.mrf.mxu0  ;;  %v7629_v12 = vld [vmem:[#allocation15 + $0x180] ss:$8 sps:$4 sm:$0xff]   ;;  %5964 = vmatprep.subr.bf16.mxu1 %v7628_v0  ;;  %6051 = vmatprep.subr.bf16.mxu0 %v7631_v37 }
 0x969   :  { %v9597_v58 = vadd.f32 %v4098_v52, %v9496_v15  ;;  %v9600_v30 = vadd.f32 %v4185_v21, %v9498_v56 }
 0x96a   :  { %v4102_v11 = vpop.f32.mrf.mxu1  ;;  %v4189_v34 = vpop.f32.mrf.mxu0 }
 0x96b   :  { %v9603_v8 = vadd.f32 %v4102_v11, %v9504_v25  ;;  %v9606_v61 = vadd.f32 %v4189_v34, %v9506_v4  ;;  %5965 = vmatpush2.bf16.msra.mxu1 %v7626_v5  ;;  %6052 = vmatpush2.bf16.msra.mxu0 %v7629_v12 }
 0x96c   :  { %v4104_v33 = vpop.f32.mrf.mxu1  ;;  %v4191_v15 = vpop.f32.mrf.mxu0 }
 0x96d   :  { %v9609_v56 = vadd.f32 %v4104_v33, %v9512_v39  ;;  %v9612_v36 = vadd.f32 %v4191_v15, %v9514_v32 }
 0x96e   :  { %v4108_v49 = vpop.f32.mrf.mxu1  ;;  %v4195_v25 = vpop.f32.mrf.mxu0 }
 0x96f   :  { %v9615_v4 = vadd.f32 %v4108_v49, %v9520_v1  ;;  %v9618_v35 = vadd.f32 %v4195_v25, %v9522_v44 }
 0x970   :  { %v4110_v22 = vpop.f32.mrf.mxu1  ;;  %v4197_v39 = vpop.f32.mrf.mxu0 }
 0x971   :  { %v9621_v32 = vadd.f32 %v4110_v22, %v9526_v38  ;;  %v9624_v26 = vadd.f32 %v4197_v39, %v9528_v45 }
 0x972   :  { %v4114_v52 = vpop.f32.mrf.mxu1  ;;  %v4201_v1 = vpop.f32.mrf.mxu0 }
 0x973   :  { %9973 = vst [vmem:[#allocation27_spill] sm:$0xff] %v9624_v26  ;;  %v9627_v44 = vadd.f32 %v4114_v52, %v9530_v42  ;;  %v9630_v21 = vadd.f32 %v4201_v1, %v9532_v13 }
 0x974   :  { %v4116_v46 = vpop.f32.mrf.mxu1  ;;  %v4203_v38 = vpop.f32.mrf.mxu0 }
 0x975   :  { %9974 = vst [vmem:[#allocation28_spill] sm:$0xff] %v9627_v44  ;;  %9975 = vst [vmem:[#allocation29_spill] sm:$0xff] %v9630_v21  ;;  %v9633_v60 = vadd.f32 %v4116_v46, %v9534_v16  ;;  %v9636_v45 = vadd.f32 %v4203_v38, %v9536_v55 }
 0x976   :  { %v4120_v19 = vpop.f32.mrf.mxu1  ;;  %v4207_v9 = vpop.f32.mrf.mxu0 }
 0x977   :  { %9976 = vst [vmem:[#allocation30_spill] sm:$0xff] %v9633_v60  ;;  %9977 = vst [vmem:[#allocation31_spill] sm:$0xff] %v9636_v45  ;;  %v9639_v11 = vadd.f32 %v4120_v19, %v9538_v41  ;;  %v9642_v42 = vadd.f32 %v4207_v9, %v9540_v51  ;;  %v5444_v45 = vld [vmem:[#allocation13] sm:$0xf] }
 0x978   :  { %v4122_v13 = vpop.f32.mrf.mxu1  ;;  %v4209_v34 = vpop.f32.mrf.mxu0 }
 0x979   :  { %9978 = vst [vmem:[#allocation32_spill] sm:$0xff] %v9639_v11  ;;  %9979 = vst [vmem:[#allocation33_spill] sm:$0xff] %v9642_v42  ;;  %v9645_v33 = vadd.f32 %v4122_v13, %v9542_v54  ;;  %v9648_v15 = vadd.f32 %v4209_v34, %v9544_v18 }
 0x97a   :  { %v4126_v16 = vpop.f32.mrf.mxu1  ;;  %v4213_v29 = vpop.f32.mrf.mxu0 }
 0x97b   :  { %9980 = vst [vmem:[#allocation34_spill] sm:$0xff] %v9645_v33  ;;  %9981 = vst [vmem:[#allocation35_spill] sm:$0xff] %v9648_v15  ;;  %v9651_v55 = vadd.f32 %v4126_v16, %v9546_v2  ;;  %v9654_v53 = vadd.f32 %v4213_v29, %v9548_v31 }
 0x97c   :  { %v4128_v41 = vpop.f32.mrf.mxu1  ;;  %v4215_v59 = vpop.f32.mrf.mxu0 }
 0x97d   :  { %9982 = vst [vmem:[#allocation36_spill] sm:$0xff] %v9651_v55  ;;  %9983 = vst [vmem:[#allocation37_spill] sm:$0xff] %v9654_v53  ;;  %v9657_v51 = vadd.f32 %v4128_v41, %v9550_v43  ;;  %v9660_v57 = vadd.f32 %v4215_v59, %v9552_v20 }
 0x97f   :  { %9984 = vst [vmem:[#allocation38_spill] sm:$0xff] %v9657_v51  ;;  %9985 = vst [vmem:[#allocation39_spill] sm:$0xff] %v9660_v57 }
 0x99b   :  { %v4655_v54 = vpop.f32.mrf.mxu1  ;;  %v4742_v49 = vpop.f32.mrf.mxu0 }
 0x99d   :  { %v4657_v18 = vpop.f32.mrf.mxu1  ;;  %v4744_v25 = vpop.f32.mrf.mxu0 }
 0x99f   :  { %v4661_v22 = vpop.f32.mrf.mxu1  ;;  %v4748_v39 = vpop.f32.mrf.mxu0 }
 0x9a1   :  { %v4663_v0 = vpop.f32.mrf.mxu1  ;;  %v4750_v2 = vpop.f32.mrf.mxu0 }
 0x9a3   :  { %v4667_v37 = vpop.f32.mrf.mxu1  ;;  %v4754_v5 = vpop.f32.mrf.mxu0 }
 0x9a5   :  { %v9662_v31 = vpop.f32.mrf.mxu1  ;;  %v9664_v12 = vpop.f32.mrf.mxu0 }
 0x9a7   :  { %v9666_v52 = vpop.f32.mrf.mxu1  ;;  %v9668_v43 = vpop.f32.mrf.mxu0 }
 0x9a9   :  { %v9670_v20 = vpop.f32.mrf.mxu1  ;;  %v9672_v1 = vpop.f32.mrf.mxu0 }
 0x9ab   :  { %v9674_v46 = vpop.f32.mrf.mxu1  ;;  %v9676_v38 = vpop.f32.mrf.mxu0 }
 0x9ad   :  { %v9678_v19 = vpop.f32.mrf.mxu1  ;;  %v9680_v9 = vpop.f32.mrf.mxu0 }
 0x9af   :  { %v9682_v13 = vpop.f32.mrf.mxu1  ;;  %v9684_v34 = vpop.f32.mrf.mxu0 }
 0x9b1   :  { %v9686_v16 = vpop.f32.mrf.mxu1  ;;  %v9688_v29 = vpop.f32.mrf.mxu0 }
 0x9b2   :  { %9986 = vst [vmem:[#allocation40_spill] sm:$0xff] %v9688_v29  ;;  %v4799_v29 = vadd.f32 %v4661_v22, %v9567_v47 }
 0x9b3   :  { %v9690_v41 = vpop.f32.mrf.mxu1  ;;  %v9692_v59 = vpop.f32.mrf.mxu0 }
 0x9b4   :  { %9987 = vst [vmem:[#allocation41_spill] sm:$0xff] %v9690_v41  ;;  %9988 = vst [vmem:[#allocation42_spill] sm:$0xff] %v9692_v59  ;;  %v4798_v41 = vadd.f32 %v4744_v25, %v9564_v62  ;;  %v4802_v62 = vadd.f32 %v4750_v2, %v9576_v17  ;;  %v4804_v17 = vadd.f32 %v9662_v31, %v9585_v10 }
 0x9b5   :  { %v9694_v57 = vpop.f32.mrf.mxu1  ;;  %v9696_v51 = vpop.f32.mrf.mxu0  ;;  %v4809_v10 = vadd.f32 %v9668_v43, %v9594_v7 }
 0x9b6   :  { %9989 = vst [vmem:[#allocation43_spill] sm:$0xff] %v9694_v57  ;;  %9990 = vst [vmem:[#allocation44_spill] sm:$0xff] %v9696_v51  ;;  %v9715_v57 = vrot.slane %v5444_v45, %v8290_v48  ;;  %v9999_v51 = vld [vmem:[#allocation24_spill] sm:$0xff]  ;;  %v4796_v48 = vadd.f32 %v4657_v18, %v9561_v14 }
 0x9b7   :  { %v9698_v53 = vpop.f32.mrf.mxu1  ;;  %v9700_v55 = vpop.f32.mrf.mxu0 }
 0x9b8   :  { %9991 = vst [vmem:[#allocation45_spill] sm:$0xff] %v9698_v53  ;;  %9992 = vst [vmem:[#allocation46_spill] sm:$0xff] %v9700_v55  ;;  %v10000_v53 = vsub.s32 2, %v9999_v51 }
 0x9b9   :  { %v9702_v15 = vpop.f32.mrf.mxu1  ;;  %v9704_v33 = vpop.f32.mrf.mxu0 }
 0x9ba   :  { %9993 = vst [vmem:[#allocation47_spill] sm:$0xff] %v9702_v15  ;;  %9994 = vst [vmem:[#allocation48_spill] sm:$0xff] %v9704_v33  ;;  %v9719_v21 = vrot.slane %v5444_v45, %v10000_v53  ;;  %v4795_v15 = vadd.f32 %v4655_v54, %v9555_v6  ;;  %v4797_v33 = vadd.f32 %v4742_v49, %v9558_v27 }
 0x9bb   :  { %v9706_v42 = vpop.f32.mrf.mxu1  ;;  %v9708_v11 = vpop.f32.mrf.mxu0 }
 0x9bc   :  { %9995 = vst [vmem:[#allocation49_spill] sm:$0xff] %v9706_v42  ;;  %9996 = vst [vmem:[#allocation50_spill] sm:$0xff] %v9708_v11  ;;  %v9724_v42 = vrot.slane %v5444_v45, %v8295_v50  ;;  %v10001_v11 = vsub.s32 3, %v9999_v51 }
 0x9bd   :  { %v9710_v60 = vpop.f32.mrf.mxu1  ;;  %v9712_v59 = vpop.f32.mrf.mxu0 }
 0x9be   :  { %9997 = vst [vmem:[#allocation51_spill] sm:$0xff] %v9710_v60  ;;  %9998 = vst [vmem:[#allocation52_spill] sm:$0xff] %v9712_v59  ;;  %v9728_v55 = vrot.slane %v5444_v45, %v10001_v11  ;;  %v4801_v45 = vadd.f32 %v4748_v39, %v9570_v40  ;;  %v4800_v11 = vadd.f32 %v4663_v0, %v9573_v3 }
 0x9dc   :  { %v5268_v60 = vpop.f32.mrf.mxu1  ;;  %v5355_v59 = vpop.f32.mrf.mxu0 }
 0x9dd   :  { %v5408_v44 = vadd.f32 %v5268_v60, %v4795_v15  ;;  %v5410_v53 = vadd.f32 %v5355_v59, %v4797_v33  ;;  %v4803_v15 = vadd.f32 %v4667_v37, %v9579_v63  ;;  %v4807_v37 = vadd.f32 %v9666_v52, %v9591_v28 }
 0x9de   :  { %v5270_v6 = vpop.f32.mrf.mxu1  ;;  %v5357_v54 = vpop.f32.mrf.mxu0  ;;  %v4808_v59 = vadd.f32 %v9670_v20, %v9597_v58  ;;  %v4813_v58 = vadd.f32 %v9676_v38, %v9606_v61 }
 0x9df   :  { %v5466_v27 = vadd.f32 %v9715_v57, %v5408_v44  ;;  %v5468_v49 = vadd.f32 %v9719_v21, %v5410_v53  ;;  %v5409_v50 = vadd.f32 %v5270_v6, %v4796_v48  ;;  %v5411_v51 = vadd.f32 %v5357_v54, %v4798_v41 }
 0x9e0   :  { %v5274_v26 = vpop.f32.mrf.mxu1  ;;  %v5361_v14 = vpop.f32.mrf.mxu0  ;;  %v4805_v44 = vadd.f32 %v4754_v5, %v9582_v23  ;;  %v4810_v53 = vadd.f32 %v9672_v1, %v9600_v30 }
 0x9e1   :  { %v5467_v60 = vadd.f32 %v9724_v42, %v5409_v50  ;;  %v5469_v47 = vadd.f32 %v9728_v55, %v5411_v51  ;;  %v5412_v33 = vadd.f32 %v5274_v26, %v4799_v29  ;;  %7698 = vtanh.f32 %v5466_v27 }
 0x9e2   :  { %v5414_v48 = vadd.f32 %v5361_v14, %v4801_v45  ;;  %v5276_v18 = vpop.f32.mrf.mxu1  ;;  %v5363_v25 = vpop.f32.mrf.mxu0  ;;  %v4806_v50 = vadd.f32 %v9664_v12, %v9588_v24  ;;  %v4811_v27 = vadd.f32 %v9674_v46, %v9603_v8  ;;  %v4814_v14 = vadd.f32 %v9680_v9, %v9612_v36 }
 0x9e3   :  { %7700 = vtanh.f32 %v5467_v60  ;;  %v5470_v40 = vadd.f32 %v9715_v57, %v5412_v33  ;;  %v5413_v3 = vadd.f32 %v5276_v18, %v4800_v11  ;;  %v5415_v22 = vadd.f32 %v5363_v25, %v4802_v62 }
 0x9e4   :  { %7702 = vtanh.f32 %v5469_v47  ;;  %v5472_v63 = vadd.f32 %v9719_v21, %v5414_v48  ;;  %v5280_v26 = vpop.f32.mrf.mxu1  ;;  %v5367_v23 = vpop.f32.mrf.mxu0  ;;  %v4812_v11 = vadd.f32 %v9678_v19, %v9609_v56  ;;  %v4815_v47 = vadd.f32 %v9682_v13, %v9615_v4 }
 0x9e5   :  { %7704 = vtanh.f32 %v5468_v49  ;;  %v5471_v39 = vadd.f32 %v9724_v42, %v5413_v3  ;;  %v5473_v0 = vadd.f32 %v9728_v55, %v5415_v22  ;;  %v5416_v2 = vadd.f32 %v5280_v26, %v4803_v15  ;;  %v10003_v3 = vld [vmem:[#allocation40_spill] sm:$0xff] }
 0x9e6   :  { %7706 = vtanh.f32 %v5470_v40  ;;  %v5418_v5 = vadd.f32 %v5367_v23, %v4805_v44  ;;  %v5282_v24 = vpop.f32.mrf.mxu1  ;;  %v5369_v31 = vpop.f32.mrf.mxu0  ;;  %v4817_v56 = vadd.f32 %v9684_v34, %v9618_v35  ;;  %v4816_v25 = vadd.f32 %v9686_v16, %v9621_v32  ;;  %v10002_v40 = vld [vmem:[#allocation27_spill] sm:$0xff]  ;;  %v10004_v23 = vld [vmem:[#allocation28_spill] sm:$0xff]  ;;  %v10006_v16 = vld [vmem:[#allocation29_spill] sm:$0xff] }
 0x9e7   :  { %7708 = vtanh.f32 %v5471_v39  ;;  %v5474_v12 = vadd.f32 %v9715_v57, %v5416_v2  ;;  %v5417_v29 = vadd.f32 %v5282_v24, %v4804_v17  ;;  %v5419_v41 = vadd.f32 %v5369_v31, %v4806_v50  ;;  %v10005_v39 = vld [vmem:[#allocation41_spill] sm:$0xff] }
 0x9e8   :  { %7710 = vtanh.f32 %v5473_v0  ;;  %v5476_v28 = vadd.f32 %v9719_v21, %v5418_v5  ;;  %v5286_v52 = vpop.f32.mrf.mxu1  ;;  %v5373_v7 = vpop.f32.mrf.mxu0  ;;  %v4818_v4 = vadd.f32 %v10003_v3, %v10002_v40  ;;  %v4819_v32 = vadd.f32 %v10005_v39, %v10004_v23  ;;  %v10007_v0 = vld [vmem:[#allocation42_spill] sm:$0xff] }
 0x9e9   :  { %7712 = vtanh.f32 %v5472_v63  ;;  %v5475_v43 = vadd.f32 %v9724_v42, %v5417_v29  ;;  %v5477_v6 = vadd.f32 %v9728_v55, %v5419_v41  ;;  %v5420_v54 = vadd.f32 %v5286_v52, %v4807_v37  ;;  %v10010_v52 = vld [vmem:[#allocation31_spill] sm:$0xff]  ;;  %v10023_v23 = vld [vmem:[#allocation50_spill] sm:$0xff] }
 0x9ea   :  { %7714 = vtanh.f32 %v5474_v12  ;;  %v5422_v20 = vadd.f32 %v5373_v7, %v4809_v10  ;;  %v5288_v30 = vpop.f32.mrf.mxu1  ;;  %v5375_v1 = vpop.f32.mrf.mxu0  ;;  %v4821_v2 = vadd.f32 %v10007_v0, %v10006_v16  ;;  %v10011_v7 = vld [vmem:[#allocation44_spill] sm:$0xff] }
 0x9eb   :  { %7716 = vtanh.f32 %v5475_v43  ;;  %v5478_v49 = vadd.f32 %v9715_v57, %v5420_v54  ;;  %v5421_v51 = vadd.f32 %v5288_v30, %v4808_v59  ;;  %v5423_v45 = vadd.f32 %v5375_v1, %v4810_v53  ;;  %v10008_v59 = vld [vmem:[#allocation30_spill] sm:$0xff]  ;;  %v10009_v53 = vld [vmem:[#allocation43_spill] sm:$0xff] }
 0x9ec   :  { %7718 = vtanh.f32 %v5477_v6  ;;  %v5480_v8 = vadd.f32 %v9719_v21, %v5422_v20  ;;  %v5292_v46 = vpop.f32.mrf.mxu1  ;;  %v5379_v61 = vpop.f32.mrf.mxu0  ;;  %v4822_v43 = vadd.f32 %v10011_v7, %v10010_v52 }
 0x9ed   :  { %7720 = vtanh.f32 %v5476_v28  ;;  %v5479_v38 = vadd.f32 %v9724_v42, %v5421_v51  ;;  %v5481_v62 = vadd.f32 %v9728_v55, %v5423_v45  ;;  %v5424_v60 = vadd.f32 %v5292_v46, %v4811_v27  ;;  %v10012_v51 = vld [vmem:[#allocation32_spill] sm:$0xff]  ;;  %v10013_v45 = vld [vmem:[#allocation45_spill] sm:$0xff] }
 0x9ee   :  { %7722 = vtanh.f32 %v5478_v49  ;;  %v5426_v19 = vadd.f32 %v5379_v61, %v4813_v58  ;;  %v5294_v36 = vpop.f32.mrf.mxu1  ;;  %v5381_v9 = vpop.f32.mrf.mxu0  ;;  %v4820_v28 = vadd.f32 %v10009_v53, %v10008_v59  ;;  %v10027_v59 = vld [vmem:[#allocation52_spill] sm:$0xff] }
 0x9ef   :  { %v7699_v33 = vpop.eup %7698  ;;  %7724 = vtanh.f32 %v5479_v38  ;;  %v5482_v15 = vadd.f32 %v9715_v57, %v5424_v60  ;;  %v5425_v44 = vadd.f32 %v5294_v36, %v4812_v11  ;;  %v5427_v48 = vadd.f32 %v5381_v9, %v4814_v14  ;;  %v10014_v14 = vld [vmem:[#allocation33_spill] sm:$0xff]  ;;  %v10016_v9 = vld [vmem:[#allocation34_spill] sm:$0xff] }
 0x9f0   :  { %v7701_v18 = vpop.eup %7700  ;;  %7726 = vtanh.f32 %v5481_v62  ;;  %v5484_v35 = vadd.f32 %v9719_v21, %v5426_v19  ;;  %v5298_v13 = vpop.f32.mrf.mxu1  ;;  %v4823_v11 = vadd.f32 %v10013_v45, %v10012_v51 }
 0x9f1   :  { %v5385_v34 = vpop.f32.mrf.mxu0  ;;  %v7703_v22 = vpop.eup %7702  ;;  %7728 = vtanh.f32 %v5480_v8  ;;  %v5483_v17 = vadd.f32 %v9724_v42, %v5425_v44  ;;  %v5485_v50 = vadd.f32 %v9728_v55, %v5427_v48  ;;  %v5428_v63 = vadd.f32 %v5298_v13, %v4815_v47  ;;  %5966 = vmatprep.mubr.f32.mxu1 %v7701_v18  ;;  %v10015_v8 = vld [vmem:[#allocation46_spill] sm:$0xff]  ;;  %v10018_v44 = vld [vmem:[#allocation35_spill] sm:$0xff]  ;;  %v10019_v48 = vld [vmem:[#allocation48_spill] sm:$0xff] }
 0x9f2   :  { %v7705_v26 = vpop.eup %7704  ;;  %7730 = vtanh.f32 %v5482_v15  ;;  %v5430_v37 = vadd.f32 %v5385_v34, %v4817_v56  ;;  %6053 = vmatprep.mubr.f32.mxu0 %v7703_v22  ;;  %v5300_v10 = vpop.f32.mrf.mxu1  ;;  %5967 = vmatmul.mubr.f32.vlgmr.msra.gmra.mxu1 %v7699_v33  ;;  %v4825_v46 = vadd.f32 %v10015_v8, %v10014_v14  ;;  %v10017_v33 = vld [vmem:[#allocation47_spill] sm:$0xff]  ;;  %v4826_v18 = vadd.f32 %v10019_v48, %v10018_v44 }
 0x9f3   :  { %v5387_v5 = vpop.f32.mrf.mxu0  ;;  %v7707_v24 = vpop.eup %7706  ;;  %7732 = vtanh.f32 %v5483_v17  ;;  %v5486_v31 = vadd.f32 %v9715_v57, %v5428_v63  ;;  %v5429_v12 = vadd.f32 %v5300_v10, %v4816_v25  ;;  %6054 = vmatmul.mubr.f32.vlgmr.msra.gmra.mxu0 %v7705_v26  ;;  %v4824_v15 = vadd.f32 %v10017_v33, %v10016_v9  ;;  %v10020_v17 = vld [vmem:[#allocation36_spill] sm:$0xff]  ;;  %v10022_v26 = vld [vmem:[#allocation37_spill] sm:$0xff] }
 0x9f4   :  { %v5431_v29 = vadd.f32 %v5387_v5, %v4818_v4  ;;  %v7709_v41 = vpop.eup %7708  ;;  %7734 = vtanh.f32 %v5485_v50  ;;  %v5488_v6 = vadd.f32 %v9719_v21, %v5430_v37  ;;  %v5304_v54 = vpop.f32.mrf.mxu1  ;;  %v10021_v50 = vld [vmem:[#allocation49_spill] sm:$0xff]  ;;  %v4829_v39 = vadd.f32 %v10023_v23, %v10022_v26 }
 0x9f5   :  { %v5391_v27 = vpop.f32.mrf.mxu0  ;;  %v7711_v58 = vpop.eup %7710  ;;  %7736 = vtanh.f32 %v5484_v35  ;;  %v5487_v20 = vadd.f32 %v9724_v42, %v5429_v12  ;;  %v5432_v1 = vadd.f32 %v5304_v54, %v4819_v32  ;;  %5972 = vmatprep.mubr.f32.mxu1 %v7709_v41  ;;  %v4827_v63 = vadd.f32 %v10021_v50, %v10020_v17  ;;  %v10025_v12 = vld [vmem:[#allocation51_spill] sm:$0xff] }
 0x9f6   :  { %v5489_v30 = vadd.f32 %v9728_v55, %v5431_v29  ;;  %v7713_v49 = vpop.eup %7712  ;;  %7738 = vtanh.f32 %v5486_v31  ;;  %v5434_v61 = vadd.f32 %v5391_v27, %v4821_v2  ;;  %6059 = vmatprep.mubr.f32.mxu0 %v7711_v58  ;;  %v5306_v38 = vpop.f32.mrf.mxu1  ;;  %5973 = vmatmul.mubr.f32.gmra.mxu1 %v7707_v24  ;;  %v10024_v31 = vld [vmem:[#allocation38_spill] sm:$0xff]  ;;  %v10026_v41 = vld [vmem:[#allocation39_spill] sm:$0xff] }
 0x9f7   :  { %v5393_v62 = vpop.f32.mrf.mxu0  ;;  %v7715_v60 = vpop.eup %7714  ;;  %7740 = vtanh.f32 %v5487_v20  ;;  %v5490_v47 = vadd.f32 %v9715_v57, %v5432_v1  ;;  %v5433_v56 = vadd.f32 %v5306_v38, %v4820_v28  ;;  %6060 = vmatmul.mubr.f32.gmra.mxu0 %v7713_v49  ;;  %v4828_v29 = vadd.f32 %v10025_v12, %v10024_v31 }
 0x9f8   :  { %v5435_v19 = vadd.f32 %v5393_v62, %v4822_v43  ;;  %v7717_v36 = vpop.eup %7716  ;;  %7742 = vtanh.f32 %v5489_v30  ;;  %v5492_v25 = vadd.f32 %v9719_v21, %v5434_v61  ;;  %v5310_v40 = vpop.f32.mrf.mxu1  ;;  %v4830_v53 = vadd.f32 %v10027_v59, %v10026_v41 }
 0x9f9   :  { %v5397_v3 = vpop.f32.mrf.mxu0  ;;  %v7719_v4 = vpop.eup %7718  ;;  %7744 = vtanh.f32 %v5488_v6  ;;  %v5491_v35 = vadd.f32 %v9724_v42, %v5433_v56  ;;  %v5436_v34 = vadd.f32 %v5310_v40, %v4823_v11  ;;  %5978 = vmatprep.mubr.f32.mxu1 %v7717_v36  ;;  %v5602_v40 = vld [vmem:[#allocation16] sm:$0x3] }
 0x9fa   :  { %v5493_v13 = vadd.f32 %v9728_v55, %v5435_v19  ;;  %v7721_v22 = vpop.eup %7720  ;;  %7746 = vtanh.f32 %v5490_v47  ;;  %v5438_v32 = vadd.f32 %v5397_v3, %v4825_v46  ;;  %6065 = vmatprep.mubr.f32.mxu0 %v7719_v4  ;;  %v5312_v16 = vpop.f32.mrf.mxu1  ;;  %5979 = vmatmul.mubr.f32.gmra.mxu1 %v7715_v60  ;;  %v10028_v3 = vld [vmem:[#allocation25_spill] sm:$0xff] }
 0x9fb   :  { %v5399_v0 = vpop.f32.mrf.mxu0  ;;  %v7723_v2 = vpop.eup %7722  ;;  %7748 = vtanh.f32 %v5491_v35  ;;  %v5494_v37 = vadd.f32 %v9715_v57, %v5436_v34  ;;  %v5437_v10 = vadd.f32 %v5312_v16, %v4824_v15  ;;  %6066 = vmatmul.mubr.f32.gmra.mxu0 %v7721_v22  ;;  %v9827_v4 = vrot.slane %v5602_v40, %v10028_v3  ;;  %v10029_v35 = vld [vmem:[#allocation26_spill] sm:$0xff] }
 0x9fc   :  { %v5439_v5 = vadd.f32 %v5399_v0, %v4826_v18  ;;  %v7725_v24 = vpop.eup %7724  ;;  %7750 = vtanh.f32 %v5493_v13  ;;  %v5496_v28 = vadd.f32 %v9719_v21, %v5438_v32  ;;  %v5316_v52 = vpop.f32.mrf.mxu1  ;;  %v9830_v13 = vrot.slane %v5602_v40, %v10029_v35 }
 0x9fd   :  { %v5403_v7 = vpop.f32.mrf.mxu0  ;;  %v7727_v43 = vpop.eup %7726  ;;  %7752 = vtanh.f32 %v5492_v25  ;;  %v5495_v6 = vadd.f32 %v9724_v42, %v5437_v10  ;;  %v5440_v27 = vadd.f32 %v5316_v52, %v4827_v63  ;;  %5984 = vmatprep.mubr.f32.mxu1 %v7725_v24 }
 0x9fe   :  { %v5497_v54 = vadd.f32 %v9728_v55, %v5439_v5  ;;  %v7729_v58 = vpop.eup %7728  ;;  %7754 = vtanh.f32 %v5494_v37  ;;  %v5442_v20 = vadd.f32 %v5403_v7, %v4829_v39  ;;  %6071 = vmatprep.mubr.f32.mxu0 %v7727_v43  ;;  %v5318_v30 = vpop.f32.mrf.mxu1  ;;  %5985 = vmatmul.mubr.f32.gmra.mxu1 %v7723_v2 }
 0x9ff   :  { %v5405_v1 = vpop.f32.mrf.mxu0  ;;  %v7731_v49 = vpop.eup %7730  ;;  %7756 = vtanh.f32 %v5495_v6  ;;  %v5498_v51 = vadd.f32 %v9715_v57, %v5440_v27  ;;  %v5441_v45 = vadd.f32 %v5318_v30, %v4828_v29  ;;  %6072 = vmatmul.mubr.f32.gmra.mxu0 %v7729_v58 }
 0xa00   :  { %v5443_v11 = vadd.f32 %v5405_v1, %v4830_v53  ;;  %v7733_v14 = vpop.eup %7732  ;;  %7758 = vtanh.f32 %v5497_v54  ;;  %v5500_v8 = vadd.f32 %v9719_v21, %v5442_v20 }
 0xa01   :  { %v7735_v46 = vpop.eup %7734  ;;  %7760 = vtanh.f32 %v5496_v28  ;;  %v5499_v61 = vadd.f32 %v9724_v42, %v5441_v45  ;;  %5990 = vmatprep.mubr.f32.mxu1 %v7733_v14 }
 0xa02   :  { %v5501_v38 = vadd.f32 %v9728_v55, %v5443_v11  ;;  %v7737_v62 = vpop.eup %7736  ;;  %7762 = vtanh.f32 %v5498_v51  ;;  %6077 = vmatprep.mubr.f32.mxu0 %v7735_v46  ;;  %5991 = vmatmul.mubr.f32.gmra.mxu1 %v7731_v49 }
 0xa03   :  { %v7739_v60 = vpop.eup %7738  ;;  %7764 = vtanh.f32 %v5499_v61  ;;  %6078 = vmatmul.mubr.f32.gmra.mxu0 %v7737_v62 }
 0xa04   :  { %v7741_v57 = vpop.eup %7740  ;;  %7766 = vtanh.f32 %v5501_v38 }
 0xa05   :  { %v7743_v47 = vpop.eup %7742  ;;  %7768 = vtanh.f32 %v5500_v8  ;;  %5996 = vmatprep.mubr.f32.mxu1 %v7741_v57 }
 0xa06   :  { %v7745_v21 = vpop.eup %7744  ;;  %6083 = vmatprep.mubr.f32.mxu0 %v7743_v47  ;;  %5997 = vmatmul.mubr.f32.gmra.mxu1 %v7739_v60 }
 0xa07   :  { %v7747_v56 = vpop.eup %7746  ;;  %6084 = vmatmul.mubr.f32.gmra.mxu0 %v7745_v21 }
 0xa08   :  { %v7749_v42 = vpop.eup %7748 }
 0xa09   :  { %v7751_v55 = vpop.eup %7750  ;;  %6002 = vmatprep.mubr.f32.mxu1 %v7749_v42 }
 0xa0a   :  { %v7753_v19 = vpop.eup %7752  ;;  %6089 = vmatprep.mubr.f32.mxu0 %v7751_v55  ;;  %6003 = vmatmul.mubr.f32.gmra.mxu1 %v7747_v56 }
 0xa0b   :  { %v7755_v36 = vpop.eup %7754  ;;  %6090 = vmatmul.mubr.f32.gmra.mxu0 %v7753_v19 }
 0xa0c   :  { %v7757_v9 = vpop.eup %7756 }
 0xa0d   :  { %v7759_v33 = vpop.eup %7758  ;;  %6008 = vmatprep.mubr.f32.mxu1 %v7757_v9 }
 0xa0e   :  { %v7761_v15 = vpop.eup %7760  ;;  %6095 = vmatprep.mubr.f32.mxu0 %v7759_v33  ;;  %6009 = vmatmul.mubr.f32.gmra.mxu1 %v7755_v36 }
 0xa0f   :  { %v7763_v44 = vpop.eup %7762  ;;  %6096 = vmatmul.mubr.f32.gmra.mxu0 %v7761_v15 }
 0xa10   :  { %v7765_v48 = vpop.eup %7764 }
 0xa11   :  { %v7767_v18 = vpop.eup %7766  ;;  %6014 = vmatprep.mubr.f32.mxu1 %v7765_v48 }
 0xa12   :  { %v7769_v25 = vpop.eup %7768  ;;  %6101 = vmatprep.mubr.f32.mxu0 %v7767_v18  ;;  %6015 = vmatmul.mubr.f32.gmra.mxu1 %v7763_v44 }
 0xa13   :  { %6102 = vmatmul.mubr.f32.gmra.mxu0 %v7769_v25 }
 0xab2   :  { %v5968_v34 = vpop.f32.mrf.mxu1 }
 0xab3   :  { %v5969_v22 = vadd.f32 %v5968_v34, %v9827_v4  ;;  %v6055_v17 = vpop.f32.mrf.mxu0 }
 0xab4   :  { %v5970_v50 = vpop.f32.mrf.mxu1 }
 0xab5   :  { %v6056_v63 = vadd.f32 %v6055_v17, %v5969_v22  ;;  %v5971_v26 = vadd.f32 %v5970_v50, %v9830_v13  ;;  %v6057_v23 = vpop.f32.mrf.mxu0 }
 0xab6   :  { %v5974_v39 = vpop.f32.mrf.mxu1 }
 0xab7   :  { %6108 = vst [vmem:[%s9925_s21] sm:$0xff] %v6056_v63  ;;  %v6058_v32 = vadd.f32 %v6057_v23, %v5971_v26  ;;  %v5975_v16 = vadd.f32 %v5974_v39, %v9827_v4  ;;  %v6061_v0 = vpop.f32.mrf.mxu0 }
 0xab8   :  { %v5976_v2 = vpop.f32.mrf.mxu1 }
 0xab9   :  { %6109 = vst [vmem:[%s9925_s21 + $0x8] sm:$0xff] %v6058_v32  ;;  %v6062_v37 = vadd.f32 %v6061_v0, %v5975_v16  ;;  %v5977_v10 = vadd.f32 %v5976_v2, %v9830_v13  ;;  %v6063_v5 = vpop.f32.mrf.mxu0 }
 0xaba   :  { %v5980_v24 = vpop.f32.mrf.mxu1 }
 0xabb   :  { %6110 = vst [vmem:[%s9925_s21 + $0x10] sm:$0xff] %v6062_v37  ;;  %v6064_v31 = vadd.f32 %v6063_v5, %v5977_v10  ;;  %v5981_v12 = vadd.f32 %v5980_v24, %v9827_v4  ;;  %v6067_v29 = vpop.f32.mrf.mxu0 }
 0xabc   :  { %v5982_v41 = vpop.f32.mrf.mxu1 }
 0xabd   :  { %6111 = vst [vmem:[%s9925_s21 + $0x18] sm:$0xff] %v6064_v31  ;;  %v6068_v59 = vadd.f32 %v6067_v29, %v5981_v12  ;;  %v5983_v53 = vadd.f32 %v5982_v41, %v9830_v13  ;;  %v6069_v28 = vpop.f32.mrf.mxu0 }
 0xabe   :  { %v5986_v52 = vpop.f32.mrf.mxu1 }
 0xabf   :  { %6112 = vst [vmem:[%s9925_s21 + $0x20] sm:$0xff] %v6068_v59  ;;  %v6070_v7 = vadd.f32 %v6069_v28, %v5983_v53  ;;  %v5987_v43 = vadd.f32 %v5986_v52, %v9827_v4  ;;  %v6073_v6 = vpop.f32.mrf.mxu0 }
 0xac0   :  { %v5988_v54 = vpop.f32.mrf.mxu1 }
 0xac1   :  { %6113 = vst [vmem:[%s9925_s21 + $0x28] sm:$0xff] %v6070_v7  ;;  %v6074_v27 = vadd.f32 %v6073_v6, %v5987_v43  ;;  %v5989_v58 = vadd.f32 %v5988_v54, %v9830_v13  ;;  %v6075_v20 = vpop.f32.mrf.mxu0 }
 0xac2   :  { %v5992_v30 = vpop.f32.mrf.mxu1 }
 0xac3   :  { %6114 = vst [vmem:[%s9925_s21 + $0x30] sm:$0xff] %v6074_v27  ;;  %v6076_v1 = vadd.f32 %v6075_v20, %v5989_v58  ;;  %v5993_v49 = vadd.f32 %v5992_v30, %v9827_v4  ;;  %v6079_v51 = vpop.f32.mrf.mxu0 }
 0xac4   :  { %v5994_v45 = vpop.f32.mrf.mxu1 }
 0xac5   :  { %6115 = vst [vmem:[%s9925_s21 + $0x38] sm:$0xff] %v6076_v1  ;;  %v6080_v11 = vadd.f32 %v6079_v51, %v5993_v49  ;;  %v5995_v14 = vadd.f32 %v5994_v45, %v9830_v13  ;;  %v6081_v8 = vpop.f32.mrf.mxu0 }
 0xac6   :  { %v5998_v46 = vpop.f32.mrf.mxu1 }
 0xac7   :  { %6116 = vst [vmem:[%s9925_s21 + $0x40] sm:$0xff] %v6080_v11  ;;  %v6082_v61 = vadd.f32 %v6081_v8, %v5995_v14  ;;  %v5999_v38 = vadd.f32 %v5998_v46, %v9827_v4  ;;  %v6085_v62 = vpop.f32.mrf.mxu0 }
 0xac8   :  { %v6000_v60 = vpop.f32.mrf.mxu1 }
 0xac9   :  { %6117 = vst [vmem:[%s9925_s21 + $0x48] sm:$0xff] %v6082_v61  ;;  %v6086_v57 = vadd.f32 %v6085_v62, %v5999_v38  ;;  %v6001_v47 = vadd.f32 %v6000_v60, %v9830_v13  ;;  %v6087_v21 = vpop.f32.mrf.mxu0 }
 0xaca   :  { %v6004_v56 = vpop.f32.mrf.mxu1 }
 0xacb   :  { %6118 = vst [vmem:[%s9925_s21 + $0x50] sm:$0xff] %v6086_v57  ;;  %v6088_v42 = vadd.f32 %v6087_v21, %v6001_v47  ;;  %v6005_v55 = vadd.f32 %v6004_v56, %v9827_v4  ;;  %v6091_v19 = vpop.f32.mrf.mxu0 }
 0xacc   :  { %v6006_v36 = vpop.f32.mrf.mxu1 }
 0xacd   :  { %6119 = vst [vmem:[%s9925_s21 + $0x58] sm:$0xff] %v6088_v42  ;;  %v6092_v9 = vadd.f32 %v6091_v19, %v6005_v55  ;;  %v6007_v33 = vadd.f32 %v6006_v36, %v9830_v13  ;;  %v6093_v15 = vpop.f32.mrf.mxu0 }
 0xace   :  { %v6010_v44 = vpop.f32.mrf.mxu1 }
 0xacf   :  { %6120 = vst [vmem:[%s9925_s21 + $0x60] sm:$0xff] %v6092_v9  ;;  %v6094_v48 = vadd.f32 %v6093_v15, %v6007_v33  ;;  %v6011_v18 = vadd.f32 %v6010_v44, %v9827_v4  ;;  %v6097_v25 = vpop.f32.mrf.mxu0 }
 0xad0   :  { %v6012_v40 = vpop.f32.mrf.mxu1 }
 0xad1   :  { %6121 = vst [vmem:[%s9925_s21 + $0x68] sm:$0xff] %v6094_v48  ;;  %v6098_v3 = vadd.f32 %v6097_v25, %v6011_v18  ;;  %v6013_v35 = vadd.f32 %v6012_v40, %v9830_v13  ;;  %v6099_v34 = vpop.f32.mrf.mxu0 }
 0xad2   :  { %v6016_v22 = vpop.f32.mrf.mxu1 }
 0xad3   :  { %6122 = vst [vmem:[%s9925_s21 + $0x70] sm:$0xff] %v6098_v3  ;;  %v6100_v17 = vadd.f32 %v6099_v34, %v6013_v35  ;;  %v6017_v50 = vadd.f32 %v6016_v22, %v9827_v4  ;;  %v6103_v63 = vpop.f32.mrf.mxu0 }
 0xad4   :  { %v6018_v26 = vpop.f32.mrf.mxu1 }
 0xad5   :  { %6123 = vst [vmem:[%s9925_s21 + $0x78] sm:$0xff] %v6100_v17  ;;  %v6104_v23 = vadd.f32 %v6103_v63, %v6017_v50  ;;  %v6019_v39 = vadd.f32 %v6018_v26, %v9830_v13  ;;  %v6105_v32 = vpop.f32.mrf.mxu0 }
 0xad7   :  { %6124 = vst [vmem:[%s9925_s21 + $0x80] sm:$0xff] %v6104_v23  ;;  %v6106_v16 = vadd.f32 %v6105_v32, %v6019_v39 }
 0xad9   :  { %6125 = vst [vmem:[%s9925_s21 + $0x88] sm:$0xff] %v6106_v16 }
 0xada   :  { %6130 = vsyncpa [#allocation3], 1 }
 0xadb   :  { %6131 = vsyncpa [#allocation5], 1 }
 0xadc   :  { %6132 = vsyncpa [#allocation8], 1 }
 0xadd   :  { %6133 = vsyncpa [#allocation11], 1 }
 0xade   :  { %6134 = vsyncpa [#allocation14], 1 }
 0xadf   :  { %6135 = vsyncpa [#allocation17], 1 }

</bundles_post_ra>
